<compile_context>
chip_gen: v6e
topology: v6e:2x2x1
jax: 0.10.0
libtpu: 0.0.40
codegen_flags: <defaults>
</compile_context>

<pallas_src>
import numpy as np
import jax
import jax.numpy as jnp
from jax.experimental import pallas as pl
from jax.experimental.pallas import tpu as pltpu

JOINT_NUM = 21                    # input joints (small, synthetic)
IN_DIM = JOINT_NUM * 3            # 63
H1, H2 = 1024, 512
N_POSE_JOINTS = 24                # non-FreiHAND branch -> 24 x 6d rotations
POSE6D_DIM = N_POSE_JOINTS * 6    # 144
SHAPE_DIM = 10
HEAD_DIM = POSE6D_DIM + SHAPE_DIM  # 154
POSE_OUT = N_POSE_JOINTS * 3      # 72
PACK_DIM = POSE_OUT + SHAPE_DIM   # 82 (valid lanes of the fused output)
OUT_PAD = 128                     # lane-dense fused output width
BN_EPS = 1e-5


# --------------------------------------------------------------------------
# Fused kernel: FC trunk (bf16 MXU) + heads + rot6d -> angle-axis (f32 epilogue)
# --------------------------------------------------------------------------
def make_regressor_kernel(tb, ch):
    """tb: batch tile rows; ch: epilogue strip-mining chunk (divides tb)."""
    n_chunks = tb // ch
    J = N_POSE_JOINTS

    def kernel(x_ref, w1_ref, b1_ref, w2_ref, b2_ref, wh_ref, bh_ref,
               scat_ref, out_ref, head_sc):
        # ---- FC trunk: Linear+BN(eval)+ReLU x2, then fused pose+shape head ----
        # MXU operands in bf16, f32 accumulate; bias adds and ReLU in f32.
        x = x_ref[...].astype(jnp.bfloat16)                              # (TB, 63)
        h1 = jnp.dot(x, w1_ref[...], preferred_element_type=jnp.float32)
        h1 = jnp.maximum(h1 + b1_ref[...], 0.0)                          # (TB, 1024) f32
        feat = jnp.dot(h1.astype(jnp.bfloat16), w2_ref[...],
                       preferred_element_type=jnp.float32)
        feat = jnp.maximum(feat + b2_ref[...], 0.0)                      # (TB, 512) f32
        # Fused heads: cols [0:144] = pose6d (component-grouped), [144:154] = shape.
        head_sc[...] = jnp.dot(feat.astype(jnp.bfloat16), wh_ref[...],
                               preferred_element_type=jnp.float32) + bh_ref[...]

        # ---- rot6d -> rotmat -> quaternion -> angle-axis, strip-mined over rows ----
        def do_rows(off):
            head = head_sc[pl.ds(off, ch), :]                            # (ch, 154) f32
            a1x = head[:, 0 * J:1 * J]; a2x = head[:, 1 * J:2 * J]
            a1y = head[:, 2 * J:3 * J]; a2y = head[:, 3 * J:4 * J]
            a1z = head[:, 4 * J:5 * J]; a2z = head[:, 5 * J:6 * J]
            shp = head[:, 6 * J:6 * J + SHAPE_DIM]                       # (ch, 10)

            # Gram-Schmidt, matching F.normalize(eps=1e-12): /max(n,eps) == *min(1/n,1e12).
            inv_eps = 1e12
            s1 = a1x * a1x + a1y * a1y + a1z * a1z
            inv_n1 = jnp.minimum(jax.lax.rsqrt(s1), inv_eps)
            b1x, b1y, b1z = a1x * inv_n1, a1y * inv_n1, a1z * inv_n1

            d = b1x * a2x + b1y * a2y + b1z * a2z                        # einsum('bi,bi->b')
            ux, uy, uz = a2x - d * b1x, a2y - d * b1y, a2z - d * b1z
            s2 = ux * ux + uy * uy + uz * uz
            inv_n2 = jnp.minimum(jax.lax.rsqrt(s2), inv_eps)
            b2x, b2y, b2z = ux * inv_n2, uy * inv_n2, uz * inv_n2

            # b3 = b1 x b2
            b3x = b1y * b2z - b1z * b2y
            b3y = b1z * b2x - b1x * b2z
            b3z = b1x * b2y - b1y * b2x

            # R = stack((b1,b2,b3), dim=-1); tgm transposes, so m rows are b1, b2, b3.
            m00, m01, m02 = b1x, b1y, b1z
            m10, m11, m12 = b2x, b2y, b2z
            m20, m21, m22 = b3x, b3y, b3z

            eps = 1e-6
            mask_d2 = m22 < eps
            mask_d0_d1 = m00 > m11
            mask_d0_nd1 = m00 < -m11

            t0 = 1.0 + m00 - m11 - m22
            t1 = 1.0 - m00 + m11 - m22
            t2 = 1.0 - m00 - m11 + m22
            t3 = 1.0 + m00 + m11 + m22

            q0 = (m12 - m21, t0, m01 + m10, m20 + m02)
            q1 = (m20 - m02, m01 + m10, t1, m12 + m21)
            q2 = (m01 - m10, m20 + m02, m12 + m21, t2)
            q3 = (t3, m12 - m21, m20 - m02, m01 - m10)

            c0 = jnp.logical_and(mask_d2, mask_d0_d1).astype(jnp.float32)
            c1 = jnp.logical_and(mask_d2, jnp.logical_not(mask_d0_d1)).astype(jnp.float32)
            c2 = jnp.logical_and(jnp.logical_not(mask_d2), mask_d0_nd1).astype(jnp.float32)
            c3 = jnp.logical_and(jnp.logical_not(mask_d2),
                                 jnp.logical_not(mask_d0_nd1)).astype(jnp.float32)

            t_sel = t0 * c0 + t1 * c1 + t2 * c2 + t3 * c3
            half_inv_denom = 0.5 * jax.lax.rsqrt(t_sel)                  # = 0.5 / sqrt(t_sel)
            qw = (q0[0] * c0 + q1[0] * c1 + q2[0] * c2 + q3[0] * c3) * half_inv_denom
            qx = (q0[1] * c0 + q1[1] * c1 + q2[1] * c2 + q3[1] * c3) * half_inv_denom
            qy = (q0[2] * c0 + q1[2] * c1 + q2[2] * c2 + q3[2] * c3) * half_inv_denom
            qz = (q0[3] * c0 + q1[3] * c1 + q2[3] * c2 + q3[3] * c3) * half_inv_denom

            # quaternion -> angle-axis (single arctan2 via sign flip; same branch math).
            sin_sq = qx * qx + qy * qy + qz * qz
            sin_t = jnp.sqrt(sin_sq)
            cos_t = qw
            sign = jnp.where(cos_t < 0.0, -1.0, 1.0)
            two_theta = 2.0 * jnp.arctan2(sign * sin_t, sign * cos_t)
            k = jnp.where(sin_sq > 0.0, two_theta * jax.lax.rsqrt(sin_sq), 2.0)
            ax, ay, az = qx * k, qy * k, qz * k                          # each (ch, 24)

            # Lane-dense fused output row block: [pose(72 interleaved) | shape(10) | 0(46)]
            # via small MXU dots against a precomputed scatter matrix (no iota rebuild).
            out = (jnp.dot(ax, scat_ref[0 * J:1 * J, :], preferred_element_type=jnp.float32)
                   + jnp.dot(ay, scat_ref[1 * J:2 * J, :], preferred_element_type=jnp.float32)
                   + jnp.dot(az, scat_ref[2 * J:3 * J, :], preferred_element_type=jnp.float32)
                   + jnp.dot(shp, scat_ref[3 * J:3 * J + SHAPE_DIM, :],
                             preferred_element_type=jnp.float32))
            out_ref[pl.ds(off, ch), :] = out

        if n_chunks == 1:
            do_rows(0)
        else:
            def body(c, carry):
                do_rows(pl.multiple_of(c * ch, ch))
                return carry
            jax.lax.fori_loop(0, n_chunks, body, 0, unroll=(n_chunks <= 16))

    return kernel


# --------------------------------------------------------------------------
# Wrapper: parameter folding (BN + head fusion + column permutation + bf16 cast)
# --------------------------------------------------------------------------
def _build_scatter():
    """(82,128) f32: packed [ax|ay|az|shape] -> [pose interleaved(72) | shape(10) | 0]."""
    scat = np.zeros((PACK_DIM, OUT_PAD), np.float32)
    for j in range(N_POSE_JOINTS):
        scat[0 * N_POSE_JOINTS + j, 3 * j + 0] = 1.0
        scat[1 * N_POSE_JOINTS + j, 3 * j + 1] = 1.0
        scat[2 * N_POSE_JOINTS + j, 3 * j + 2] = 1.0
    for i in range(SHAPE_DIM):
        scat[POSE_OUT + i, POSE_OUT + i] = 1.0
    return jnp.asarray(scat)


def prepare_params(raw):
    (w1, b1, g1, be1, m1, v1,
     w2, b2, g2, be2, m2, v2,
     wp, bp, ws, bs) = raw

    # Fold eval-mode BatchNorm into the linear weights in f32, then cast weights to bf16.
    s1 = g1 * jax.lax.rsqrt(v1 + BN_EPS)            # (1, H1)
    w1f = (w1 * s1).astype(jnp.bfloat16)            # (63, H1) bf16
    b1f = (b1 - m1) * s1 + be1                      # (1, H1)  f32

    s2 = g2 * jax.lax.rsqrt(v2 + BN_EPS)
    w2f = (w2 * s2).astype(jnp.bfloat16)            # (H1, H2) bf16
    b2f = (b2 - m2) * s2 + be2                      # (1, H2)  f32

    # Permute pose-head columns so the kernel sees component-grouped pose6d:
    # new column k*24 + j  <-  old column 6*j + k  (k in {a1x,a2x,a1y,a2y,a1z,a2z}).
    perm = jnp.arange(POSE6D_DIM).reshape(N_POSE_JOINTS, 6).T.reshape(-1)
    wh = jnp.concatenate([wp[:, perm], ws], axis=1).astype(jnp.bfloat16)  # (H2, 154) bf16
    bh = jnp.concatenate([bp[:, perm], bs], axis=1)                       # (1, 154)  f32

    return w1f, b1f, w2f, b2f, wh, bh, _build_scatter()


def _choose_batch_tile(B):
    # Large B: tiles a multiple of 256 (MXU M), cap 1024, >= 2 grid steps when possible
    # so dimension_semantics=("parallel",) can use both v7x TensorCores.
    if B > 256:
        tb = min(1024, pl.cdiv(B, 2))
        return max(256, (tb // 256) * 256)
    if B >= 16 and B % 16 == 0:
        return B // 2          # two grid steps, tile still a multiple of 8 sublanes
    return B                   # full-array block (second-minor == full dim is allowed)


def _epilogue_chunk(tb):
    for c in (64, 32, 16, 8):
        if tb > c and tb % c == 0:
            return c
    return tb


def param_regressor_forward(pose_3d, prepared, *, single_buffer_weights=True):
    w1f, b1f, w2f, b2f, wh, bh, scat = prepared
    B = pose_3d.shape[0]
    x = pose_3d.reshape(B, IN_DIM).astype(jnp.float32)     # pose_3d.view(-1, J*3)

    TB = _choose_batch_tile(B)
    CH = _epilogue_chunk(TB)
    grid = (pl.cdiv(B, TB),)

    def const_spec(shape):
        if single_buffer_weights:
            # Constant index_map -> no double buffer needed for these blocks.
            return pl.BlockSpec(shape, lambda i: (0, 0), pipeline_mode=pl.Buffered(1))
        return pl.BlockSpec(shape, lambda i: (0, 0))

    fused = pl.pallas_call(
        make_regressor_kernel(TB, CH),
        out_shape=jax.ShapeDtypeStruct((B, OUT_PAD), jnp.float32),
        grid=grid,
        in_specs=[
            pl.BlockSpec((TB, IN_DIM), lambda i: (i, 0)),
            const_spec((IN_DIM, H1)),
            const_spec((1, H1)),
            const_spec((H1, H2)),
            const_spec((1, H2)),
            const_spec((H2, HEAD_DIM)),
            const_spec((1, HEAD_DIM)),
            const_spec((PACK_DIM, OUT_PAD)),
        ],
        out_specs=pl.BlockSpec((TB, OUT_PAD), lambda i: (i, 0)),
        scratch_shapes=[pltpu.VMEM((TB, HEAD_DIM), jnp.float32)],
        compiler_params=pltpu.CompilerParams(
            dimension_semantics=("parallel",)),
    )(x, w1f, b1f, w2f, b2f, wh, bh, scat)

    pose = fused[:, :POSE_OUT]                      # (B, 72)
    shape = fused[:, POSE_OUT:POSE_OUT + SHAPE_DIM]  # (B, 10)
    return pose, shape


# --------------------------------------------------------------------------
# Deterministic parameter init (PyTorch-Linear-style uniform bounds)
# --------------------------------------------------------------------------
def init_params(key):
    ks = jax.random.split(key, 20)

    def lin(kw, kb, fin, fout):
        bound = float(fin) ** -0.5
        w = jax.random.uniform(kw, (fin, fout), jnp.float32, -bound, bound)
        b = jax.random.uniform(kb, (1, fout), jnp.float32, -bound, bound)
        return w, b

    def bn(kg, kb, km, kv, feat):
        g = 1.0 + 0.05 * jax.random.normal(kg, (1, feat), jnp.float32)
        be = 0.05 * jax.random.normal(kb, (1, feat), jnp.float32)
        m = 0.05 * jax.random.normal(km, (1, feat), jnp.float32)
        v = 0.8 + 0.4 * jax.random.uniform(kv, (1, feat), jnp.float32)
        return g, be, m, v

    w1, b1 = lin(ks[0], ks[1], IN_DIM, H1)
    g1, be1, m1, v1 = bn(ks[2], ks[3], ks[4], ks[5], H1)
    w2, b2 = lin(ks[6], ks[7], H1, H2)
    g2, be2, m2, v2 = bn(ks[8], ks[9], ks[10], ks[11], H2)
    wp, bp = lin(ks[12], ks[13], H2, POSE6D_DIM)
    ws, bs = lin(ks[14], ks[15], H2, SHAPE_DIM)

    return (w1, b1, g1, be1, m1, v1,
            w2, b2, g2, be2, m2, v2,
            wp, bp, ws, bs)


if __name__ == "__main__":
    key = jax.random.PRNGKey(0)
    kp, kx = jax.random.split(key)
    raw = init_params(kp)
    prepared = prepare_params(raw)

    # pose_3d: (batch=2, joint_num=21, 3)
    pose_3d = jax.random.normal(kx, (2, JOINT_NUM, 3), jnp.float32)

    try:
        fwd = jax.jit(lambda p: param_regressor_forward(p, prepared,
                                                        single_buffer_weights=True))
        pose, shape = fwd(pose_3d)
        jax.block_until_ready((pose, shape))
    except Exception:
        # Fallback if this jax build rejects pipeline_mode=pl.Buffered(1) on a
        # top-level BlockSpec; identical semantics, just default double-buffering.
        fwd = jax.jit(lambda p: param_regressor_forward(p, prepared,
                                                        single_buffer_weights=False))
        pose, shape = fwd(pose_3d)
        jax.block_until_ready((pose, shape))

    assert pose.shape == (2, POSE_OUT) and pose.dtype == jnp.float32
    assert shape.shape == (2, SHAPE_DIM) and shape.dtype == jnp.float32
    assert bool(jnp.all(jnp.isfinite(pose))) and bool(jnp.all(jnp.isfinite(shape)))
    print("KERNEL_OK")
</pallas_src>

<mosaic_0001>
module attributes {stable_mosaic.version = 11 : i64} {
  func.func @kernel(%arg0: i32, %arg1: memref<2x63xf32, #tpu.memory_space<vmem>>, %arg2: memref<63x1024xbf16, #tpu.memory_space<vmem>>, %arg3: memref<1x1024xf32, #tpu.memory_space<vmem>>, %arg4: memref<1024x512xbf16, #tpu.memory_space<vmem>>, %arg5: memref<1x512xf32, #tpu.memory_space<vmem>>, %arg6: memref<512x154xbf16, #tpu.memory_space<vmem>>, %arg7: memref<1x154xf32, #tpu.memory_space<vmem>>, %arg8: memref<82x128xf32, #tpu.memory_space<vmem>>, %arg9: memref<2x128xf32, #tpu.memory_space<vmem>>, %arg10: memref<2x154xf32, #tpu.memory_space<vmem>>) attributes {dimension_semantics = [#tpu.dimension_semantics<parallel>], iteration_bounds = array<i64: 1>, scalar_prefetch = 0 : i64, scratch_operands = 1 : i64, tpu.core_type = #tpu.core_type<tc>, window_params = [{transform_indices = @transform_0, window_bounds = array<i64: 2, 63>}, {pipeline_mode = #tpu.pipeline_mode<synchronous>, transform_indices = @transform_1, window_bounds = array<i64: 63, 1024>}, {pipeline_mode = #tpu.pipeline_mode<synchronous>, transform_indices = @transform_2, window_bounds = array<i64: 1, 1024>}, {pipeline_mode = #tpu.pipeline_mode<synchronous>, transform_indices = @transform_3, window_bounds = array<i64: 1024, 512>}, {pipeline_mode = #tpu.pipeline_mode<synchronous>, transform_indices = @transform_4, window_bounds = array<i64: 1, 512>}, {pipeline_mode = #tpu.pipeline_mode<synchronous>, transform_indices = @transform_5, window_bounds = array<i64: 512, 154>}, {pipeline_mode = #tpu.pipeline_mode<synchronous>, transform_indices = @transform_6, window_bounds = array<i64: 1, 154>}, {pipeline_mode = #tpu.pipeline_mode<synchronous>, transform_indices = @transform_7, window_bounds = array<i64: 82, 128>}, {transform_indices = @transform_8, window_bounds = array<i64: 2, 128>}]} {
    %c0 = arith.constant 0 : index
    %c0_0 = arith.constant 0 : index
    %0 = vector.load %arg1[%c0, %c0_0] : memref<2x63xf32, #tpu.memory_space<vmem>>, vector<2x63xf32>
    %1 = arith.truncf %0 : vector<2x63xf32> to vector<2x63xbf16>
    %c0_1 = arith.constant 0 : index
    %c0_2 = arith.constant 0 : index
    %2 = vector.load %arg2[%c0_1, %c0_2] : memref<63x1024xbf16, #tpu.memory_space<vmem>>, vector<63x1024xbf16>
    %cst = arith.constant dense<0.000000e+00> : vector<2x1024xf32>
    %3 = tpu.matmul %1, %2, %cst {dimension_numbers = #tpu.dot_dimension_numbers<[1], [0], [0], [1], [0, 0, 1, 1], [], []>} : vector<2x63xbf16>, vector<63x1024xbf16>, vector<2x1024xf32> -> vector<2x1024xf32>
    %c0_3 = arith.constant 0 : index
    %c0_4 = arith.constant 0 : index
    %4 = vector.load %arg3[%c0_3, %c0_4] : memref<1x1024xf32, #tpu.memory_space<vmem>>, vector<1x1024xf32>
    %5 = vector.broadcast %4 : vector<1x1024xf32> to vector<2x1024xf32>
    %6 = arith.addf %3, %5 : vector<2x1024xf32>
    %cst_5 = arith.constant 0.000000e+00 : f32
    %7 = vector.broadcast %cst_5 : f32 to vector<2x1024xf32>
    %8 = arith.maximumf %6, %7 : vector<2x1024xf32>
    %9 = arith.truncf %8 : vector<2x1024xf32> to vector<2x1024xbf16>
    %c0_6 = arith.constant 0 : index
    %c0_7 = arith.constant 0 : index
    %10 = vector.load %arg4[%c0_6, %c0_7] : memref<1024x512xbf16, #tpu.memory_space<vmem>>, vector<1024x512xbf16>
    %cst_8 = arith.constant dense<0.000000e+00> : vector<2x512xf32>
    %11 = tpu.matmul %9, %10, %cst_8 {dimension_numbers = #tpu.dot_dimension_numbers<[1], [0], [0], [1], [0, 0, 1, 1], [], []>} : vector<2x1024xbf16>, vector<1024x512xbf16>, vector<2x512xf32> -> vector<2x512xf32>
    %c0_9 = arith.constant 0 : index
    %c0_10 = arith.constant 0 : index
    %12 = vector.load %arg5[%c0_9, %c0_10] : memref<1x512xf32, #tpu.memory_space<vmem>>, vector<1x512xf32>
    %13 = vector.broadcast %12 : vector<1x512xf32> to vector<2x512xf32>
    %14 = arith.addf %11, %13 : vector<2x512xf32>
    %cst_11 = arith.constant 0.000000e+00 : f32
    %15 = vector.broadcast %cst_11 : f32 to vector<2x512xf32>
    %16 = arith.maximumf %14, %15 : vector<2x512xf32>
    %17 = arith.truncf %16 : vector<2x512xf32> to vector<2x512xbf16>
    %c0_12 = arith.constant 0 : index
    %c0_13 = arith.constant 0 : index
    %18 = vector.load %arg6[%c0_12, %c0_13] : memref<512x154xbf16, #tpu.memory_space<vmem>>, vector<512x154xbf16>
    %cst_14 = arith.constant dense<0.000000e+00> : vector<2x154xf32>
    %19 = tpu.matmul %17, %18, %cst_14 {dimension_numbers = #tpu.dot_dimension_numbers<[1], [0], [0], [1], [0, 0, 1, 1], [], []>} : vector<2x512xbf16>, vector<512x154xbf16>, vector<2x154xf32> -> vector<2x154xf32>
    %c0_15 = arith.constant 0 : index
    %c0_16 = arith.constant 0 : index
    %20 = vector.load %arg7[%c0_15, %c0_16] : memref<1x154xf32, #tpu.memory_space<vmem>>, vector<1x154xf32>
    %21 = vector.broadcast %20 : vector<1x154xf32> to vector<2x154xf32>
    %22 = arith.addf %19, %21 : vector<2x154xf32>
    %c0_17 = arith.constant 0 : index
    %c0_18 = arith.constant 0 : index
    %23 = vector.load %arg10[%c0_17, %c0_18] : memref<2x154xf32, #tpu.memory_space<vmem>>, vector<2x154xf32>
    tpu.vector_store %arg10[%c0_17, %c0_18], %22 {strides = array<i32>} : memref<2x154xf32, #tpu.memory_space<vmem>>, vector<2x154xf32>,
    %c0_19 = arith.constant 0 : index
    %c0_20 = arith.constant 0 : index
    %24 = vector.load %arg10[%c0_19, %c0_20] : memref<2x154xf32, #tpu.memory_space<vmem>>, vector<2x154xf32>
    %25 = vector.extract_strided_slice %24 {offsets = [0, 0], sizes = [2, 24], strides = [1, 1]} : vector<2x154xf32> to vector<2x24xf32>
    %26 = vector.extract_strided_slice %24 {offsets = [0, 24], sizes = [2, 24], strides = [1, 1]} : vector<2x154xf32> to vector<2x24xf32>
    %27 = vector.extract_strided_slice %24 {offsets = [0, 48], sizes = [2, 24], strides = [1, 1]} : vector<2x154xf32> to vector<2x24xf32>
    %28 = vector.extract_strided_slice %24 {offsets = [0, 72], sizes = [2, 24], strides = [1, 1]} : vector<2x154xf32> to vector<2x24xf32>
    %29 = vector.extract_strided_slice %24 {offsets = [0, 96], sizes = [2, 24], strides = [1, 1]} : vector<2x154xf32> to vector<2x24xf32>
    %30 = vector.extract_strided_slice %24 {offsets = [0, 120], sizes = [2, 24], strides = [1, 1]} : vector<2x154xf32> to vector<2x24xf32>
    %31 = vector.extract_strided_slice %24 {offsets = [0, 144], sizes = [2, 10], strides = [1, 1]} : vector<2x154xf32> to vector<2x10xf32>
    %32 = arith.mulf %25, %25 : vector<2x24xf32>
    %33 = arith.mulf %27, %27 : vector<2x24xf32>
    %34 = arith.addf %32, %33 : vector<2x24xf32>
    %35 = arith.mulf %29, %29 : vector<2x24xf32>
    %36 = arith.addf %34, %35 : vector<2x24xf32>
    %37 = math.rsqrt %36 : vector<2x24xf32>
    %cst_21 = arith.constant 9.99999995E+11 : f32
    %38 = vector.broadcast %cst_21 : f32 to vector<2x24xf32>
    %39 = arith.minimumf %37, %38 : vector<2x24xf32>
    %40 = arith.mulf %25, %39 : vector<2x24xf32>
    %41 = arith.mulf %27, %39 : vector<2x24xf32>
    %42 = arith.mulf %29, %39 : vector<2x24xf32>
    %43 = arith.mulf %40, %26 : vector<2x24xf32>
    %44 = arith.mulf %41, %28 : vector<2x24xf32>
    %45 = arith.addf %43, %44 : vector<2x24xf32>
    %46 = arith.mulf %42, %30 : vector<2x24xf32>
    %47 = arith.addf %45, %46 : vector<2x24xf32>
    %48 = arith.mulf %47, %40 : vector<2x24xf32>
    %49 = arith.subf %26, %48 : vector<2x24xf32>
    %50 = arith.mulf %47, %41 : vector<2x24xf32>
    %51 = arith.subf %28, %50 : vector<2x24xf32>
    %52 = arith.mulf %47, %42 : vector<2x24xf32>
    %53 = arith.subf %30, %52 : vector<2x24xf32>
    %54 = arith.mulf %49, %49 : vector<2x24xf32>
    %55 = arith.mulf %51, %51 : vector<2x24xf32>
    %56 = arith.addf %54, %55 : vector<2x24xf32>
    %57 = arith.mulf %53, %53 : vector<2x24xf32>
    %58 = arith.addf %56, %57 : vector<2x24xf32>
    %59 = math.rsqrt %58 : vector<2x24xf32>
    %cst_22 = arith.constant 9.99999995E+11 : f32
    %60 = vector.broadcast %cst_22 : f32 to vector<2x24xf32>
    %61 = arith.minimumf %59, %60 : vector<2x24xf32>
    %62 = arith.mulf %49, %61 : vector<2x24xf32>
    %63 = arith.mulf %51, %61 : vector<2x24xf32>
    %64 = arith.mulf %53, %61 : vector<2x24xf32>
    %65 = arith.mulf %41, %64 : vector<2x24xf32>
    %66 = arith.mulf %42, %63 : vector<2x24xf32>
    %67 = arith.subf %65, %66 : vector<2x24xf32>
    %68 = arith.mulf %42, %62 : vector<2x24xf32>
    %69 = arith.mulf %40, %64 : vector<2x24xf32>
    %70 = arith.subf %68, %69 : vector<2x24xf32>
    %71 = arith.mulf %40, %63 : vector<2x24xf32>
    %72 = arith.mulf %41, %62 : vector<2x24xf32>
    %73 = arith.subf %71, %72 : vector<2x24xf32>
    %cst_23 = arith.constant 9.99999997E-7 : f32
    %74 = vector.broadcast %cst_23 : f32 to vector<2x24xf32>
    %75 = arith.cmpf olt, %73, %74 : vector<2x24xf32>
    %76 = arith.cmpf ogt, %40, %63 : vector<2x24xf32>
    %cst_24 = arith.constant 0.000000e+00 : f32
    %77 = vector.broadcast %cst_24 : f32 to vector<2x24xf32>
    %78 = arith.subf %77, %63 : vector<2x24xf32>
    %79 = arith.cmpf olt, %40, %78 : vector<2x24xf32>
    %cst_25 = arith.constant 1.000000e+00 : f32
    %80 = vector.broadcast %cst_25 : f32 to vector<2x24xf32>
    %81 = arith.addf %80, %40 : vector<2x24xf32>
    %82 = arith.subf %81, %63 : vector<2x24xf32>
    %83 = arith.subf %82, %73 : vector<2x24xf32>
    %cst_26 = arith.constant 1.000000e+00 : f32
    %84 = vector.broadcast %cst_26 : f32 to vector<2x24xf32>
    %85 = arith.subf %84, %40 : vector<2x24xf32>
    %86 = arith.addf %85, %63 : vector<2x24xf32>
    %87 = arith.subf %86, %73 : vector<2x24xf32>
    %cst_27 = arith.constant 1.000000e+00 : f32
    %88 = vector.broadcast %cst_27 : f32 to vector<2x24xf32>
    %89 = arith.subf %88, %40 : vector<2x24xf32>
    %90 = arith.subf %89, %63 : vector<2x24xf32>
    %91 = arith.addf %90, %73 : vector<2x24xf32>
    %cst_28 = arith.constant 1.000000e+00 : f32
    %92 = vector.broadcast %cst_28 : f32 to vector<2x24xf32>
    %93 = arith.addf %92, %40 : vector<2x24xf32>
    %94 = arith.addf %93, %63 : vector<2x24xf32>
    %95 = arith.addf %94, %73 : vector<2x24xf32>
    %96 = arith.subf %64, %70 : vector<2x24xf32>
    %97 = arith.addf %41, %62 : vector<2x24xf32>
    %98 = arith.addf %67, %42 : vector<2x24xf32>
    %99 = arith.subf %67, %42 : vector<2x24xf32>
    %100 = arith.addf %41, %62 : vector<2x24xf32>
    %101 = arith.addf %64, %70 : vector<2x24xf32>
    %102 = arith.subf %41, %62 : vector<2x24xf32>
    %103 = arith.addf %67, %42 : vector<2x24xf32>
    %104 = arith.addf %64, %70 : vector<2x24xf32>
    %105 = arith.subf %64, %70 : vector<2x24xf32>
    %106 = arith.subf %67, %42 : vector<2x24xf32>
    %107 = arith.subf %41, %62 : vector<2x24xf32>
    %108 = arith.andi %75, %76 : vector<2x24xi1>
    %109 = arith.extui %108 : vector<2x24xi1> to vector<2x24xi32>
    %110 = arith.sitofp %109 : vector<2x24xi32> to vector<2x24xf32>
    %cst_29 = arith.constant dense<true> : vector<2x24xi1>
    %111 = arith.xori %76, %cst_29 : vector<2x24xi1>
    %112 = arith.andi %75, %111 : vector<2x24xi1>
    %113 = arith.extui %112 : vector<2x24xi1> to vector<2x24xi32>
    %114 = arith.sitofp %113 : vector<2x24xi32> to vector<2x24xf32>
    %cst_30 = arith.constant dense<true> : vector<2x24xi1>
    %115 = arith.xori %75, %cst_30 : vector<2x24xi1>
    %116 = arith.andi %115, %79 : vector<2x24xi1>
    %117 = arith.extui %116 : vector<2x24xi1> to vector<2x24xi32>
    %118 = arith.sitofp %117 : vector<2x24xi32> to vector<2x24xf32>
    %cst_31 = arith.constant dense<true> : vector<2x24xi1>
    %119 = arith.xori %75, %cst_31 : vector<2x24xi1>
    %cst_32 = arith.constant dense<true> : vector<2x24xi1>
    %120 = arith.xori %79, %cst_32 : vector<2x24xi1>
    %121 = arith.andi %119, %120 : vector<2x24xi1>
    %122 = arith.extui %121 : vector<2x24xi1> to vector<2x24xi32>
    %123 = arith.sitofp %122 : vector<2x24xi32> to vector<2x24xf32>
    %124 = arith.mulf %83, %110 : vector<2x24xf32>
    %125 = arith.mulf %87, %114 : vector<2x24xf32>
    %126 = arith.addf %124, %125 : vector<2x24xf32>
    %127 = arith.mulf %91, %118 : vector<2x24xf32>
    %128 = arith.addf %126, %127 : vector<2x24xf32>
    %129 = arith.mulf %95, %123 : vector<2x24xf32>
    %130 = arith.addf %128, %129 : vector<2x24xf32>
    %131 = math.rsqrt %130 : vector<2x24xf32>
    %cst_33 = arith.constant 5.000000e-01 : f32
    %132 = vector.broadcast %cst_33 : f32 to vector<2x24xf32>
    %133 = arith.mulf %132, %131 : vector<2x24xf32>
    %134 = arith.mulf %96, %110 : vector<2x24xf32>
    %135 = arith.mulf %99, %114 : vector<2x24xf32>
    %136 = arith.addf %134, %135 : vector<2x24xf32>
    %137 = arith.mulf %102, %118 : vector<2x24xf32>
    %138 = arith.addf %136, %137 : vector<2x24xf32>
    %139 = arith.mulf %95, %123 : vector<2x24xf32>
    %140 = arith.addf %138, %139 : vector<2x24xf32>
    %141 = arith.mulf %140, %133 : vector<2x24xf32>
    %142 = arith.mulf %83, %110 : vector<2x24xf32>
    %143 = arith.mulf %100, %114 : vector<2x24xf32>
    %144 = arith.addf %142, %143 : vector<2x24xf32>
    %145 = arith.mulf %103, %118 : vector<2x24xf32>
    %146 = arith.addf %144, %145 : vector<2x24xf32>
    %147 = arith.mulf %105, %123 : vector<2x24xf32>
    %148 = arith.addf %146, %147 : vector<2x24xf32>
    %149 = arith.mulf %148, %133 : vector<2x24xf32>
    %150 = arith.mulf %97, %110 : vector<2x24xf32>
    %151 = arith.mulf %87, %114 : vector<2x24xf32>
    %152 = arith.addf %150, %151 : vector<2x24xf32>
    %153 = arith.mulf %104, %118 : vector<2x24xf32>
    %154 = arith.addf %152, %153 : vector<2x24xf32>
    %155 = arith.mulf %106, %123 : vector<2x24xf32>
    %156 = arith.addf %154, %155 : vector<2x24xf32>
    %157 = arith.mulf %156, %133 : vector<2x24xf32>
    %158 = arith.mulf %98, %110 : vector<2x24xf32>
    %159 = arith.mulf %101, %114 : vector<2x24xf32>
    %160 = arith.addf %158, %159 : vector<2x24xf32>
    %161 = arith.mulf %91, %118 : vector<2x24xf32>
    %162 = arith.addf %160, %161 : vector<2x24xf32>
    %163 = arith.mulf %107, %123 : vector<2x24xf32>
    %164 = arith.addf %162, %163 : vector<2x24xf32>
    %165 = arith.mulf %164, %133 : vector<2x24xf32>
    %166 = arith.mulf %149, %149 : vector<2x24xf32>
    %167 = arith.mulf %157, %157 : vector<2x24xf32>
    %168 = arith.addf %166, %167 : vector<2x24xf32>
    %169 = arith.mulf %165, %165 : vector<2x24xf32>
    %170 = arith.addf %168, %169 : vector<2x24xf32>
    %171 = math.sqrt %170 : vector<2x24xf32>
    %cst_34 = arith.constant 0.000000e+00 : f32
    %172 = vector.broadcast %cst_34 : f32 to vector<2x24xf32>
    %173 = arith.cmpf olt, %141, %172 : vector<2x24xf32>
    %cst_35 = arith.constant -1.000000e+00 : f32
    %cst_36 = arith.constant 1.000000e+00 : f32
    %174 = vector.broadcast %cst_35 : f32 to vector<2x24xf32>
    %175 = vector.broadcast %cst_36 : f32 to vector<2x24xf32>
    %176 = arith.select %173, %174, %175 : vector<2x24xi1>, vector<2x24xf32>
    %177 = arith.mulf %176, %171 : vector<2x24xf32>
    %178 = arith.mulf %176, %141 : vector<2x24xf32>
    %179 = math.atan2 %177, %178 : vector<2x24xf32>
    %cst_37 = arith.constant 2.000000e+00 : f32
    %180 = vector.broadcast %cst_37 : f32 to vector<2x24xf32>
    %181 = arith.mulf %180, %179 : vector<2x24xf32>
    %cst_38 = arith.constant 0.000000e+00 : f32
    %182 = vector.broadcast %cst_38 : f32 to vector<2x24xf32>
    %183 = arith.cmpf ogt, %170, %182 : vector<2x24xf32>
    %184 = math.rsqrt %170 : vector<2x24xf32>
    %185 = arith.mulf %181, %184 : vector<2x24xf32>
    %cst_39 = arith.constant 2.000000e+00 : f32
    %186 = vector.broadcast %cst_39 : f32 to vector<2x24xf32>
    %187 = arith.select %183, %185, %186 : vector<2x24xi1>, vector<2x24xf32>
    %188 = arith.mulf %149, %187 : vector<2x24xf32>
    %189 = arith.mulf %157, %187 : vector<2x24xf32>
    %190 = arith.mulf %165, %187 : vector<2x24xf32>
    %c0_40 = arith.constant 0 : index
    %c0_41 = arith.constant 0 : index
    %191 = vector.load %arg8[%c0_40, %c0_41] : memref<82x128xf32, #tpu.memory_space<vmem>>, vector<24x128xf32>
    %cst_42 = arith.constant dense<0.000000e+00> : vector<2x128xf32>
    %192 = tpu.matmul %188, %191, %cst_42 {dimension_numbers = #tpu.dot_dimension_numbers<[1], [0], [0], [1], [0, 0, 1, 1], [], []>} : vector<2x24xf32>, vector<24x128xf32>, vector<2x128xf32> -> vector<2x128xf32>
    %c24 = arith.constant 24 : index
    %c0_43 = arith.constant 0 : index
    %193 = vector.load %arg8[%c24, %c0_43] : memref<82x128xf32, #tpu.memory_space<vmem>>, vector<24x128xf32>
    %cst_44 = arith.constant dense<0.000000e+00> : vector<2x128xf32>
    %194 = tpu.matmul %189, %193, %cst_44 {dimension_numbers = #tpu.dot_dimension_numbers<[1], [0], [0], [1], [0, 0, 1, 1], [], []>} : vector<2x24xf32>, vector<24x128xf32>, vector<2x128xf32> -> vector<2x128xf32>
    %195 = arith.addf %192, %194 : vector<2x128xf32>
    %c48 = arith.constant 48 : index
    %c0_45 = arith.constant 0 : index
    %196 = vector.load %arg8[%c48, %c0_45] : memref<82x128xf32, #tpu.memory_space<vmem>>, vector<24x128xf32>
    %cst_46 = arith.constant dense<0.000000e+00> : vector<2x128xf32>
    %197 = tpu.matmul %190, %196, %cst_46 {dimension_numbers = #tpu.dot_dimension_numbers<[1], [0], [0], [1], [0, 0, 1, 1], [], []>} : vector<2x24xf32>, vector<24x128xf32>, vector<2x128xf32> -> vector<2x128xf32>
    %198 = arith.addf %195, %197 : vector<2x128xf32>
    %c72 = arith.constant 72 : index
    %c0_47 = arith.constant 0 : index
    %199 = vector.load %arg8[%c72, %c0_47] : memref<82x128xf32, #tpu.memory_space<vmem>>, vector<10x128xf32>
    %cst_48 = arith.constant dense<0.000000e+00> : vector<2x128xf32>
    %200 = tpu.matmul %31, %199, %cst_48 {dimension_numbers = #tpu.dot_dimension_numbers<[1], [0], [0], [1], [0, 0, 1, 1], [], []>} : vector<2x10xf32>, vector<10x128xf32>, vector<2x128xf32> -> vector<2x128xf32>
    %201 = arith.addf %198, %200 : vector<2x128xf32>
    %c0_49 = arith.constant 0 : index
    %c0_50 = arith.constant 0 : index
    %202 = vector.load %arg9[%c0_49, %c0_50] : memref<2x128xf32, #tpu.memory_space<vmem>>, vector<2x128xf32>
    tpu.vector_store %arg9[%c0_49, %c0_50], %201 {strides = array<i32>} : memref<2x128xf32, #tpu.memory_space<vmem>>, vector<2x128xf32>,
    return
  }
  func.func @transform_0(%arg0: i32) -> (i32, i32) {
    %c0_i32 = arith.constant 0 : i32
    %c0_i32_0 = arith.constant 0 : i32
    return %arg0, %c0_i32 : i32, i32
  }
  func.func @transform_1(%arg0: i32) -> (i32, i32) {
    %c0_i32 = arith.constant 0 : i32
    %c0_i32_0 = arith.constant 0 : i32
    %c0_i32_1 = arith.constant 0 : i32
    return %c0_i32, %c0_i32_0 : i32, i32
  }
  func.func @transform_2(%arg0: i32) -> (i32, i32) {
    %c0_i32 = arith.constant 0 : i32
    %c0_i32_0 = arith.constant 0 : i32
    %c0_i32_1 = arith.constant 0 : i32
    return %c0_i32, %c0_i32_0 : i32, i32
  }
  func.func @transform_3(%arg0: i32) -> (i32, i32) {
    %c0_i32 = arith.constant 0 : i32
    %c0_i32_0 = arith.constant 0 : i32
    %c0_i32_1 = arith.constant 0 : i32
    return %c0_i32, %c0_i32_0 : i32, i32
  }
  func.func @transform_4(%arg0: i32) -> (i32, i32) {
    %c0_i32 = arith.constant 0 : i32
    %c0_i32_0 = arith.constant 0 : i32
    %c0_i32_1 = arith.constant 0 : i32
    return %c0_i32, %c0_i32_0 : i32, i32
  }
  func.func @transform_5(%arg0: i32) -> (i32, i32) {
    %c0_i32 = arith.constant 0 : i32
    %c0_i32_0 = arith.constant 0 : i32
    %c0_i32_1 = arith.constant 0 : i32
    return %c0_i32, %c0_i32_0 : i32, i32
  }
  func.func @transform_6(%arg0: i32) -> (i32, i32) {
    %c0_i32 = arith.constant 0 : i32
    %c0_i32_0 = arith.constant 0 : i32
    %c0_i32_1 = arith.constant 0 : i32
    return %c0_i32, %c0_i32_0 : i32, i32
  }
  func.func @transform_7(%arg0: i32) -> (i32, i32) {
    %c0_i32 = arith.constant 0 : i32
    %c0_i32_0 = arith.constant 0 : i32
    %c0_i32_1 = arith.constant 0 : i32
    return %c0_i32, %c0_i32_0 : i32, i32
  }
  func.func @transform_8(%arg0: i32) -> (i32, i32) {
    %c0_i32 = arith.constant 0 : i32
    %c0_i32_0 = arith.constant 0 : i32
    return %arg0, %c0_i32 : i32, i32
  }
}

module attributes {stable_mosaic.version = 11 : i64} {
  func.func @kernel(%arg0: i32, %arg1: memref<2x63xf32, #tpu.memory_space<vmem>>, %arg2: memref<63x1024xbf16, #tpu.memory_space<vmem>>, %arg3: memref<1x1024xf32, #tpu.memory_space<vmem>>, %arg4: memref<1024x512xbf16, #tpu.memory_space<vmem>>, %arg5: memref<1x512xf32, #tpu.memory_space<vmem>>, %arg6: memref<512x154xbf16, #tpu.memory_space<vmem>>, %arg7: memref<1x154xf32, #tpu.memory_space<vmem>>, %arg8: memref<82x128xf32, #tpu.memory_space<vmem>>, %arg9: memref<2x128xf32, #tpu.memory_space<vmem>>, %arg10: memref<2x154xf32, #tpu.memory_space<vmem>>) attributes {dimension_semantics = [#tpu.dimension_semantics<parallel>], iteration_bounds = array<i64: 1>, scalar_prefetch = 0 : i64, scratch_operands = 1 : i64, tpu.core_type = #tpu.core_type<tc>, window_params = [{transform_indices = @transform_0, window_bounds = array<i64: 2, 63>}, {pipeline_mode = #tpu.pipeline_mode<synchronous>, transform_indices = @transform_1, window_bounds = array<i64: 63, 1024>}, {pipeline_mode = #tpu.pipeline_mode<synchronous>, transform_indices = @transform_2, window_bounds = array<i64: 1, 1024>}, {pipeline_mode = #tpu.pipeline_mode<synchronous>, transform_indices = @transform_3, window_bounds = array<i64: 1024, 512>}, {pipeline_mode = #tpu.pipeline_mode<synchronous>, transform_indices = @transform_4, window_bounds = array<i64: 1, 512>}, {pipeline_mode = #tpu.pipeline_mode<synchronous>, transform_indices = @transform_5, window_bounds = array<i64: 512, 154>}, {pipeline_mode = #tpu.pipeline_mode<synchronous>, transform_indices = @transform_6, window_bounds = array<i64: 1, 154>}, {pipeline_mode = #tpu.pipeline_mode<synchronous>, transform_indices = @transform_7, window_bounds = array<i64: 82, 128>}, {transform_indices = @transform_8, window_bounds = array<i64: 2, 128>}]} {
    %c0 = arith.constant 0 : index
    %c0_0 = arith.constant 0 : index
    %0 = vector.load %arg1[%c0, %c0_0] : memref<2x63xf32, #tpu.memory_space<vmem>>, vector<2x63xf32>
    %1 = arith.truncf %0 : vector<2x63xf32> to vector<2x63xbf16>
    %c0_1 = arith.constant 0 : index
    %c0_2 = arith.constant 0 : index
    %2 = vector.load %arg2[%c0_1, %c0_2] : memref<63x1024xbf16, #tpu.memory_space<vmem>>, vector<63x1024xbf16>
    %cst = arith.constant dense<0.000000e+00> : vector<2x1024xf32>
    %3 = tpu.matmul %1, %2, %cst {dimension_numbers = #tpu.dot_dimension_numbers<[1], [0], [0], [1], [0, 0, 1, 1], [], []>} : vector<2x63xbf16>, vector<63x1024xbf16>, vector<2x1024xf32> -> vector<2x1024xf32>
    %c0_3 = arith.constant 0 : index
    %c0_4 = arith.constant 0 : index
    %4 = vector.load %arg3[%c0_3, %c0_4] : memref<1x1024xf32, #tpu.memory_space<vmem>>, vector<1x1024xf32>
    %5 = vector.broadcast %4 : vector<1x1024xf32> to vector<2x1024xf32>
    %6 = arith.addf %3, %5 : vector<2x1024xf32>
    %cst_5 = arith.constant 0.000000e+00 : f32
    %7 = vector.broadcast %cst_5 : f32 to vector<2x1024xf32>
    %8 = arith.maximumf %6, %7 : vector<2x1024xf32>
    %9 = arith.truncf %8 : vector<2x1024xf32> to vector<2x1024xbf16>
    %c0_6 = arith.constant 0 : index
    %c0_7 = arith.constant 0 : index
    %10 = vector.load %arg4[%c0_6, %c0_7] : memref<1024x512xbf16, #tpu.memory_space<vmem>>, vector<1024x512xbf16>
    %cst_8 = arith.constant dense<0.000000e+00> : vector<2x512xf32>
    %11 = tpu.matmul %9, %10, %cst_8 {dimension_numbers = #tpu.dot_dimension_numbers<[1], [0], [0], [1], [0, 0, 1, 1], [], []>} : vector<2x1024xbf16>, vector<1024x512xbf16>, vector<2x512xf32> -> vector<2x512xf32>
    %c0_9 = arith.constant 0 : index
    %c0_10 = arith.constant 0 : index
    %12 = vector.load %arg5[%c0_9, %c0_10] : memref<1x512xf32, #tpu.memory_space<vmem>>, vector<1x512xf32>
    %13 = vector.broadcast %12 : vector<1x512xf32> to vector<2x512xf32>
    %14 = arith.addf %11, %13 : vector<2x512xf32>
    %cst_11 = arith.constant 0.000000e+00 : f32
    %15 = vector.broadcast %cst_11 : f32 to vector<2x512xf32>
    %16 = arith.maximumf %14, %15 : vector<2x512xf32>
    %17 = arith.truncf %16 : vector<2x512xf32> to vector<2x512xbf16>
    %c0_12 = arith.constant 0 : index
    %c0_13 = arith.constant 0 : index
    %18 = vector.load %arg6[%c0_12, %c0_13] : memref<512x154xbf16, #tpu.memory_space<vmem>>, vector<512x154xbf16>
    %cst_14 = arith.constant dense<0.000000e+00> : vector<2x154xf32>
    %19 = tpu.matmul %17, %18, %cst_14 {dimension_numbers = #tpu.dot_dimension_numbers<[1], [0], [0], [1], [0, 0, 1, 1], [], []>} : vector<2x512xbf16>, vector<512x154xbf16>, vector<2x154xf32> -> vector<2x154xf32>
    %c0_15 = arith.constant 0 : index
    %c0_16 = arith.constant 0 : index
    %20 = vector.load %arg7[%c0_15, %c0_16] : memref<1x154xf32, #tpu.memory_space<vmem>>, vector<1x154xf32>
    %21 = vector.broadcast %20 : vector<1x154xf32> to vector<2x154xf32>
    %22 = arith.addf %19, %21 : vector<2x154xf32>
    %c0_17 = arith.constant 0 : index
    %c0_18 = arith.constant 0 : index
    %23 = vector.load %arg10[%c0_17, %c0_18] : memref<2x154xf32, #tpu.memory_space<vmem>>, vector<2x154xf32>
    tpu.vector_store %arg10[%c0_17, %c0_18], %22 {strides = array<i32>} : memref<2x154xf32, #tpu.memory_space<vmem>>, vector<2x154xf32>,
    %c0_19 = arith.constant 0 : index
    %c0_20 = arith.constant 0 : index
    %24 = vector.load %arg10[%c0_19, %c0_20] : memref<2x154xf32, #tpu.memory_space<vmem>>, vector<2x154xf32>
    %25 = vector.extract_strided_slice %24 {offsets = [0, 0], sizes = [2, 24], strides = [1, 1]} : vector<2x154xf32> to vector<2x24xf32>
    %26 = vector.extract_strided_slice %24 {offsets = [0, 24], sizes = [2, 24], strides = [1, 1]} : vector<2x154xf32> to vector<2x24xf32>
    %27 = vector.extract_strided_slice %24 {offsets = [0, 48], sizes = [2, 24], strides = [1, 1]} : vector<2x154xf32> to vector<2x24xf32>
    %28 = vector.extract_strided_slice %24 {offsets = [0, 72], sizes = [2, 24], strides = [1, 1]} : vector<2x154xf32> to vector<2x24xf32>
    %29 = vector.extract_strided_slice %24 {offsets = [0, 96], sizes = [2, 24], strides = [1, 1]} : vector<2x154xf32> to vector<2x24xf32>
    %30 = vector.extract_strided_slice %24 {offsets = [0, 120], sizes = [2, 24], strides = [1, 1]} : vector<2x154xf32> to vector<2x24xf32>
    %31 = vector.extract_strided_slice %24 {offsets = [0, 144], sizes = [2, 10], strides = [1, 1]} : vector<2x154xf32> to vector<2x10xf32>
    %32 = arith.mulf %25, %25 : vector<2x24xf32>
    %33 = arith.mulf %27, %27 : vector<2x24xf32>
    %34 = arith.addf %32, %33 : vector<2x24xf32>
    %35 = arith.mulf %29, %29 : vector<2x24xf32>
    %36 = arith.addf %34, %35 : vector<2x24xf32>
    %37 = math.rsqrt %36 : vector<2x24xf32>
    %cst_21 = arith.constant 9.99999995E+11 : f32
    %38 = vector.broadcast %cst_21 : f32 to vector<2x24xf32>
    %39 = arith.minimumf %37, %38 : vector<2x24xf32>
    %40 = arith.mulf %25, %39 : vector<2x24xf32>
    %41 = arith.mulf %27, %39 : vector<2x24xf32>
    %42 = arith.mulf %29, %39 : vector<2x24xf32>
    %43 = arith.mulf %40, %26 : vector<2x24xf32>
    %44 = arith.mulf %41, %28 : vector<2x24xf32>
    %45 = arith.addf %43, %44 : vector<2x24xf32>
    %46 = arith.mulf %42, %30 : vector<2x24xf32>
    %47 = arith.addf %45, %46 : vector<2x24xf32>
    %48 = arith.mulf %47, %40 : vector<2x24xf32>
    %49 = arith.subf %26, %48 : vector<2x24xf32>
    %50 = arith.mulf %47, %41 : vector<2x24xf32>
    %51 = arith.subf %28, %50 : vector<2x24xf32>
    %52 = arith.mulf %47, %42 : vector<2x24xf32>
    %53 = arith.subf %30, %52 : vector<2x24xf32>
    %54 = arith.mulf %49, %49 : vector<2x24xf32>
    %55 = arith.mulf %51, %51 : vector<2x24xf32>
    %56 = arith.addf %54, %55 : vector<2x24xf32>
    %57 = arith.mulf %53, %53 : vector<2x24xf32>
    %58 = arith.addf %56, %57 : vector<2x24xf32>
    %59 = math.rsqrt %58 : vector<2x24xf32>
    %cst_22 = arith.constant 9.99999995E+11 : f32
    %60 = vector.broadcast %cst_22 : f32 to vector<2x24xf32>
    %61 = arith.minimumf %59, %60 : vector<2x24xf32>
    %62 = arith.mulf %49, %61 : vector<2x24xf32>
    %63 = arith.mulf %51, %61 : vector<2x24xf32>
    %64 = arith.mulf %53, %61 : vector<2x24xf32>
    %65 = arith.mulf %41, %64 : vector<2x24xf32>
    %66 = arith.mulf %42, %63 : vector<2x24xf32>
    %67 = arith.subf %65, %66 : vector<2x24xf32>
    %68 = arith.mulf %42, %62 : vector<2x24xf32>
    %69 = arith.mulf %40, %64 : vector<2x24xf32>
    %70 = arith.subf %68, %69 : vector<2x24xf32>
    %71 = arith.mulf %40, %63 : vector<2x24xf32>
    %72 = arith.mulf %41, %62 : vector<2x24xf32>
    %73 = arith.subf %71, %72 : vector<2x24xf32>
    %cst_23 = arith.constant 9.99999997E-7 : f32
    %74 = vector.broadcast %cst_23 : f32 to vector<2x24xf32>
    %75 = arith.cmpf olt, %73, %74 : vector<2x24xf32>
    %76 = arith.cmpf ogt, %40, %63 : vector<2x24xf32>
    %cst_24 = arith.constant 0.000000e+00 : f32
    %77 = vector.broadcast %cst_24 : f32 to vector<2x24xf32>
    %78 = arith.subf %77, %63 : vector<2x24xf32>
    %79 = arith.cmpf olt, %40, %78 : vector<2x24xf32>
    %cst_25 = arith.constant 1.000000e+00 : f32
    %80 = vector.broadcast %cst_25 : f32 to vector<2x24xf32>
    %81 = arith.addf %80, %40 : vector<2x24xf32>
    %82 = arith.subf %81, %63 : vector<2x24xf32>
    %83 = arith.subf %82, %73 : vector<2x24xf32>
    %cst_26 = arith.constant 1.000000e+00 : f32
    %84 = vector.broadcast %cst_26 : f32 to vector<2x24xf32>
    %85 = arith.subf %84, %40 : vector<2x24xf32>
    %86 = arith.addf %85, %63 : vector<2x24xf32>
    %87 = arith.subf %86, %73 : vector<2x24xf32>
    %cst_27 = arith.constant 1.000000e+00 : f32
    %88 = vector.broadcast %cst_27 : f32 to vector<2x24xf32>
    %89 = arith.subf %88, %40 : vector<2x24xf32>
    %90 = arith.subf %89, %63 : vector<2x24xf32>
    %91 = arith.addf %90, %73 : vector<2x24xf32>
    %cst_28 = arith.constant 1.000000e+00 : f32
    %92 = vector.broadcast %cst_28 : f32 to vector<2x24xf32>
    %93 = arith.addf %92, %40 : vector<2x24xf32>
    %94 = arith.addf %93, %63 : vector<2x24xf32>
    %95 = arith.addf %94, %73 : vector<2x24xf32>
    %96 = arith.subf %64, %70 : vector<2x24xf32>
    %97 = arith.addf %41, %62 : vector<2x24xf32>
    %98 = arith.addf %67, %42 : vector<2x24xf32>
    %99 = arith.subf %67, %42 : vector<2x24xf32>
    %100 = arith.addf %41, %62 : vector<2x24xf32>
    %101 = arith.addf %64, %70 : vector<2x24xf32>
    %102 = arith.subf %41, %62 : vector<2x24xf32>
    %103 = arith.addf %67, %42 : vector<2x24xf32>
    %104 = arith.addf %64, %70 : vector<2x24xf32>
    %105 = arith.subf %64, %70 : vector<2x24xf32>
    %106 = arith.subf %67, %42 : vector<2x24xf32>
    %107 = arith.subf %41, %62 : vector<2x24xf32>
    %108 = arith.andi %75, %76 : vector<2x24xi1>
    %109 = arith.extui %108 : vector<2x24xi1> to vector<2x24xi32>
    %110 = arith.sitofp %109 : vector<2x24xi32> to vector<2x24xf32>
    %cst_29 = arith.constant dense<true> : vector<2x24xi1>
    %111 = arith.xori %76, %cst_29 : vector<2x24xi1>
    %112 = arith.andi %75, %111 : vector<2x24xi1>
    %113 = arith.extui %112 : vector<2x24xi1> to vector<2x24xi32>
    %114 = arith.sitofp %113 : vector<2x24xi32> to vector<2x24xf32>
    %cst_30 = arith.constant dense<true> : vector<2x24xi1>
    %115 = arith.xori %75, %cst_30 : vector<2x24xi1>
    %116 = arith.andi %115, %79 : vector<2x24xi1>
    %117 = arith.extui %116 : vector<2x24xi1> to vector<2x24xi32>
    %118 = arith.sitofp %117 : vector<2x24xi32> to vector<2x24xf32>
    %cst_31 = arith.constant dense<true> : vector<2x24xi1>
    %119 = arith.xori %75, %cst_31 : vector<2x24xi1>
    %cst_32 = arith.constant dense<true> : vector<2x24xi1>
    %120 = arith.xori %79, %cst_32 : vector<2x24xi1>
    %121 = arith.andi %119, %120 : vector<2x24xi1>
    %122 = arith.extui %121 : vector<2x24xi1> to vector<2x24xi32>
    %123 = arith.sitofp %122 : vector<2x24xi32> to vector<2x24xf32>
    %124 = arith.mulf %83, %110 : vector<2x24xf32>
    %125 = arith.mulf %87, %114 : vector<2x24xf32>
    %126 = arith.addf %124, %125 : vector<2x24xf32>
    %127 = arith.mulf %91, %118 : vector<2x24xf32>
    %128 = arith.addf %126, %127 : vector<2x24xf32>
    %129 = arith.mulf %95, %123 : vector<2x24xf32>
    %130 = arith.addf %128, %129 : vector<2x24xf32>
    %131 = math.rsqrt %130 : vector<2x24xf32>
    %cst_33 = arith.constant 5.000000e-01 : f32
    %132 = vector.broadcast %cst_33 : f32 to vector<2x24xf32>
    %133 = arith.mulf %132, %131 : vector<2x24xf32>
    %134 = arith.mulf %96, %110 : vector<2x24xf32>
    %135 = arith.mulf %99, %114 : vector<2x24xf32>
    %136 = arith.addf %134, %135 : vector<2x24xf32>
    %137 = arith.mulf %102, %118 : vector<2x24xf32>
    %138 = arith.addf %136, %137 : vector<2x24xf32>
    %139 = arith.mulf %95, %123 : vector<2x24xf32>
    %140 = arith.addf %138, %139 : vector<2x24xf32>
    %141 = arith.mulf %140, %133 : vector<2x24xf32>
    %142 = arith.mulf %83, %110 : vector<2x24xf32>
    %143 = arith.mulf %100, %114 : vector<2x24xf32>
    %144 = arith.addf %142, %143 : vector<2x24xf32>
    %145 = arith.mulf %103, %118 : vector<2x24xf32>
    %146 = arith.addf %144, %145 : vector<2x24xf32>
    %147 = arith.mulf %105, %123 : vector<2x24xf32>
    %148 = arith.addf %146, %147 : vector<2x24xf32>
    %149 = arith.mulf %148, %133 : vector<2x24xf32>
    %150 = arith.mulf %97, %110 : vector<2x24xf32>
    %151 = arith.mulf %87, %114 : vector<2x24xf32>
    %152 = arith.addf %150, %151 : vector<2x24xf32>
    %153 = arith.mulf %104, %118 : vector<2x24xf32>
    %154 = arith.addf %152, %153 : vector<2x24xf32>
    %155 = arith.mulf %106, %123 : vector<2x24xf32>
    %156 = arith.addf %154, %155 : vector<2x24xf32>
    %157 = arith.mulf %156, %133 : vector<2x24xf32>
    %158 = arith.mulf %98, %110 : vector<2x24xf32>
    %159 = arith.mulf %101, %114 : vector<2x24xf32>
    %160 = arith.addf %158, %159 : vector<2x24xf32>
    %161 = arith.mulf %91, %118 : vector<2x24xf32>
    %162 = arith.addf %160, %161 : vector<2x24xf32>
    %163 = arith.mulf %107, %123 : vector<2x24xf32>
    %164 = arith.addf %162, %163 : vector<2x24xf32>
    %165 = arith.mulf %164, %133 : vector<2x24xf32>
    %166 = arith.mulf %149, %149 : vector<2x24xf32>
    %167 = arith.mulf %157, %157 : vector<2x24xf32>
    %168 = arith.addf %166, %167 : vector<2x24xf32>
    %169 = arith.mulf %165, %165 : vector<2x24xf32>
    %170 = arith.addf %168, %169 : vector<2x24xf32>
    %171 = math.sqrt %170 : vector<2x24xf32>
    %cst_34 = arith.constant 0.000000e+00 : f32
    %172 = vector.broadcast %cst_34 : f32 to vector<2x24xf32>
    %173 = arith.cmpf olt, %141, %172 : vector<2x24xf32>
    %cst_35 = arith.constant -1.000000e+00 : f32
    %cst_36 = arith.constant 1.000000e+00 : f32
    %174 = vector.broadcast %cst_35 : f32 to vector<2x24xf32>
    %175 = vector.broadcast %cst_36 : f32 to vector<2x24xf32>
    %176 = arith.select %173, %174, %175 : vector<2x24xi1>, vector<2x24xf32>
    %177 = arith.mulf %176, %171 : vector<2x24xf32>
    %178 = arith.mulf %176, %141 : vector<2x24xf32>
    %179 = math.atan2 %177, %178 : vector<2x24xf32>
    %cst_37 = arith.constant 2.000000e+00 : f32
    %180 = vector.broadcast %cst_37 : f32 to vector<2x24xf32>
    %181 = arith.mulf %180, %179 : vector<2x24xf32>
    %cst_38 = arith.constant 0.000000e+00 : f32
    %182 = vector.broadcast %cst_38 : f32 to vector<2x24xf32>
    %183 = arith.cmpf ogt, %170, %182 : vector<2x24xf32>
    %184 = math.rsqrt %170 : vector<2x24xf32>
    %185 = arith.mulf %181, %184 : vector<2x24xf32>
    %cst_39 = arith.constant 2.000000e+00 : f32
    %186 = vector.broadcast %cst_39 : f32 to vector<2x24xf32>
    %187 = arith.select %183, %185, %186 : vector<2x24xi1>, vector<2x24xf32>
    %188 = arith.mulf %149, %187 : vector<2x24xf32>
    %189 = arith.mulf %157, %187 : vector<2x24xf32>
    %190 = arith.mulf %165, %187 : vector<2x24xf32>
    %c0_40 = arith.constant 0 : index
    %c0_41 = arith.constant 0 : index
    %191 = vector.load %arg8[%c0_40, %c0_41] : memref<82x128xf32, #tpu.memory_space<vmem>>, vector<24x128xf32>
    %cst_42 = arith.constant dense<0.000000e+00> : vector<2x128xf32>
    %192 = tpu.matmul %188, %191, %cst_42 {dimension_numbers = #tpu.dot_dimension_numbers<[1], [0], [0], [1], [0, 0, 1, 1], [], []>} : vector<2x24xf32>, vector<24x128xf32>, vector<2x128xf32> -> vector<2x128xf32>
    %c24 = arith.constant 24 : index
    %c0_43 = arith.constant 0 : index
    %193 = vector.load %arg8[%c24, %c0_43] : memref<82x128xf32, #tpu.memory_space<vmem>>, vector<24x128xf32>
    %cst_44 = arith.constant dense<0.000000e+00> : vector<2x128xf32>
    %194 = tpu.matmul %189, %193, %cst_44 {dimension_numbers = #tpu.dot_dimension_numbers<[1], [0], [0], [1], [0, 0, 1, 1], [], []>} : vector<2x24xf32>, vector<24x128xf32>, vector<2x128xf32> -> vector<2x128xf32>
    %195 = arith.addf %192, %194 : vector<2x128xf32>
    %c48 = arith.constant 48 : index
    %c0_45 = arith.constant 0 : index
    %196 = vector.load %arg8[%c48, %c0_45] : memref<82x128xf32, #tpu.memory_space<vmem>>, vector<24x128xf32>
    %cst_46 = arith.constant dense<0.000000e+00> : vector<2x128xf32>
    %197 = tpu.matmul %190, %196, %cst_46 {dimension_numbers = #tpu.dot_dimension_numbers<[1], [0], [0], [1], [0, 0, 1, 1], [], []>} : vector<2x24xf32>, vector<24x128xf32>, vector<2x128xf32> -> vector<2x128xf32>
    %198 = arith.addf %195, %197 : vector<2x128xf32>
    %c72 = arith.constant 72 : index
    %c0_47 = arith.constant 0 : index
    %199 = vector.load %arg8[%c72, %c0_47] : memref<82x128xf32, #tpu.memory_space<vmem>>, vector<10x128xf32>
    %cst_48 = arith.constant dense<0.000000e+00> : vector<2x128xf32>
    %200 = tpu.matmul %31, %199, %cst_48 {dimension_numbers = #tpu.dot_dimension_numbers<[1], [0], [0], [1], [0, 0, 1, 1], [], []>} : vector<2x10xf32>, vector<10x128xf32>, vector<2x128xf32> -> vector<2x128xf32>
    %201 = arith.addf %198, %200 : vector<2x128xf32>
    %c0_49 = arith.constant 0 : index
    %c0_50 = arith.constant 0 : index
    %202 = vector.load %arg9[%c0_49, %c0_50] : memref<2x128xf32, #tpu.memory_space<vmem>>, vector<2x128xf32>
    tpu.vector_store %arg9[%c0_49, %c0_50], %201 {strides = array<i32>} : memref<2x128xf32, #tpu.memory_space<vmem>>, vector<2x128xf32>,
    return
  }
  func.func @transform_0(%arg0: i32) -> (i32, i32) {
    %c0_i32 = arith.constant 0 : i32
    %c0_i32_0 = arith.constant 0 : i32
    return %arg0, %c0_i32 : i32, i32
  }
  func.func @transform_1(%arg0: i32) -> (i32, i32) {
    %c0_i32 = arith.constant 0 : i32
    %c0_i32_0 = arith.constant 0 : i32
    %c0_i32_1 = arith.constant 0 : i32
    return %c0_i32, %c0_i32_0 : i32, i32
  }
  func.func @transform_2(%arg0: i32) -> (i32, i32) {
    %c0_i32 = arith.constant 0 : i32
    %c0_i32_0 = arith.constant 0 : i32
    %c0_i32_1 = arith.constant 0 : i32
    return %c0_i32, %c0_i32_0 : i32, i32
  }
  func.func @transform_3(%arg0: i32) -> (i32, i32) {
    %c0_i32 = arith.constant 0 : i32
    %c0_i32_0 = arith.constant 0 : i32
    %c0_i32_1 = arith.constant 0 : i32
    return %c0_i32, %c0_i32_0 : i32, i32
  }
  func.func @transform_4(%arg0: i32) -> (i32, i32) {
    %c0_i32 = arith.constant 0 : i32
    %c0_i32_0 = arith.constant 0 : i32
    %c0_i32_1 = arith.constant 0 : i32
    return %c0_i32, %c0_i32_0 : i32, i32
  }
  func.func @transform_5(%arg0: i32) -> (i32, i32) {
    %c0_i32 = arith.constant 0 : i32
    %c0_i32_0 = arith.constant 0 : i32
    %c0_i32_1 = arith.constant 0 : i32
    return %c0_i32, %c0_i32_0 : i32, i32
  }
  func.func @transform_6(%arg0: i32) -> (i32, i32) {
    %c0_i32 = arith.constant 0 : i32
    %c0_i32_0 = arith.constant 0 : i32
    %c0_i32_1 = arith.constant 0 : i32
    return %c0_i32, %c0_i32_0 : i32, i32
  }
  func.func @transform_7(%arg0: i32) -> (i32, i32) {
    %c0_i32 = arith.constant 0 : i32
    %c0_i32_0 = arith.constant 0 : i32
    %c0_i32_1 = arith.constant 0 : i32
    return %c0_i32, %c0_i32_0 : i32, i32
  }
  func.func @transform_8(%arg0: i32) -> (i32, i32) {
    %c0_i32 = arith.constant 0 : i32
    %c0_i32_0 = arith.constant 0 : i32
    return %arg0, %c0_i32 : i32, i32
  }
}

</mosaic_0001>

<bundles_post_ra>
// kernel: _lambda_.1
= control target key start
LH: loop header
LB: loop body
LE: loop exit
PB: predicated region body
PF: predicated region fallthrough
CT: control target
= control target key end

     0   :  { %13 = vsyncpa [#allocation4], 0  ;;  %s5115_s0 = inlined_call_operand.vmem [shape: f32[2,63], index: 0, kind: input, shape index: {}]   ;;  %s5116_s1 = inlined_call_operand.hbm [shape: bf16[63,1024], index: 1, kind: input, shape index: {}]   ;;  %s5117_s2 = inlined_call_operand.vmem [shape: f32[1,1024], index: 2, kind: input, shape index: {}]   ;;  %s5118_s3 = inlined_call_operand.hbm [shape: bf16[1024,512], index: 3, kind: input, shape index: {}]   ;;  %s5119_s4 = inlined_call_operand.vmem [shape: f32[1,512], index: 4, kind: input, shape index: {}]   ;;  %s5120_s5 = inlined_call_operand.hbm [shape: bf16[512,154], index: 5, kind: input, shape index: {}]   ;;  %s5121_s6 = inlined_call_operand.vmem [shape: f32[1,154], index: 6, kind: input, shape index: {}]   ;;  %s5122_s7 = inlined_call_operand.vmem [shape: f32[82,128], index: 7, kind: input, shape index: {}]   ;;  %s5123_s8 = inlined_call_operand.vmem [shape: f32[2,128], index: 8, kind: output, shape index: {}]  }
   0x1   :  { %14 = vsyncpa [#allocation6], 0  ;;  %s4682_s27 = smov [#allocation5]  }
   0x2   :  { %s36_s28 = sshll.u32 %s4682_s27, 4  ;;  %s37_s28 = int_to_ptr.vmem [resolvable:$true] %s36_s28 }
   0x3   :  { %s4626_s29 = scalar_lea.vmem %s37_s28, 32768  ;;  %p4631_p1 = scmp.lt.s32.totalorder %s37_s28, %s37_s28 }
   0x4   :  { %p4627_p0 = scmp.ne.s32.totalorder %s37_s28, %s4626_s29  ;;  %p4632_p2 = scmp.lt.s32.totalorder %s4626_s29, %s4626_s29 }
   0x6   :  { %p4633_p3 = por %p4632_p2, %p4631_p1 }
   0x8   :  { %p4634_p4 = pnand %p4633_p3, %p4627_p0 }
   0xa   :  { %4637 = shalt.err (!%p4634_p4)
}
   0xb   :  { %s4683_s30 = smov 256   ;;  %s4684_s9 = smov 16  }
   0xc   :  { %42 = dma.hbm_to_vmem [thread:$0]  %s5118_s3, 32768, %s37_s28, [#allocation6], %s4683_s30, %s4683_s30, %s4684_s9  }
   0xd   :  { %s4685_s12 = smov [#allocation3]  }
   0xe   :  { %s22_s13 = sshll.u32 %s4685_s12, 4  ;;  %s23_s13 = int_to_ptr.vmem [resolvable:$true] %s22_s13 }
   0xf   :  { %s4646_s14 = scalar_lea.vmem %s23_s13, 4096  ;;  %p4651_p6 = scmp.lt.s32.totalorder %s23_s13, %s23_s13 }
  0x10   :  { %p4647_p5 = scmp.ne.s32.totalorder %s23_s13, %s4646_s14  ;;  %p4652_p7 = scmp.lt.s32.totalorder %s4646_s14, %s4646_s14 }
  0x12   :  { %p4653_p8 = por %p4652_p7, %p4651_p6 }
  0x14   :  { %p4654_p9 = pnand %p4653_p8, %p4647_p5 }
  0x16   :  { %4657 = shalt.err (!%p4654_p9)
}
  0x17   :  { %s4686_s15 = smov 512   ;;  %s4687_s16 = smov 32  }
  0x18   :  { %28 = dma.hbm_to_vmem [thread:$0]  %s5116_s1, 4096, %s23_s13, [#allocation4], %s4686_s15, %s4686_s15, %s4687_s16  }
  0x19   :  { %s4688_s19 = smov [#allocation7]  }
  0x1a   :  { %s50_s20 = sshll.u32 %s4688_s19, 4  ;;  %s51_s20 = int_to_ptr.vmem [resolvable:$true] %s50_s20 }
  0x1b   :  { %s4666_s3 = scalar_lea.vmem %s51_s20, 8192  ;;  %p4671_p11 = scmp.lt.s32.totalorder %s51_s20, %s51_s20 }
  0x1c   :  { %p4667_p10 = scmp.ne.s32.totalorder %s51_s20, %s4666_s3  ;;  %p4672_p12 = scmp.lt.s32.totalorder %s4666_s3, %s4666_s3 }
  0x1e   :  { %p4673_p13 = por %p4672_p12, %p4671_p11 }
  0x20   :  { %p4674_p0 = pnand %p4673_p13, %p4667_p10 }
  0x22   :  { %4677 = shalt.err (!%p4674_p0)
}
  0x23   :  { %s4689_s21 = smov 128   ;;  %s4690_s22 = smov 8  }
  0x24   :  { %56 = dma.hbm_to_vmem [thread:$0]  %s5120_s5, 8192, %s51_s20, [#allocation6], %s4689_s21, %s4689_s21, %s4690_s22  }
  0x25   :  { %4678 = dma.done.wait [#allocation4], 4096  }
  0x26   :  { %4679 = vsyncadd [#allocation4], 4294963200 }
  0x27   :  { %4680 = dma.done.wait [#allocation6], 40960  }
  0x28   :  { %4681 = vsyncadd [#allocation6], 4294926336  ;;  %vm303_vm0 = vcmask 1046528   ;;  %v4691_v0 = vmov 0   ;;  %vm304_vm1 = vcmask 1047552   ;;  %v4692_v1 = vmov 65535  }
  0x29   :  { %363 = vmatprep.mubr.bf16.mxu0 %v4691_v0  ;;  %404 = vmatprep.mubr.bf16.mxu1 %v4691_v0  ;;  %v305_v2 = vsel %vm303_vm0, 4294967295, %v4692_v1  ;;  %v97_v3 = vld [vmem:[#allocation3 + $0xc0] sm:$0xff]  ;;  %v98_v6 = vld [vmem:[#allocation3 + $0xc8] sm:$0xff]  ;;  %v99_v33 = vld [vmem:[#allocation3 + $0xd0] sm:$0xff]  ;;  %vm299_vm2 = vcmask 515072   ;;  %vm2894_vm3 = vcmask 1041408  }
  0x2a   :  { %v101_v4 = vld [vmem:[#allocation3 + $0xe0] sm:$0xff]  ;;  %v4766_v5 = vsel %vm304_vm1, %v305_v2, 0  ;;  %v102_v8 = vld [vmem:[#allocation3 + $0xe8] sm:$0xff]  ;;  %v103_v34 = vld [vmem:[#allocation3 + $0xf0] sm:$0xff]  ;;  %vm2895_vm4 = vcmask 207874   ;;  %s4695_s28 = smov 96  }
  0x2b   :  { %v3703_v7 = vcombine.high %v97_v3, %v101_v4  ;;  %v3702_v9 = vcombine.low %v97_v3, %v101_v4  ;;  %v89_v10 = vld [vmem:[#allocation3 + $0x80] sm:$0xff]  ;;  %v3705_v12 = vcombine.high %v98_v6, %v102_v8  ;;  %v3704_v13 = vcombine.low %v98_v6, %v102_v8  ;;  %v90_v14 = vld [vmem:[#allocation3 + $0x88] sm:$0xff]  ;;  %v100_v36 = vld [vmem:[#allocation3 + $0xd8] sm:$0xff]  ;;  %s4696_s29 = smov 48   ;;  %s4697_s30 = smov 104  }
  0x2c   :  { %v93_v11 = vld [vmem:[#allocation3 + $0xa0] sm:$0xff]  ;;  %v94_v15 = vld [vmem:[#allocation3 + $0xa8] sm:$0xff]  ;;  %v104_v37 = vld [vmem:[#allocation3 + $0xf8] sm:$0xff]  ;;  %v3707_v41 = vcombine.high %v99_v33, %v103_v34  ;;  %v3706_v46 = vcombine.low %v99_v33, %v103_v34  ;;  %vm2933_vm6 = vcmask 850944   ;;  %s4698_s9 = smov 120   ;;  %s4699_s10 = smov 72  }
  0x2d   :  { %v311_v16 = vand.u32 %v3703_v7, %v4766_v5  ;;  %v308_v17 = vand.u32 %v3702_v9, %v4766_v5  ;;  %v3695_v18 = vcombine.high %v89_v10, %v93_v11  ;;  %v317_v19 = vand.u32 %v3705_v12, %v4766_v5  ;;  %v81_v22 = vld [vmem:[#allocation3 + $0x40] sm:$0xff]  ;;  %v82_v24 = vld [vmem:[#allocation3 + $0x48] sm:$0xff]  ;;  %v71_v45 = vld [vmem:[%s5115_s0] sm:$0x3]  ;;  %s4700_s11 = smov 24   ;;  %s4702_s12 = smov 56  }
  0x2e   :  { %v314_v20 = vand.u32 %v3704_v13, %v4766_v5  ;;  %v3697_v21 = vcombine.high %v90_v14, %v94_v15  ;;  %v85_v23 = vld [vmem:[#allocation3 + $0x60] sm:$0xff]  ;;  %v86_v25 = vld [vmem:[#allocation3 + $0x68] sm:$0xff]  ;;  %v3694_v26 = vcombine.low %v89_v10, %v93_v11  ;;  %v3696_v27 = vcombine.low %v90_v14, %v94_v15  ;;  %v91_v50 = vld [vmem:[#allocation3 + $0x90] sm:$0xff]  ;;  %s4707_s25 = smov 112  }
  0x2f   :  { %339 = vmatprep.subr.bf16.mxu0 %v311_v16  ;;  %380 = vmatprep.subr.bf16.mxu1 %v317_v19  ;;  %v3687_v28 = vcombine.high %v81_v22, %v85_v23  ;;  %v73_v29 = vld [vmem:[#allocation3] sm:$0xff]  ;;  %v3689_v31 = vcombine.high %v82_v24, %v86_v25  ;;  %v74_v32 = vld [vmem:[#allocation3 + $0x8] sm:$0xff]  ;;  %v3686_v38 = vcombine.low %v81_v22, %v85_v23  ;;  %v95_v52 = vld [vmem:[#allocation3 + $0xb0] sm:$0xff]  ;;  %vm2967_vm7 = vcmask 982016  }
  0x30   :  { %340 = vmatpush1.bf16.msra.mxu0 %v308_v17  ;;  %381 = vmatpush1.bf16.msra.mxu1 %v314_v20  ;;  %v77_v30 = vld [vmem:[#allocation3 + $0x20] sm:$0xff]  ;;  %v78_v35 = vld [vmem:[#allocation3 + $0x28] sm:$0xff]  ;;  %v3688_v39 = vcombine.low %v82_v24, %v86_v25  ;;  %v3709_v43 = vcombine.high %v100_v36, %v104_v37  ;;  %v323_v48 = vand.u32 %v3707_v41, %v4766_v5  ;;  %v92_v54 = vld [vmem:[#allocation3 + $0x98] sm:$0xff]  ;;  %vm2983_vm8 = vcmask 261120  }
  0x31   :  { %341 = vmatprep.subr.bf16.mxu0 %v3695_v18  ;;  %382 = vmatprep.subr.bf16.mxu1 %v3697_v21  ;;  %v3679_v40 = vcombine.high %v73_v29, %v77_v30  ;;  %v3681_v42 = vcombine.high %v74_v32, %v78_v35  ;;  %v3678_v44 = vcombine.low %v73_v29, %v77_v30  ;;  %v96_v55 = vld [vmem:[#allocation3 + $0xb8] sm:$0xff]  ;;  %v83_v59 = vld [vmem:[#allocation3 + $0x50] sm:$0xff]  ;;  %vm2896_vm5 = vmor %vm2895_vm4, %vm2894_vm3  ;;  %vm2998_vm9 = vcmask 785408  }
  0x32   :  { %v3680_v47 = vcombine.low %v74_v32, %v78_v35  ;;  %v3708_v49 = vcombine.low %v100_v36, %v104_v37  ;;  %v329_v51 = vand.u32 %v3709_v43, %v4766_v5  ;;  %v72_v53 = vpack.c.bf16 %v71_v45, %v71_v45  ;;  %v87_v61 = vld [vmem:[#allocation3 + $0x70] sm:$0xff]  ;;  %v84_v62 = vld [vmem:[#allocation3 + $0x58] sm:$0xff] }
  0x33   :  { %v320_v56 = vand.u32 %v3706_v46, %v4766_v5  ;;  %v3699_v58 = vcombine.high %v91_v50, %v95_v52  ;;  %v3701_v60 = vcombine.high %v92_v54, %v96_v55  ;;  %v88_v63 = vld [vmem:[#allocation3 + $0x78] sm:$0xff]  ;;  %v3698_v1 = vcombine.low %v91_v50, %v95_v52  ;;  %v75_v4 = vld [vmem:[#allocation3 + $0x10] sm:$0xff] }
  0x34   :  { %342 = vmatpush1.bf16.msra.mxu0 %v3694_v26  ;;  %383 = vmatpush1.bf16.msra.mxu1 %v3696_v27  ;;  %v326_v57 = vand.u32 %v3708_v49, %v4766_v5  ;;  %v3700_v2 = vcombine.low %v92_v54, %v96_v55  ;;  %v3691_v3 = vcombine.high %v83_v59, %v87_v61  ;;  %v79_v6 = vld [vmem:[#allocation3 + $0x30] sm:$0xff]  ;;  %v76_v7 = vld [vmem:[#allocation3 + $0x18] sm:$0xff]  ;;  %vm3028_vm10 = vcmask 64512  }
  0x35   :  { %343 = vmatprep.subr.bf16.mxu0 %v3687_v28  ;;  %384 = vmatprep.subr.bf16.mxu1 %v3689_v31  ;;  %v3693_v5 = vcombine.high %v84_v62, %v88_v63  ;;  %v80_v8 = vld [vmem:[#allocation3 + $0x38] sm:$0xff]  ;;  %v3690_v9 = vcombine.low %v83_v59, %v87_v61  ;;  %v3692_v10 = vcombine.low %v84_v62, %v88_v63  ;;  %v4130_v15 = vld [vmem:[#allocation5 + $0xe4] ss:$16 sps:$4 sm:$0xff]   ;;  %v4128_v17 = vld [vmem:[#allocation5 + $0xe0] ss:$16 sps:$4 sm:$0xff]   ;;  %vm4703_vm13 = vmmov 1  }
  0x36   :  { %v3683_v11 = vcombine.high %v75_v4, %v79_v6  ;;  %v3685_v12 = vcombine.high %v76_v7, %v80_v8  ;;  %v3682_v13 = vcombine.low %v75_v4, %v79_v6  ;;  %v3684_v14 = vcombine.low %v76_v7, %v80_v8  ;;  %v4133_v16 = vld [vmem:[#allocation5 + $0x2e4] ss:$16 sps:$4 sm:$0xff]   ;;  %v4131_v18 = vld [vmem:[#allocation5 + $0x2e0] ss:$16 sps:$4 sm:$0xff]  }
  0x37   :  { %v4139_v19 = vld [vmem:[#allocation5 + $0x2c4] ss:$16 sps:$4 sm:$0xff]   ;;  %v4134_v20 = vld [vmem:[#allocation5 + $0xc0] ss:$16 sps:$4 sm:$0xff]  }
  0x38   :  { %344 = vmatpush1.bf16.msra.mxu0 %v3686_v38  ;;  %385 = vmatpush1.bf16.msra.mxu1 %v3688_v39  ;;  %v4137_v21 = vld [vmem:[#allocation5 + $0x2c0] ss:$16 sps:$4 sm:$0xff]   ;;  %v4142_v22 = vld [vmem:[#allocation5 + $0xa4] ss:$16 sps:$4 sm:$0xff]  }
  0x39   :  { %345 = vmatprep.subr.bf16.mxu0 %v3679_v40  ;;  %386 = vmatprep.subr.bf16.mxu1 %v3681_v42  ;;  %v4145_v23 = vld [vmem:[#allocation5 + $0x2a4] ss:$16 sps:$4 sm:$0xff]   ;;  %v4140_v24 = vld [vmem:[#allocation5 + $0xa0] ss:$16 sps:$4 sm:$0xff]  }
  0x3a   :  { %v4143_v25 = vld [vmem:[#allocation5 + $0x2a0] ss:$16 sps:$4 sm:$0xff]   ;;  %v4148_v26 = vld [vmem:[#allocation5 + $0x84] ss:$16 sps:$4 sm:$0xff]  }
  0x3b   :  { %v4151_v27 = vld [vmem:[#allocation5 + $0x284] ss:$16 sps:$4 sm:$0xff]   ;;  %v4146_v28 = vld [vmem:[#allocation5 + $0x80] ss:$16 sps:$4 sm:$0xff]  }
  0x3c   :  { %346 = vmatpush1.bf16.msra.mxu0 %v3678_v44  ;;  %387 = vmatpush1.bf16.msra.mxu1 %v3680_v47  ;;  %v4149_v29 = vld [vmem:[#allocation5 + $0x280] ss:$16 sps:$4 sm:$0xff]   ;;  %v4154_v30 = vld [vmem:[#allocation5 + $0x64] ss:$16 sps:$4 sm:$0xff]  }
  0x3d   :  { %421 = vmatprep.subr.bf16.mxu0 %v323_v48  ;;  %462 = vmatprep.subr.bf16.mxu1 %v329_v51  ;;  %v4152_v31 = vld [vmem:[#allocation5 + $0x60] ss:$16 sps:$4 sm:$0xff]   ;;  %v4157_v32 = vld [vmem:[#allocation5 + $0x264] ss:$16 sps:$4 sm:$0xff]  }
  0x3e   :  { %v4155_v33 = vld [vmem:[#allocation5 + $0x260] ss:$16 sps:$4 sm:$0xff]   ;;  %v4160_v34 = vld [vmem:[#allocation5 + $0x44] ss:$16 sps:$4 sm:$0xff]  }
  0x3f   :  { %3710 = vmatmul.mubr.msk.bf16.vlgmr.msra.gmra.mxu0 %vm299_vm2, %v72_v53  ;;  %3711 = vmatmul.mubr.msk.bf16.vlgmr.msra.gmra.mxu1 %vm299_vm2, %v72_v53  ;;  %v4163_v35 = vld [vmem:[#allocation5 + $0x244] ss:$16 sps:$4 sm:$0xff]   ;;  %v4158_v36 = vld [vmem:[#allocation5 + $0x40] ss:$16 sps:$4 sm:$0xff]  }
  0x40   :  { %422 = vmatpush1.bf16.msra.mxu0 %v320_v56  ;;  %463 = vmatpush1.bf16.msra.mxu1 %v326_v57  ;;  %v4161_v37 = vld [vmem:[#allocation5 + $0x240] ss:$16 sps:$4 sm:$0xff]   ;;  %v4166_v38 = vld [vmem:[#allocation5 + $0x24] ss:$16 sps:$4 sm:$0xff]  }
  0x41   :  { %423 = vmatprep.subr.bf16.mxu0 %v3699_v58  ;;  %464 = vmatprep.subr.bf16.mxu1 %v3701_v60  ;;  %v4169_v39 = vld [vmem:[#allocation5 + $0x224] ss:$16 sps:$4 sm:$0xff]   ;;  %v4164_v40 = vld [vmem:[#allocation5 + $0x20] ss:$16 sps:$4 sm:$0xff]  }
  0x42   :  { %445 = vmatprep.mubr.bf16.mxu0 %v4691_v0  ;;  %486 = vmatprep.mubr.bf16.mxu1 %v4691_v0  ;;  %v4136_v0 = vld [vmem:[#allocation5 + $0xc4] ss:$16 sps:$4 sm:$0xff]   ;;  %v4167_v41 = vld [vmem:[#allocation5 + $0x220] ss:$16 sps:$4 sm:$0xff]  }
  0x43   :  { %v4172_v42 = vld [vmem:[#allocation5 + $0x4] ss:$16 sps:$4 sm:$0xff]   ;;  %v4170_v44 = vld [vmem:[#allocation5] ss:$16 sps:$4 sm:$0xff]  }
  0x44   :  { %424 = vmatpush1.bf16.msra.mxu0 %v3698_v1  ;;  %465 = vmatpush1.bf16.msra.mxu1 %v3700_v2  ;;  %v4175_v43 = vld [vmem:[#allocation5 + $0x204] ss:$16 sps:$4 sm:$0xff]   ;;  %v4173_v45 = vld [vmem:[#allocation5 + $0x200] ss:$16 sps:$4 sm:$0xff]  }
  0x45   :  { %425 = vmatprep.subr.bf16.mxu0 %v3691_v3  ;;  %466 = vmatprep.subr.bf16.mxu1 %v3693_v5  ;;  %v4178_v46 = vld [vmem:[#allocation5 + $0x1e4] ss:$16 sps:$4 sm:$0xff]   ;;  %v4176_v48 = vld [vmem:[#allocation5 + $0x1e0] ss:$16 sps:$4 sm:$0xff]  }
  0x46   :  { %v4181_v47 = vld [vmem:[#allocation5 + $0x3e4] ss:$16 sps:$4 sm:$0xff]   ;;  %v4179_v49 = vld [vmem:[#allocation5 + $0x3e0] ss:$16 sps:$4 sm:$0xff]  }
  0x47   :  { %v4184_v50 = vld [vmem:[#allocation5 + $0x1c4] ss:$16 sps:$4 sm:$0xff]   ;;  %v4182_v52 = vld [vmem:[#allocation5 + $0x1c0] ss:$16 sps:$4 sm:$0xff]  }
  0x48   :  { %426 = vmatpush1.bf16.msra.mxu0 %v3690_v9  ;;  %467 = vmatpush1.bf16.msra.mxu1 %v3692_v10  ;;  %v4187_v51 = vld [vmem:[#allocation5 + $0x3c4] ss:$16 sps:$4 sm:$0xff]   ;;  %v4188_v56 = vld [vmem:[#allocation5 + $0x1a0] ss:$16 sps:$4 sm:$0xff]  }
  0x49   :  { %427 = vmatprep.subr.bf16.mxu0 %v3683_v11  ;;  %468 = vmatprep.subr.bf16.mxu1 %v3685_v12  ;;  %v4190_v54 = vld [vmem:[#allocation5 + $0x1a4] ss:$16 sps:$4 sm:$0xff]   ;;  %v4191_v57 = vld [vmem:[#allocation5 + $0x3a0] ss:$16 sps:$4 sm:$0xff]  }
  0x4a   :  { %v4193_v55 = vld [vmem:[#allocation5 + $0x3a4] ss:$16 sps:$4 sm:$0xff]   ;;  %v4194_v60 = vld [vmem:[#allocation5 + $0x180] ss:$16 sps:$4 sm:$0xff]  }
  0x4b   :  { %v4196_v58 = vld [vmem:[#allocation5 + $0x184] ss:$16 sps:$4 sm:$0xff]   ;;  %v4197_v61 = vld [vmem:[#allocation5 + $0x380] ss:$16 sps:$4 sm:$0xff]  }
  0x4c   :  { %428 = vmatpush1.bf16.msra.mxu0 %v3682_v13  ;;  %469 = vmatpush1.bf16.msra.mxu1 %v3684_v14  ;;  %v4199_v59 = vld [vmem:[#allocation5 + $0x384] ss:$16 sps:$4 sm:$0xff]   ;;  %v4200_v1 = vld [vmem:[#allocation5 + $0x160] ss:$16 sps:$4 sm:$0xff]  }
  0x4d   :  { %2069 = vmatprep.subr.bf16.mxu0 %v4130_v15  ;;  %2110 = vmatprep.subr.bf16.mxu1 %v4133_v16  ;;  %v4202_v62 = vld [vmem:[#allocation5 + $0x164] ss:$16 sps:$4 sm:$0xff]   ;;  %v4203_v2 = vld [vmem:[#allocation5 + $0x360] ss:$16 sps:$4 sm:$0xff]  }
  0x4e   :  { %v4205_v63 = vld [vmem:[#allocation5 + $0x364] ss:$16 sps:$4 sm:$0xff]   ;;  %v4206_v5 = vld [vmem:[#allocation5 + $0x140] ss:$16 sps:$4 sm:$0xff]  }
  0x4f   :  { %3712 = vmatmul.mubr.msk.bf16.vlgmr.msra.gmra.mxu0 %vm299_vm2, %v72_v53  ;;  %3713 = vmatmul.mubr.msk.bf16.vlgmr.msra.gmra.mxu1 %vm299_vm2, %v72_v53  ;;  %v4185_v53 = vld [vmem:[#allocation5 + $0x3c0] ss:$16 sps:$4 sm:$0xff]   ;;  %v4208_v3 = vld [vmem:[#allocation5 + $0x144] ss:$16 sps:$4 sm:$0xff]  }
  0x50   :  { %2070 = vmatpush1.bf16.msra.mxu0 %v4128_v17  ;;  %2111 = vmatpush1.bf16.msra.mxu1 %v4131_v18  ;;  %v4211_v4 = vld [vmem:[#allocation5 + $0x344] ss:$16 sps:$4 sm:$0xff]   ;;  %v4209_v6 = vld [vmem:[#allocation5 + $0x340] ss:$16 sps:$4 sm:$0xff]   ;;  %v107_v17 = vlaneseq }
  0x51   :  { %2071 = vmatprep.subr.bf16.mxu0 %v4136_v0  ;;  %2112 = vmatprep.subr.bf16.mxu1 %v4139_v19  ;;  %v4214_v7 = vld [vmem:[#allocation5 + $0x124] ss:$16 sps:$4 sm:$0xff]   ;;  %v4212_v9 = vld [vmem:[#allocation5 + $0x120] ss:$16 sps:$4 sm:$0xff]  }
  0x52   :  { %v4217_v8 = vld [vmem:[#allocation5 + $0x324] ss:$16 sps:$4 sm:$0xff]   ;;  %v4215_v10 = vld [vmem:[#allocation5 + $0x320] ss:$16 sps:$4 sm:$0xff]   ;;  %v4785_v18 = vshrl.u32 %v107_v17, 7 }
  0x53   :  { %v4220_v11 = vld [vmem:[#allocation5 + $0x104] ss:$16 sps:$4 sm:$0xff]   ;;  %v4218_v13 = vld [vmem:[#allocation5 + $0x100] ss:$16 sps:$4 sm:$0xff]  }
  0x54   :  { %2072 = vmatpush1.bf16.msra.mxu0 %v4134_v20  ;;  %2113 = vmatpush1.bf16.msra.mxu1 %v4137_v21  ;;  %v4223_v12 = vld [vmem:[#allocation5 + $0x304] ss:$16 sps:$4 sm:$0xff]   ;;  %v4221_v14 = vld [vmem:[#allocation5 + $0x300] ss:$16 sps:$4 sm:$0xff]   ;;  %v4788_v0 = vsub.s32 0, %v4785_v18  ;;  %v117_v20 = vsub.s32 2, %v4785_v18 }
  0x55   :  { %2073 = vmatprep.subr.bf16.mxu0 %v4142_v22  ;;  %2114 = vmatprep.subr.bf16.mxu1 %v4145_v23  ;;  %v4226_v15 = vld [vmem:[#allocation5 + $0x4e4] ss:$16 sps:$4 sm:$0xff]   ;;  %v4793_v19 = vld [vmem:[%s5117_s2] sm:$0xff]  ;;  %v4797_v21 = vsub.s32 1, %v4785_v18  ;;  %v121_v22 = vsub.s32 3, %v4785_v18 }
  0x56   :  { %v4229_v16 = vld [vmem:[#allocation5 + $0x6e4] ss:$16 sps:$4 sm:$0xff]   ;;  %v110_v23 = vrot.slane %v4793_v19, %v4788_v0 }
  0x58   :  { %2074 = vmatpush1.bf16.msra.mxu0 %v4140_v24  ;;  %2115 = vmatpush1.bf16.msra.mxu1 %v4143_v25  ;;  %v118_v24 = vrot.slane %v4793_v19, %v117_v20  ;;  %v114_v25 = vrot.slane %v4793_v19, %v4797_v21 }
  0x59   :  { %2075 = vmatprep.subr.bf16.mxu0 %v4148_v26  ;;  %2116 = vmatprep.subr.bf16.mxu1 %v4151_v27  ;;  %v122_v27 = vrot.slane %v4793_v19, %v121_v22 }
  0x5c   :  { %2076 = vmatpush1.bf16.msra.mxu0 %v4146_v28  ;;  %2117 = vmatpush1.bf16.msra.mxu1 %v4149_v29 }
  0x5d   :  { %2077 = vmatprep.subr.bf16.mxu0 %v4154_v30  ;;  %2118 = vmatprep.subr.bf16.mxu1 %v4157_v32 }
  0x60   :  { %2078 = vmatpush1.bf16.msra.mxu0 %v4152_v31  ;;  %2119 = vmatpush1.bf16.msra.mxu1 %v4155_v33 }
  0x61   :  { %2079 = vmatprep.subr.bf16.mxu0 %v4160_v34  ;;  %2120 = vmatprep.subr.bf16.mxu1 %v4163_v35 }
  0x64   :  { %2080 = vmatpush1.bf16.msra.mxu0 %v4158_v36  ;;  %2121 = vmatpush1.bf16.msra.mxu1 %v4161_v37 }
  0x65   :  { %2081 = vmatprep.subr.bf16.mxu0 %v4166_v38  ;;  %2122 = vmatprep.subr.bf16.mxu1 %v4169_v39 }
  0x68   :  { %2082 = vmatpush1.bf16.msra.mxu0 %v4164_v40  ;;  %2123 = vmatpush1.bf16.msra.mxu1 %v4167_v41 }
  0x69   :  { %2083 = vmatprep.subr.bf16.mxu0 %v4172_v42  ;;  %2124 = vmatprep.subr.bf16.mxu1 %v4175_v43 }
  0x6c   :  { %2084 = vmatpush1.bf16.msra.mxu0 %v4170_v44  ;;  %2125 = vmatpush1.bf16.msra.mxu1 %v4173_v45  ;;  %v4224_v45 = vld [vmem:[#allocation5 + $0x4e0] ss:$16 sps:$4 sm:$0xff]  }
  0x6d   :  { %2085 = vmatprep.subr.bf16.mxu0 %v4178_v46  ;;  %2126 = vmatprep.subr.bf16.mxu1 %v4181_v47 }
  0x70   :  { %2086 = vmatpush2.bf16.msra.mxu0 %v4176_v48  ;;  %2127 = vmatpush2.bf16.msra.mxu1 %v4179_v49  ;;  %v4227_v48 = vld [vmem:[#allocation5 + $0x6e0] ss:$16 sps:$4 sm:$0xff]   ;;  %v4232_v49 = vld [vmem:[#allocation5 + $0x4c4] ss:$16 sps:$4 sm:$0xff]  }
  0x71   :  { %2087 = vmatprep.subr.bf16.mxu0 %v4184_v50  ;;  %2128 = vmatprep.subr.bf16.mxu1 %v4187_v51  ;;  %v4235_v50 = vld [vmem:[#allocation5 + $0x6c4] ss:$16 sps:$4 sm:$0xff]   ;;  %v4230_v51 = vld [vmem:[#allocation5 + $0x4c0] ss:$16 sps:$4 sm:$0xff]  }
  0x74   :  { %2088 = vmatpush2.bf16.msra.mxu0 %v4182_v52  ;;  %2129 = vmatpush2.bf16.msra.mxu1 %v4185_v53  ;;  %v129_v52 = vsub.s32 5, %v4785_v18  ;;  %v4233_v53 = vld [vmem:[#allocation5 + $0x6c0] ss:$16 sps:$4 sm:$0xff]  }
  0x75   :  { %2089 = vmatprep.subr.bf16.mxu0 %v4190_v54  ;;  %2130 = vmatprep.subr.bf16.mxu1 %v4193_v55  ;;  %v4238_v54 = vld [vmem:[#allocation5 + $0x4a4] ss:$16 sps:$4 sm:$0xff]   ;;  %v137_v55 = vsub.s32 7, %v4785_v18 }
  0x78   :  { %2090 = vmatpush2.bf16.msra.mxu0 %v4188_v56  ;;  %2131 = vmatpush2.bf16.msra.mxu1 %v4191_v57  ;;  %v4241_v56 = vld [vmem:[#allocation5 + $0x6a4] ss:$16 sps:$4 sm:$0xff]   ;;  %v4236_v57 = vld [vmem:[#allocation5 + $0x4a0] ss:$16 sps:$4 sm:$0xff]  }
  0x79   :  { %2091 = vmatprep.subr.bf16.mxu0 %v4196_v58  ;;  %2132 = vmatprep.subr.bf16.mxu1 %v4199_v59  ;;  %v130_v58 = vrot.slane %v4793_v19, %v129_v52  ;;  %v4239_v59 = vld [vmem:[#allocation5 + $0x6a0] ss:$16 sps:$4 sm:$0xff]  }
  0x7a   :  { %v4287_v52 = vld [vmem:[#allocation5 + $0x7a0] ss:$16 sps:$4 sm:$0xff]  }
  0x7c   :  { %2092 = vmatpush2.bf16.msra.mxu0 %v4194_v60  ;;  %2133 = vmatpush2.bf16.msra.mxu1 %v4197_v61  ;;  %v4244_v60 = vld [vmem:[#allocation5 + $0x484] ss:$16 sps:$4 sm:$0xff]  }
  0x7d   :  { %2093 = vmatprep.subr.bf16.mxu0 %v4202_v62  ;;  %2134 = vmatprep.subr.bf16.mxu1 %v4205_v63  ;;  %v138_v62 = vrot.slane %v4793_v19, %v137_v55  ;;  %v4247_v63 = vld [vmem:[#allocation5 + $0x684] ss:$16 sps:$4 sm:$0xff]   ;;  %v4290_v55 = vld [vmem:[#allocation5 + $0x580] ss:$16 sps:$4 sm:$0xff]  }
  0x80   :  { %2094 = vmatpush2.bf16.msra.mxu0 %v4200_v1  ;;  %2135 = vmatpush2.bf16.msra.mxu1 %v4203_v2 }
  0x81   :  { %2095 = vmatprep.subr.bf16.mxu0 %v4208_v3  ;;  %2136 = vmatprep.subr.bf16.mxu1 %v4211_v4  ;;  %v4242_v3 = vld [vmem:[#allocation5 + $0x480] ss:$16 sps:$4 sm:$0xff]  }
  0x84   :  { %2096 = vmatpush2.bf16.msra.mxu0 %v4206_v5  ;;  %2137 = vmatpush2.bf16.msra.mxu1 %v4209_v6  ;;  %v4245_v6 = vld [vmem:[#allocation5 + $0x680] ss:$16 sps:$4 sm:$0xff]  }
  0x85   :  { %2097 = vmatprep.subr.bf16.mxu0 %v4214_v7  ;;  %2138 = vmatprep.subr.bf16.mxu1 %v4217_v8  ;;  %v4250_v7 = vld [vmem:[#allocation5 + $0x464] ss:$16 sps:$4 sm:$0xff]  }
  0x88   :  { %2098 = vmatpush2.bf16.msra.mxu0 %v4212_v9  ;;  %2139 = vmatpush2.bf16.msra.mxu1 %v4215_v10  ;;  %v4253_v10 = vld [vmem:[#allocation5 + $0x664] ss:$16 sps:$4 sm:$0xff]  }
  0x89   :  { %2099 = vmatprep.subr.bf16.mxu0 %v4220_v11  ;;  %2140 = vmatprep.subr.bf16.mxu1 %v4223_v12 }
  0x8c   :  { %2100 = vmatpush2.bf16.msra.mxu0 %v4218_v13  ;;  %2141 = vmatpush2.bf16.msra.mxu1 %v4221_v14 }
  0x8d   :  { %2151 = vmatprep.subr.bf16.mxu0 %v4226_v15  ;;  %2192 = vmatprep.subr.bf16.mxu1 %v4229_v16  ;;  %v4248_v15 = vld [vmem:[#allocation5 + $0x460] ss:$16 sps:$4 sm:$0xff]  }
  0xff   :  { %v365_v26 = vpop.f32.mrf.mxu0  ;;  %v406_v29 = vpop.f32.mrf.mxu1 }
 0x100   :  { %v366_v28 = vadd.f32 %v365_v26, %v110_v23  ;;  %v407_v30 = vadd.f32 %v406_v29, %v118_v24  ;;  %v4251_v23 = vld [vmem:[#allocation5 + $0x660] ss:$16 sps:$4 sm:$0xff]   ;;  %v4256_v24 = vld [vmem:[#allocation5 + $0x444] ss:$16 sps:$4 sm:$0xff]  }
 0x101   :  { %v367_v31 = vpop.f32.mrf.mxu0  ;;  %v408_v33 = vpop.f32.mrf.mxu1  ;;  %v4259_v26 = vld [vmem:[#allocation5 + $0x644] ss:$16 sps:$4 sm:$0xff]  }
 0x102   :  { %v368_v32 = vadd.f32 %v367_v31, %v114_v25  ;;  %v495_v34 = vmax.f32 %v366_v28, 0.0  ;;  %v497_v35 = vmax.f32 %v407_v30, 0.0  ;;  %v409_v36 = vadd.f32 %v408_v33, %v122_v27  ;;  %v4254_v27 = vld [vmem:[#allocation5 + $0x440] ss:$16 sps:$4 sm:$0xff]   ;;  %v4262_v29 = vld [vmem:[#allocation5 + $0x424] ss:$16 sps:$4 sm:$0xff]  }
 0x103   :  { %v369_v37 = vpop.f32.mrf.mxu0  ;;  %v410_v39 = vpop.f32.mrf.mxu1  ;;  %v4257_v28 = vld [vmem:[#allocation5 + $0x640] ss:$16 sps:$4 sm:$0xff]   ;;  %v4265_v30 = vld [vmem:[#allocation5 + $0x624] ss:$16 sps:$4 sm:$0xff]  }
 0x104   :  { %v496_v38 = vmax.f32 %v368_v32, 0.0  ;;  %v498_v40 = vmax.f32 %v409_v36, 0.0  ;;  %v4810_v42 = vpack.c.bf16 %v497_v35, %v497_v35  ;;  %v4814_v46 = vpack.c.bf16 %v495_v34, %v495_v34  ;;  %v4260_v31 = vld [vmem:[#allocation5 + $0x420] ss:$16 sps:$4 sm:$0xff]   ;;  %v4268_v33 = vld [vmem:[#allocation5 + $0x404] ss:$16 sps:$4 sm:$0xff]  }
 0x105   :  { %v370_v41 = vpop.f32.mrf.mxu0  ;;  %v411_v44 = vpop.f32.mrf.mxu1  ;;  %v4263_v32 = vld [vmem:[#allocation5 + $0x620] ss:$16 sps:$4 sm:$0xff]   ;;  %v4271_v34 = vld [vmem:[#allocation5 + $0x604] ss:$16 sps:$4 sm:$0xff]  }
 0x106   :  { %v4812_v43 = vpack.c.bf16 %v496_v38, %v496_v38  ;;  %v4816_v47 = vpack.c.bf16 %v498_v40, %v498_v40  ;;  %v4266_v35 = vld [vmem:[#allocation5 + $0x400] ss:$16 sps:$4 sm:$0xff]   ;;  %v4274_v37 = vld [vmem:[#allocation5 + $0x5e4] ss:$16 sps:$4 sm:$0xff]  }
 0x107   :  { %v4269_v36 = vld [vmem:[#allocation5 + $0x600] ss:$16 sps:$4 sm:$0xff]   ;;  %v4277_v38 = vld [vmem:[#allocation5 + $0x7e4] ss:$16 sps:$4 sm:$0xff]  }
 0x108   :  { %2101 = vmatprep.mubr.bf16.mxu0 %v4812_v43  ;;  %2142 = vmatprep.mubr.bf16.mxu1 %v4816_v47  ;;  %v4272_v39 = vld [vmem:[#allocation5 + $0x5e0] ss:$16 sps:$4 sm:$0xff]   ;;  %v4280_v41 = vld [vmem:[#allocation5 + $0x5c4] ss:$16 sps:$4 sm:$0xff]  }
 0x109   :  { %2102 = vmatmul.mubr.bf16.vlgmr.msra.gmra.mxu0 %v4814_v46  ;;  %2143 = vmatmul.mubr.bf16.vlgmr.msra.gmra.mxu1 %v4810_v42  ;;  %v4275_v40 = vld [vmem:[#allocation5 + $0x7e0] ss:$16 sps:$4 sm:$0xff]   ;;  %v4283_v44 = vld [vmem:[#allocation5 + $0x7c4] ss:$16 sps:$4 sm:$0xff]  }
 0x10a   :  { %2152 = vmatpush1.bf16.msra.mxu0 %v4224_v45  ;;  %2193 = vmatpush1.bf16.msra.mxu1 %v4227_v48  ;;  %v4278_v45 = vld [vmem:[#allocation5 + $0x5c0] ss:$16 sps:$4 sm:$0xff]  }
 0x10b   :  { %2153 = vmatprep.subr.bf16.mxu0 %v4232_v49  ;;  %2194 = vmatprep.subr.bf16.mxu1 %v4235_v50  ;;  %v4281_v48 = vld [vmem:[#allocation5 + $0x7c0] ss:$16 sps:$4 sm:$0xff]   ;;  %v4286_v49 = vld [vmem:[#allocation5 + $0x5a4] ss:$16 sps:$4 sm:$0xff]  }
 0x10c   :  { %v4289_v50 = vld [vmem:[#allocation5 + $0x7a4] ss:$16 sps:$4 sm:$0xff]  }
 0x10e   :  { %2154 = vmatpush1.bf16.msra.mxu0 %v4230_v51  ;;  %2195 = vmatpush1.bf16.msra.mxu1 %v4233_v53  ;;  %v4284_v51 = vld [vmem:[#allocation5 + $0x5a0] ss:$16 sps:$4 sm:$0xff]   ;;  %v4292_v53 = vld [vmem:[#allocation5 + $0x584] ss:$16 sps:$4 sm:$0xff]  }
 0x10f   :  { %2155 = vmatprep.subr.bf16.mxu0 %v4238_v54  ;;  %v4825_v61 = vpop.f32.mrf.mxu0  ;;  %2196 = vmatprep.subr.bf16.mxu1 %v4241_v56  ;;  %v4828_v1 = vpop.f32.mrf.mxu1  ;;  %v4295_v54 = vld [vmem:[#allocation5 + $0x784] ss:$16 sps:$4 sm:$0xff]   ;;  %v4293_v56 = vld [vmem:[#allocation5 + $0x780] ss:$16 sps:$4 sm:$0xff]  }
 0x111   :  { %v449_v2 = vpop.f32.mrf.mxu0  ;;  %v490_v5 = vpop.f32.mrf.mxu1 }
 0x112   :  { %2156 = vmatpush1.bf16.msra.mxu0 %v4236_v57  ;;  %v450_v4 = vadd.f32 %v449_v2, %v130_v58  ;;  %2197 = vmatpush1.bf16.msra.mxu1 %v4239_v59  ;;  %v491_v9 = vadd.f32 %v490_v5, %v138_v62  ;;  %v4298_v57 = vld [vmem:[#allocation5 + $0x564] ss:$16 sps:$4 sm:$0xff]   ;;  %v4296_v59 = vld [vmem:[#allocation5 + $0x560] ss:$16 sps:$4 sm:$0xff]  }
 0x113   :  { %2157 = vmatprep.subr.bf16.mxu0 %v4244_v60  ;;  %v451_v8 = vpop.f32.mrf.mxu0  ;;  %2198 = vmatprep.subr.bf16.mxu1 %v4247_v63  ;;  %v492_v12 = vpop.f32.mrf.mxu1  ;;  %v4301_v58 = vld [vmem:[#allocation5 + $0x764] ss:$16 sps:$4 sm:$0xff]   ;;  %v133_v60 = vsub.s32 6, %v4785_v18  ;;  %v4299_v62 = vld [vmem:[#allocation5 + $0x760] ss:$16 sps:$4 sm:$0xff]   ;;  %v125_v63 = vsub.s32 4, %v4785_v18 }
 0x114   :  { %v500_v11 = vmax.f32 %v450_v4, 0.0  ;;  %v502_v13 = vmax.f32 %v491_v9, 0.0  ;;  %v4304_v2 = vld [vmem:[#allocation5 + $0x544] ss:$16 sps:$4 sm:$0xff]   ;;  %v4302_v5 = vld [vmem:[#allocation5 + $0x540] ss:$16 sps:$4 sm:$0xff]  }
 0x115   :  { %v452_v14 = vpop.f32.mrf.mxu0  ;;  %v493_v17 = vpop.f32.mrf.mxu1  ;;  %v134_v4 = vrot.slane %v4793_v19, %v133_v60  ;;  %v4310_v8 = vld [vmem:[#allocation5 + $0x524] ss:$16 sps:$4 sm:$0xff]   ;;  %v4370_v60 = vld [vmem:[#allocation5 + $0x1ec] ss:$16 sps:$4 sm:$0xff]  }
 0x116   :  { %2158 = vmatpush1.bf16.msra.mxu0 %v4242_v3  ;;  %v4830_v16 = vpack.c.bf16 %v500_v11, %v500_v11  ;;  %2199 = vmatpush1.bf16.msra.mxu1 %v4245_v6  ;;  %v4832_v25 = vpack.c.bf16 %v502_v13, %v502_v13  ;;  %v4307_v3 = vld [vmem:[#allocation5 + $0x744] ss:$16 sps:$4 sm:$0xff]   ;;  %v126_v6 = vrot.slane %v4793_v19, %v125_v63  ;;  %v4308_v11 = vld [vmem:[#allocation5 + $0x520] ss:$16 sps:$4 sm:$0xff]   ;;  %v4368_v63 = vld [vmem:[#allocation5 + $0x1e8] ss:$16 sps:$4 sm:$0xff]  }
 0x117   :  { %2159 = vmatprep.subr.bf16.mxu0 %v4250_v7  ;;  %2200 = vmatprep.subr.bf16.mxu1 %v4253_v10  ;;  %v4305_v7 = vld [vmem:[#allocation5 + $0x740] ss:$16 sps:$4 sm:$0xff]   ;;  %v4313_v9 = vld [vmem:[#allocation5 + $0x724] ss:$16 sps:$4 sm:$0xff]   ;;  %v489_v10 = vadd.f32 %v4828_v1, %v134_v4  ;;  %v4325_v1 = vld [vmem:[#allocation5 + $0x2ec] ss:$16 sps:$4 sm:$0xff]  }
 0x118   :  { %2183 = vmatprep.mubr.bf16.mxu0 %v4830_v16  ;;  %2224 = vmatprep.mubr.bf16.mxu1 %v4832_v25  ;;  %v448_v12 = vadd.f32 %v4825_v61, %v126_v6  ;;  %v4311_v13 = vld [vmem:[#allocation5 + $0x720] ss:$16 sps:$4 sm:$0xff]   ;;  %v4316_v14 = vld [vmem:[#allocation5 + $0x504] ss:$16 sps:$4 sm:$0xff]   ;;  %v4320_v61 = vld [vmem:[#allocation5 + $0xe8] ss:$16 sps:$4 sm:$0xff]  }
 0x119   :  { %v501_v17 = vmax.f32 %v489_v10, 0.0  ;;  %v4314_v19 = vld [vmem:[#allocation5 + $0x500] ss:$16 sps:$4 sm:$0xff]   ;;  %v4379_v4 = vld [vmem:[#allocation5 + $0x3cc] ss:$16 sps:$4 sm:$0xff]  }
 0x11a   :  { %2160 = vmatpush1.bf16.msra.mxu0 %v4248_v15  ;;  %2201 = vmatpush1.bf16.msra.mxu1 %v4251_v23  ;;  %v4319_v15 = vld [vmem:[#allocation5 + $0x704] ss:$16 sps:$4 sm:$0xff]   ;;  %v499_v23 = vmax.f32 %v448_v12, 0.0  ;;  %v4377_v6 = vld [vmem:[#allocation5 + $0x3c8] ss:$16 sps:$4 sm:$0xff]  }
 0x11b   :  { %2161 = vmatprep.subr.bf16.mxu0 %v4256_v24  ;;  %2202 = vmatprep.subr.bf16.mxu1 %v4259_v26  ;;  %v4317_v24 = vld [vmem:[#allocation5 + $0x700] ss:$16 sps:$4 sm:$0xff]   ;;  %v4322_v26 = vld [vmem:[#allocation5 + $0xec] ss:$16 sps:$4 sm:$0xff]   ;;  %v4383_v10 = vld [vmem:[#allocation5 + $0x3a8] ss:$16 sps:$4 sm:$0xff]  }
 0x11c   :  { %v4391_v12 = vld [vmem:[#allocation5 + $0x38c] ss:$16 sps:$4 sm:$0xff]  }
 0x11e   :  { %2162 = vmatpush1.bf16.msra.mxu0 %v4254_v27  ;;  %2203 = vmatpush1.bf16.msra.mxu1 %v4257_v28  ;;  %v4842_v27 = vpack.c.bf16 %v501_v17, %v501_v17  ;;  %v4844_v28 = vpack.c.bf16 %v499_v23, %v499_v23  ;;  %v4397_v17 = vld [vmem:[#allocation5 + $0x36c] ss:$16 sps:$4 sm:$0xff]   ;;  %v4395_v23 = vld [vmem:[#allocation5 + $0x368] ss:$16 sps:$4 sm:$0xff]  }
 0x11f   :  { %2163 = vmatprep.subr.bf16.mxu0 %v4262_v29  ;;  %2204 = vmatprep.subr.bf16.mxu1 %v4265_v30  ;;  %v4323_v29 = vld [vmem:[#allocation5 + $0x2e8] ss:$16 sps:$4 sm:$0xff]   ;;  %v4328_v30 = vld [vmem:[#allocation5 + $0xcc] ss:$16 sps:$4 sm:$0xff]  }
 0x122   :  { %2164 = vmatpush1.bf16.msra.mxu0 %v4260_v31  ;;  %2205 = vmatpush1.bf16.msra.mxu1 %v4263_v32  ;;  %v4331_v31 = vld [vmem:[#allocation5 + $0x2cc] ss:$16 sps:$4 sm:$0xff]   ;;  %v4326_v32 = vld [vmem:[#allocation5 + $0xc8] ss:$16 sps:$4 sm:$0xff]  }
 0x123   :  { %2165 = vmatprep.subr.bf16.mxu0 %v4268_v33  ;;  %2206 = vmatprep.subr.bf16.mxu1 %v4271_v34  ;;  %v4329_v33 = vld [vmem:[#allocation5 + $0x2c8] ss:$16 sps:$4 sm:$0xff]   ;;  %v4334_v34 = vld [vmem:[#allocation5 + $0xac] ss:$16 sps:$4 sm:$0xff]  }
 0x126   :  { %2166 = vmatpush1.bf16.msra.mxu0 %v4266_v35  ;;  %2207 = vmatpush1.bf16.msra.mxu1 %v4269_v36  ;;  %v4337_v35 = vld [vmem:[#allocation5 + $0x2ac] ss:$16 sps:$4 sm:$0xff]   ;;  %v4332_v36 = vld [vmem:[#allocation5 + $0xa8] ss:$16 sps:$4 sm:$0xff]  }
 0x127   :  { %2167 = vmatprep.subr.bf16.mxu0 %v4274_v37  ;;  %2208 = vmatprep.subr.bf16.mxu1 %v4277_v38  ;;  %v4335_v37 = vld [vmem:[#allocation5 + $0x2a8] ss:$16 sps:$4 sm:$0xff]   ;;  %v4340_v38 = vld [vmem:[#allocation5 + $0x8c] ss:$16 sps:$4 sm:$0xff]  }
 0x12a   :  { %2168 = vmatpush2.bf16.msra.mxu0 %v4272_v39  ;;  %2209 = vmatpush2.bf16.msra.mxu1 %v4275_v40  ;;  %v4343_v39 = vld [vmem:[#allocation5 + $0x28c] ss:$16 sps:$4 sm:$0xff]   ;;  %v4338_v40 = vld [vmem:[#allocation5 + $0x88] ss:$16 sps:$4 sm:$0xff]  }
 0x12b   :  { %2169 = vmatprep.subr.bf16.mxu0 %v4280_v41  ;;  %2210 = vmatprep.subr.bf16.mxu1 %v4283_v44  ;;  %v4346_v41 = vld [vmem:[#allocation5 + $0x6c] ss:$16 sps:$4 sm:$0xff]  }
 0x12c   :  { %v4349_v44 = vld [vmem:[#allocation5 + $0x26c] ss:$16 sps:$4 sm:$0xff]  }
 0x12e   :  { %2170 = vmatpush2.bf16.msra.mxu0 %v4278_v45  ;;  %2211 = vmatpush2.bf16.msra.mxu1 %v4281_v48  ;;  %v4347_v45 = vld [vmem:[#allocation5 + $0x268] ss:$16 sps:$4 sm:$0xff]   ;;  %v4352_v48 = vld [vmem:[#allocation5 + $0x4c] ss:$16 sps:$4 sm:$0xff]  }
 0x12f   :  { %2171 = vmatprep.subr.bf16.mxu0 %v4286_v49  ;;  %2212 = vmatprep.subr.bf16.mxu1 %v4289_v50  ;;  %v4355_v49 = vld [vmem:[#allocation5 + $0x24c] ss:$16 sps:$4 sm:$0xff]   ;;  %v4350_v50 = vld [vmem:[#allocation5 + $0x48] ss:$16 sps:$4 sm:$0xff]  }
 0x132   :  { %2172 = vmatpush2.bf16.msra.mxu0 %v4284_v51  ;;  %2213 = vmatpush2.bf16.msra.mxu1 %v4287_v52  ;;  %v4353_v51 = vld [vmem:[#allocation5 + $0x248] ss:$16 sps:$4 sm:$0xff]   ;;  %v4358_v52 = vld [vmem:[#allocation5 + $0x2c] ss:$16 sps:$4 sm:$0xff]  }
 0x133   :  { %2173 = vmatprep.subr.bf16.mxu0 %v4292_v53  ;;  %2214 = vmatprep.subr.bf16.mxu1 %v4295_v54  ;;  %v4361_v53 = vld [vmem:[#allocation5 + $0x22c] ss:$16 sps:$4 sm:$0xff]   ;;  %v4356_v54 = vld [vmem:[#allocation5 + $0x28] ss:$16 sps:$4 sm:$0xff]  }
 0x136   :  { %2174 = vmatpush2.bf16.msra.mxu0 %v4290_v55  ;;  %2215 = vmatpush2.bf16.msra.mxu1 %v4293_v56  ;;  %v4359_v55 = vld [vmem:[#allocation5 + $0x228] ss:$16 sps:$4 sm:$0xff]   ;;  %v4364_v56 = vld [vmem:[#allocation5 + $0xc] ss:$16 sps:$4 sm:$0xff]  }
 0x137   :  { %2175 = vmatprep.subr.bf16.mxu0 %v4298_v57  ;;  %2216 = vmatprep.subr.bf16.mxu1 %v4301_v58  ;;  %v4367_v57 = vld [vmem:[#allocation5 + $0x20c] ss:$16 sps:$4 sm:$0xff]   ;;  %v4362_v58 = vld [vmem:[#allocation5 + $0x8] ss:$16 sps:$4 sm:$0xff]  }
 0x13a   :  { %2176 = vmatpush2.bf16.msra.mxu0 %v4296_v59  ;;  %2217 = vmatpush2.bf16.msra.mxu1 %v4299_v62  ;;  %v4365_v59 = vld [vmem:[#allocation5 + $0x208] ss:$16 sps:$4 sm:$0xff]   ;;  %v4373_v62 = vld [vmem:[#allocation5 + $0x3ec] ss:$16 sps:$4 sm:$0xff]  }
 0x13b   :  { %2177 = vmatprep.subr.bf16.mxu0 %v4304_v2  ;;  %2218 = vmatprep.subr.bf16.mxu1 %v4307_v3  ;;  %v4371_v2 = vld [vmem:[#allocation5 + $0x3e8] ss:$16 sps:$4 sm:$0xff]   ;;  %v4376_v3 = vld [vmem:[#allocation5 + $0x1cc] ss:$16 sps:$4 sm:$0xff]  }
 0x13e   :  { %2178 = vmatpush2.bf16.msra.mxu0 %v4302_v5  ;;  %2219 = vmatpush2.bf16.msra.mxu1 %v4305_v7  ;;  %v4374_v5 = vld [vmem:[#allocation5 + $0x1c8] ss:$16 sps:$4 sm:$0xff]   ;;  %v4382_v7 = vld [vmem:[#allocation5 + $0x1ac] ss:$16 sps:$4 sm:$0xff]  }
 0x13f   :  { %2179 = vmatprep.subr.bf16.mxu0 %v4310_v8  ;;  %2220 = vmatprep.subr.bf16.mxu1 %v4313_v9  ;;  %v4385_v8 = vld [vmem:[#allocation5 + $0x3ac] ss:$16 sps:$4 sm:$0xff]   ;;  %v4380_v9 = vld [vmem:[#allocation5 + $0x1a8] ss:$16 sps:$4 sm:$0xff]  }
 0x142   :  { %2180 = vmatpush2.bf16.msra.mxu0 %v4308_v11  ;;  %2221 = vmatpush2.bf16.msra.mxu1 %v4311_v13  ;;  %v4388_v11 = vld [vmem:[#allocation5 + $0x18c] ss:$16 sps:$4 sm:$0xff]   ;;  %v4386_v13 = vld [vmem:[#allocation5 + $0x188] ss:$16 sps:$4 sm:$0xff]  }
 0x143   :  { %2181 = vmatprep.subr.bf16.mxu0 %v4316_v14  ;;  %2222 = vmatprep.subr.bf16.mxu1 %v4319_v15  ;;  %v4389_v14 = vld [vmem:[#allocation5 + $0x388] ss:$16 sps:$4 sm:$0xff]   ;;  %v4394_v15 = vld [vmem:[#allocation5 + $0x16c] ss:$16 sps:$4 sm:$0xff]  }
 0x146   :  { %2182 = vmatpush2.bf16.msra.mxu0 %v4314_v19  ;;  %2223 = vmatpush2.bf16.msra.mxu1 %v4317_v24  ;;  %v4392_v19 = vld [vmem:[#allocation5 + $0x168] ss:$16 sps:$4 sm:$0xff]   ;;  %v4400_v24 = vld [vmem:[#allocation5 + $0x14c] ss:$16 sps:$4 sm:$0xff]  }
 0x147   :  { %2233 = vmatprep.subr.bf16.mxu0 %v4322_v26  ;;  %2274 = vmatprep.subr.bf16.mxu1 %v4325_v1  ;;  %v4403_v26 = vld [vmem:[#allocation5 + $0x34c] ss:$16 sps:$4 sm:$0xff]   ;;  %v4398_v1 = vld [vmem:[#allocation5 + $0x148] ss:$16 sps:$4 sm:$0xff]  }
 0x149   :  { %2184 = vmatmul.mubr.bf16.vlgmr.msra.gmra.mxu0 %v4844_v28  ;;  %2225 = vmatmul.mubr.bf16.vlgmr.msra.gmra.mxu1 %v4842_v27 }
 0x14a   :  { %2234 = vmatpush1.bf16.msra.mxu0 %v4320_v61  ;;  %2265 = vmatprep.mubr.bf16.mxu0 %v4812_v43  ;;  %v4341_v43 = vld [vmem:[#allocation5 + $0x288] ss:$16 sps:$4 sm:$0xff]  }
 0x14b   :  { %2275 = vmatpush1.bf16.msra.mxu1 %v4323_v29  ;;  %2306 = vmatprep.mubr.bf16.mxu1 %v4816_v47  ;;  %v4344_v47 = vld [vmem:[#allocation5 + $0x68] ss:$16 sps:$4 sm:$0xff]   ;;  %v4406_v29 = vld [vmem:[#allocation5 + $0x12c] ss:$16 sps:$4 sm:$0xff]  }
 0x14c   :  { %2235 = vmatprep.subr.bf16.mxu0 %v4328_v30  ;;  %2276 = vmatprep.subr.bf16.mxu1 %v4331_v31  ;;  %v4401_v61 = vld [vmem:[#allocation5 + $0x348] ss:$16 sps:$4 sm:$0xff]   ;;  %v4409_v30 = vld [vmem:[#allocation5 + $0x32c] ss:$16 sps:$4 sm:$0xff]  }
 0x14d   :  { %v4404_v31 = vld [vmem:[#allocation5 + $0x128] ss:$16 sps:$4 sm:$0xff]  }
 0x14e   :  { %2236 = vmatpush1.bf16.msra.mxu0 %v4326_v32  ;;  %v4407_v32 = vld [vmem:[#allocation5 + $0x328] ss:$16 sps:$4 sm:$0xff]  }
 0x14f   :  { %2277 = vmatpush1.bf16.msra.mxu1 %v4329_v33  ;;  %2237 = vmatprep.subr.bf16.mxu0 %v4334_v34  ;;  %v4412_v33 = vld [vmem:[#allocation5 + $0x10c] ss:$16 sps:$4 sm:$0xff]  }
 0x150   :  { %2278 = vmatprep.subr.bf16.mxu1 %v4337_v35  ;;  %v4415_v34 = vld [vmem:[#allocation5 + $0x30c] ss:$16 sps:$4 sm:$0xff]   ;;  %v4410_v35 = vld [vmem:[#allocation5 + $0x108] ss:$16 sps:$4 sm:$0xff]  }
 0x152   :  { %2238 = vmatpush1.bf16.msra.mxu0 %v4332_v36  ;;  %v4413_v36 = vld [vmem:[#allocation5 + $0x308] ss:$16 sps:$4 sm:$0xff]  }
 0x153   :  { %2279 = vmatpush1.bf16.msra.mxu1 %v4335_v37  ;;  %2239 = vmatprep.subr.bf16.mxu0 %v4340_v38  ;;  %v4418_v37 = vld [vmem:[#allocation5 + $0x4ec] ss:$16 sps:$4 sm:$0xff]  }
 0x154   :  { %2280 = vmatprep.subr.bf16.mxu1 %v4343_v39  ;;  %v4421_v38 = vld [vmem:[#allocation5 + $0x6ec] ss:$16 sps:$4 sm:$0xff]   ;;  %v4416_v39 = vld [vmem:[#allocation5 + $0x4e8] ss:$16 sps:$4 sm:$0xff]  }
 0x156   :  { %2240 = vmatpush1.bf16.msra.mxu0 %v4338_v40  ;;  %v4419_v40 = vld [vmem:[#allocation5 + $0x6e8] ss:$16 sps:$4 sm:$0xff]  }
 0x157   :  { %2281 = vmatpush1.bf16.msra.mxu1 %v4341_v43  ;;  %2241 = vmatprep.subr.bf16.mxu0 %v4346_v41  ;;  %v4424_v43 = vld [vmem:[#allocation5 + $0x4cc] ss:$16 sps:$4 sm:$0xff]  }
 0x158   :  { %2282 = vmatprep.subr.bf16.mxu1 %v4349_v44  ;;  %v4427_v41 = vld [vmem:[#allocation5 + $0x6cc] ss:$16 sps:$4 sm:$0xff]   ;;  %v4422_v44 = vld [vmem:[#allocation5 + $0x4c8] ss:$16 sps:$4 sm:$0xff]  }
 0x15a   :  { %2242 = vmatpush1.bf16.msra.mxu0 %v4344_v47  ;;  %v4425_v47 = vld [vmem:[#allocation5 + $0x6c8] ss:$16 sps:$4 sm:$0xff]  }
 0x15b   :  { %2283 = vmatpush1.bf16.msra.mxu1 %v4347_v45  ;;  %2243 = vmatprep.subr.bf16.mxu0 %v4352_v48  ;;  %v4430_v45 = vld [vmem:[#allocation5 + $0x4ac] ss:$16 sps:$4 sm:$0xff]  }
 0x15c   :  { %2284 = vmatprep.subr.bf16.mxu1 %v4355_v49  ;;  %v4433_v48 = vld [vmem:[#allocation5 + $0x6ac] ss:$16 sps:$4 sm:$0xff]   ;;  %v4428_v49 = vld [vmem:[#allocation5 + $0x4a8] ss:$16 sps:$4 sm:$0xff]  }
 0x15e   :  { %2244 = vmatpush1.bf16.msra.mxu0 %v4350_v50  ;;  %v4436_v50 = vld [vmem:[#allocation5 + $0x48c] ss:$16 sps:$4 sm:$0xff]  }
 0x15f   :  { %2285 = vmatpush1.bf16.msra.mxu1 %v4353_v51  ;;  %2245 = vmatprep.subr.bf16.mxu0 %v4358_v52  ;;  %v4434_v51 = vld [vmem:[#allocation5 + $0x488] ss:$16 sps:$4 sm:$0xff]   ;;  %v4442_v52 = vld [vmem:[#allocation5 + $0x46c] ss:$16 sps:$4 sm:$0xff]  }
 0x160   :  { %2286 = vmatprep.subr.bf16.mxu1 %v4361_v53  ;;  %v4445_v53 = vld [vmem:[#allocation5 + $0x66c] ss:$16 sps:$4 sm:$0xff]  }
 0x162   :  { %2246 = vmatpush1.bf16.msra.mxu0 %v4356_v54  ;;  %v4443_v54 = vld [vmem:[#allocation5 + $0x668] ss:$16 sps:$4 sm:$0xff]  }
 0x163   :  { %2287 = vmatpush1.bf16.msra.mxu1 %v4359_v55  ;;  %2247 = vmatprep.subr.bf16.mxu0 %v4364_v56  ;;  %v4448_v55 = vld [vmem:[#allocation5 + $0x44c] ss:$16 sps:$4 sm:$0xff]  }
 0x164   :  { %2288 = vmatprep.subr.bf16.mxu1 %v4367_v57  ;;  %v4451_v56 = vld [vmem:[#allocation5 + $0x64c] ss:$16 sps:$4 sm:$0xff]   ;;  %v4446_v57 = vld [vmem:[#allocation5 + $0x448] ss:$16 sps:$4 sm:$0xff]  }
 0x166   :  { %2248 = vmatpush1.bf16.msra.mxu0 %v4362_v58  ;;  %v4449_v58 = vld [vmem:[#allocation5 + $0x648] ss:$16 sps:$4 sm:$0xff]  }
 0x167   :  { %2289 = vmatpush1.bf16.msra.mxu1 %v4365_v59  ;;  %2249 = vmatprep.subr.bf16.mxu0 %v4370_v60  ;;  %v4454_v59 = vld [vmem:[#allocation5 + $0x42c] ss:$16 sps:$4 sm:$0xff]  }
 0x168   :  { %2290 = vmatprep.subr.bf16.mxu1 %v4373_v62  ;;  %v4457_v60 = vld [vmem:[#allocation5 + $0x62c] ss:$16 sps:$4 sm:$0xff]   ;;  %v4452_v62 = vld [vmem:[#allocation5 + $0x428] ss:$16 sps:$4 sm:$0xff]  }
 0x16a   :  { %2250 = vmatpush2.bf16.msra.mxu0 %v4368_v63  ;;  %v4455_v63 = vld [vmem:[#allocation5 + $0x628] ss:$16 sps:$4 sm:$0xff]  }
 0x16b   :  { %2291 = vmatpush2.bf16.msra.mxu1 %v4371_v2  ;;  %2251 = vmatprep.subr.bf16.mxu0 %v4376_v3  ;;  %v4460_v2 = vld [vmem:[#allocation5 + $0x40c] ss:$16 sps:$4 sm:$0xff]  }
 0x16c   :  { %2292 = vmatprep.subr.bf16.mxu1 %v4379_v4  ;;  %v4463_v3 = vld [vmem:[#allocation5 + $0x60c] ss:$16 sps:$4 sm:$0xff]   ;;  %v4458_v4 = vld [vmem:[#allocation5 + $0x408] ss:$16 sps:$4 sm:$0xff]  }
 0x16e   :  { %2252 = vmatpush2.bf16.msra.mxu0 %v4374_v5  ;;  %v4461_v5 = vld [vmem:[#allocation5 + $0x608] ss:$16 sps:$4 sm:$0xff]  }
 0x16f   :  { %2293 = vmatpush2.bf16.msra.mxu1 %v4377_v6  ;;  %2253 = vmatprep.subr.bf16.mxu0 %v4382_v7  ;;  %v4466_v6 = vld [vmem:[#allocation5 + $0x5ec] ss:$16 sps:$4 sm:$0xff]  }
 0x170   :  { %2294 = vmatprep.subr.bf16.mxu1 %v4385_v8  ;;  %v4469_v7 = vld [vmem:[#allocation5 + $0x7ec] ss:$16 sps:$4 sm:$0xff]   ;;  %v4464_v8 = vld [vmem:[#allocation5 + $0x5e8] ss:$16 sps:$4 sm:$0xff]  }
 0x172   :  { %2254 = vmatpush2.bf16.msra.mxu0 %v4380_v9  ;;  %v4467_v9 = vld [vmem:[#allocation5 + $0x7e8] ss:$16 sps:$4 sm:$0xff]  }
 0x173   :  { %2295 = vmatpush2.bf16.msra.mxu1 %v4383_v10  ;;  %2255 = vmatprep.subr.bf16.mxu0 %v4388_v11  ;;  %v4472_v10 = vld [vmem:[#allocation5 + $0x5cc] ss:$16 sps:$4 sm:$0xff]  }
 0x174   :  { %2296 = vmatprep.subr.bf16.mxu1 %v4391_v12  ;;  %v4475_v11 = vld [vmem:[#allocation5 + $0x7cc] ss:$16 sps:$4 sm:$0xff]   ;;  %v4470_v12 = vld [vmem:[#allocation5 + $0x5c8] ss:$16 sps:$4 sm:$0xff]  }
 0x176   :  { %2256 = vmatpush2.bf16.msra.mxu0 %v4386_v13  ;;  %v4473_v13 = vld [vmem:[#allocation5 + $0x7c8] ss:$16 sps:$4 sm:$0xff]  }
 0x177   :  { %2297 = vmatpush2.bf16.msra.mxu1 %v4389_v14  ;;  %2257 = vmatprep.subr.bf16.mxu0 %v4394_v15  ;;  %v4478_v14 = vld [vmem:[#allocation5 + $0x5ac] ss:$16 sps:$4 sm:$0xff]  }
 0x178   :  { %2298 = vmatprep.subr.bf16.mxu1 %v4397_v17  ;;  %v4481_v15 = vld [vmem:[#allocation5 + $0x7ac] ss:$16 sps:$4 sm:$0xff]   ;;  %v4476_v17 = vld [vmem:[#allocation5 + $0x5a8] ss:$16 sps:$4 sm:$0xff]  }
 0x17a   :  { %2258 = vmatpush2.bf16.msra.mxu0 %v4392_v19  ;;  %v4479_v19 = vld [vmem:[#allocation5 + $0x7a8] ss:$16 sps:$4 sm:$0xff]  }
 0x17b   :  { %2299 = vmatpush2.bf16.msra.mxu1 %v4395_v23  ;;  %2259 = vmatprep.subr.bf16.mxu0 %v4400_v24  ;;  %v4484_v23 = vld [vmem:[#allocation5 + $0x58c] ss:$16 sps:$4 sm:$0xff]  }
 0x17c   :  { %2300 = vmatprep.subr.bf16.mxu1 %v4403_v26  ;;  %v4487_v24 = vld [vmem:[#allocation5 + $0x78c] ss:$16 sps:$4 sm:$0xff]   ;;  %v4482_v26 = vld [vmem:[#allocation5 + $0x588] ss:$16 sps:$4 sm:$0xff]  }
 0x17e   :  { %2260 = vmatpush2.bf16.msra.mxu0 %v4398_v1  ;;  %v4485_v1 = vld [vmem:[#allocation5 + $0x788] ss:$16 sps:$4 sm:$0xff]  }
 0x17f   :  { %2301 = vmatpush2.bf16.msra.mxu1 %v4401_v61  ;;  %2261 = vmatprep.subr.bf16.mxu0 %v4406_v29  ;;  %v4490_v61 = vld [vmem:[#allocation5 + $0x56c] ss:$16 sps:$4 sm:$0xff]  }
 0x180   :  { %2302 = vmatprep.subr.bf16.mxu1 %v4409_v30  ;;  %v4493_v29 = vld [vmem:[#allocation5 + $0x76c] ss:$16 sps:$4 sm:$0xff]   ;;  %v4488_v30 = vld [vmem:[#allocation5 + $0x568] ss:$16 sps:$4 sm:$0xff]  }
 0x182   :  { %2262 = vmatpush2.bf16.msra.mxu0 %v4404_v31  ;;  %v4491_v31 = vld [vmem:[#allocation5 + $0x768] ss:$16 sps:$4 sm:$0xff]  }
 0x183   :  { %2303 = vmatpush2.bf16.msra.mxu1 %v4407_v32  ;;  %2263 = vmatprep.subr.bf16.mxu0 %v4412_v33  ;;  %v4496_v32 = vld [vmem:[#allocation5 + $0x54c] ss:$16 sps:$4 sm:$0xff]  }
 0x184   :  { %2304 = vmatprep.subr.bf16.mxu1 %v4415_v34  ;;  %v4499_v33 = vld [vmem:[#allocation5 + $0x74c] ss:$16 sps:$4 sm:$0xff]   ;;  %v4494_v34 = vld [vmem:[#allocation5 + $0x548] ss:$16 sps:$4 sm:$0xff]  }
 0x186   :  { %2264 = vmatpush2.bf16.msra.mxu0 %v4410_v35  ;;  %v4497_v35 = vld [vmem:[#allocation5 + $0x748] ss:$16 sps:$4 sm:$0xff]  }
 0x187   :  { %2305 = vmatpush2.bf16.msra.mxu1 %v4413_v36  ;;  %2315 = vmatprep.subr.bf16.mxu0 %v4418_v37  ;;  %v4502_v36 = vld [vmem:[#allocation5 + $0x52c] ss:$16 sps:$4 sm:$0xff]  }
 0x188   :  { %2356 = vmatprep.subr.bf16.mxu1 %v4421_v38  ;;  %v4505_v37 = vld [vmem:[#allocation5 + $0x72c] ss:$16 sps:$4 sm:$0xff]   ;;  %v4500_v38 = vld [vmem:[#allocation5 + $0x528] ss:$16 sps:$4 sm:$0xff]  }
 0x189   :  { %2266 = vmatmul.mubr.bf16.vlgmr.msra.gmra.mxu0 %v4814_v46  ;;  %v4431_v46 = vld [vmem:[#allocation5 + $0x6a8] ss:$16 sps:$4 sm:$0xff]  }
 0x18a   :  { %2307 = vmatmul.mubr.bf16.vlgmr.msra.gmra.mxu1 %v4810_v42  ;;  %2316 = vmatpush1.bf16.msra.mxu0 %v4416_v39  ;;  %v4439_v42 = vld [vmem:[#allocation5 + $0x68c] ss:$16 sps:$4 sm:$0xff]   ;;  %v4503_v39 = vld [vmem:[#allocation5 + $0x728] ss:$16 sps:$4 sm:$0xff]  }
 0x18b   :  { %2347 = vmatprep.mubr.bf16.mxu0 %v4830_v16  ;;  %2357 = vmatpush1.bf16.msra.mxu1 %v4419_v40  ;;  %v4437_v16 = vld [vmem:[#allocation5 + $0x688] ss:$16 sps:$4 sm:$0xff]   ;;  %v4508_v40 = vld [vmem:[#allocation5 + $0x50c] ss:$16 sps:$4 sm:$0xff]  }
 0x18c   :  { %2388 = vmatprep.mubr.bf16.mxu1 %v4832_v25  ;;  %2317 = vmatprep.subr.bf16.mxu0 %v4424_v43  ;;  %v4440_v25 = vld [vmem:[#allocation5 + $0x468] ss:$16 sps:$4 sm:$0xff]   ;;  %v4511_v43 = vld [vmem:[#allocation5 + $0x70c] ss:$16 sps:$4 sm:$0xff]  }
 0x18d   :  { %2358 = vmatprep.subr.bf16.mxu1 %v4427_v41  ;;  %v4506_v41 = vld [vmem:[#allocation5 + $0x508] ss:$16 sps:$4 sm:$0xff]  }
 0x18e   :  { %2318 = vmatpush1.bf16.msra.mxu0 %v4422_v44  ;;  %v4509_v44 = vld [vmem:[#allocation5 + $0x708] ss:$16 sps:$4 sm:$0xff]  }
 0x18f   :  { %2359 = vmatpush1.bf16.msra.mxu1 %v4425_v47  ;;  %2319 = vmatprep.subr.bf16.mxu0 %v4430_v45  ;;  %v4514_v47 = vld [vmem:[#allocation7 + $0x74] ss:$8 sps:$4 sm:$0xff]   ;;  %v4512_v45 = vld [vmem:[#allocation7 + $0x70] ss:$8 sps:$4 sm:$0xff]  }
 0x190   :  { %2360 = vmatprep.subr.bf16.mxu1 %v4433_v48  ;;  %v4517_v48 = vld [vmem:[#allocation7 + $0x64] ss:$8 sps:$4 sm:$0xff]  }
 0x192   :  { %2320 = vmatpush1.bf16.msra.mxu0 %v4428_v49 }
 0x193   :  { %2361 = vmatpush1.bf16.msra.mxu1 %v4431_v46  ;;  %2321 = vmatprep.subr.bf16.mxu0 %v4436_v50  ;;  %v4515_v50 = vld [vmem:[#allocation7 + $0x60] ss:$8 sps:$4 sm:$0xff]  }
 0x194   :  { %2362 = vmatprep.subr.bf16.mxu1 %v4439_v42 }
 0x196   :  { %2322 = vmatpush1.bf16.msra.mxu0 %v4434_v51  ;;  %v4520_v51 = vld [vmem:[#allocation7 + $0x54] ss:$8 sps:$4 sm:$0xff]  }
 0x197   :  { %2363 = vmatpush1.bf16.msra.mxu1 %v4437_v16  ;;  %2323 = vmatprep.subr.bf16.mxu0 %v4442_v52 }
 0x198   :  { %2364 = vmatprep.subr.bf16.mxu1 %v4445_v53 }
 0x19a   :  { %2324 = vmatpush1.bf16.msra.mxu0 %v4440_v25  ;;  %v4518_v25 = vld [vmem:[#allocation7 + $0x50] ss:$8 sps:$4 sm:$0xff]  }
 0x19b   :  { %2365 = vmatpush1.bf16.msra.mxu1 %v4443_v54  ;;  %2325 = vmatprep.subr.bf16.mxu0 %v4448_v55 }
 0x19c   :  { %2366 = vmatprep.subr.bf16.mxu1 %v4451_v56  ;;  %v4560_v56 = vld [vmem:[#allocation7 + $0x170] ss:$8 sps:$4 sm:$0xff]  }
 0x19e   :  { %2326 = vmatpush1.bf16.msra.mxu0 %v4446_v57  ;;  %v4565_v57 = vld [vmem:[#allocation7 + $0x164] ss:$8 sps:$4 sm:$0xff]  }
 0x19f   :  { %2367 = vmatpush1.bf16.msra.mxu1 %v4449_v58  ;;  %2327 = vmatprep.subr.bf16.mxu0 %v4454_v59  ;;  %v4521_v58 = vld [vmem:[#allocation7 + $0x40] ss:$8 sps:$4 sm:$0xff]   ;;  %v4526_v59 = vld [vmem:[#allocation7 + $0x34] ss:$8 sps:$4 sm:$0xff]  }
 0x1a0   :  { %2368 = vmatprep.subr.bf16.mxu1 %v4457_v60  ;;  %v4563_v60 = vld [vmem:[#allocation7 + $0x160] ss:$8 sps:$4 sm:$0xff]  }
 0x1a2   :  { %2328 = vmatpush1.bf16.msra.mxu0 %v4452_v62  ;;  %v4568_v62 = vld [vmem:[#allocation7 + $0x154] ss:$8 sps:$4 sm:$0xff]  }
 0x1a3   :  { %2369 = vmatpush1.bf16.msra.mxu1 %v4455_v63  ;;  %2329 = vmatprep.subr.bf16.mxu0 %v4460_v2  ;;  %v4524_v63 = vld [vmem:[#allocation7 + $0x30] ss:$8 sps:$4 sm:$0xff]   ;;  %v4529_v2 = vld [vmem:[#allocation7 + $0x24] ss:$8 sps:$4 sm:$0xff]  }
 0x1a4   :  { %2370 = vmatprep.subr.bf16.mxu1 %v4463_v3  ;;  %v4566_v3 = vld [vmem:[#allocation7 + $0x150] ss:$8 sps:$4 sm:$0xff]  }
 0x1a6   :  { %2330 = vmatpush1.bf16.msra.mxu0 %v4458_v4  ;;  %v4571_v4 = vld [vmem:[#allocation7 + $0x144] ss:$8 sps:$4 sm:$0xff]  }
 0x1a7   :  { %2371 = vmatpush1.bf16.msra.mxu1 %v4461_v5  ;;  %2331 = vmatprep.subr.bf16.mxu0 %v4466_v6  ;;  %v4527_v5 = vld [vmem:[#allocation7 + $0x20] ss:$8 sps:$4 sm:$0xff]   ;;  %v4532_v6 = vld [vmem:[#allocation7 + $0x14] ss:$8 sps:$4 sm:$0xff]  }
 0x1a8   :  { %2372 = vmatprep.subr.bf16.mxu1 %v4469_v7  ;;  %v4569_v7 = vld [vmem:[#allocation7 + $0x140] ss:$8 sps:$4 sm:$0xff]  }
 0x1aa   :  { %2332 = vmatpush2.bf16.msra.mxu0 %v4464_v8  ;;  %v4574_v8 = vld [vmem:[#allocation7 + $0x134] ss:$8 sps:$4 sm:$0xff]  }
 0x1ab   :  { %2373 = vmatpush2.bf16.msra.mxu1 %v4467_v9  ;;  %2333 = vmatprep.subr.bf16.mxu0 %v4472_v10  ;;  %v4530_v9 = vld [vmem:[#allocation7 + $0x10] ss:$8 sps:$4 sm:$0xff]   ;;  %v4535_v10 = vld [vmem:[#allocation7 + $0x4] ss:$8 sps:$4 sm:$0xff]  }
 0x1ac   :  { %2374 = vmatprep.subr.bf16.mxu1 %v4475_v11  ;;  %v4572_v11 = vld [vmem:[#allocation7 + $0x130] ss:$8 sps:$4 sm:$0xff]  }
 0x1ae   :  { %2334 = vmatpush2.bf16.msra.mxu0 %v4470_v12  ;;  %v4577_v12 = vld [vmem:[#allocation7 + $0x124] ss:$8 sps:$4 sm:$0xff]  }
 0x1af   :  { %2375 = vmatpush2.bf16.msra.mxu1 %v4473_v13  ;;  %2335 = vmatprep.subr.bf16.mxu0 %v4478_v14  ;;  %v4533_v13 = vld [vmem:[#allocation7] ss:$8 sps:$4 sm:$0xff]   ;;  %v4538_v14 = vld [vmem:[#allocation7 + $0xf4] ss:$8 sps:$4 sm:$0xff]  }
 0x1b0   :  { %2376 = vmatprep.subr.bf16.mxu1 %v4481_v15  ;;  %v4575_v15 = vld [vmem:[#allocation7 + $0x120] ss:$8 sps:$4 sm:$0xff]  }
 0x1b2   :  { %2336 = vmatpush2.bf16.msra.mxu0 %v4476_v17  ;;  %v4580_v17 = vld [vmem:[#allocation7 + $0x114] ss:$8 sps:$4 sm:$0xff]  }
 0x1b3   :  { %2377 = vmatpush2.bf16.msra.mxu1 %v4479_v19  ;;  %2337 = vmatprep.subr.bf16.mxu0 %v4484_v23  ;;  %v4536_v19 = vld [vmem:[#allocation7 + $0xf0] ss:$8 sps:$4 sm:$0xff]   ;;  %v4541_v23 = vld [vmem:[#allocation7 + $0xe4] ss:$8 sps:$4 sm:$0xff]  }
 0x1b4   :  { %2378 = vmatprep.subr.bf16.mxu1 %v4487_v24  ;;  %v4578_v24 = vld [vmem:[#allocation7 + $0x110] ss:$8 sps:$4 sm:$0xff]  }
 0x1b6   :  { %2338 = vmatpush2.bf16.msra.mxu0 %v4482_v26  ;;  %v4583_v26 = vld [vmem:[#allocation7 + $0x104] ss:$8 sps:$4 sm:$0xff]  }
 0x1b7   :  { %2379 = vmatpush2.bf16.msra.mxu1 %v4485_v1  ;;  %2339 = vmatprep.subr.bf16.mxu0 %v4490_v61  ;;  %v4539_v1 = vld [vmem:[#allocation7 + $0xe0] ss:$8 sps:$4 sm:$0xff]   ;;  %v4544_v61 = vld [vmem:[#allocation7 + $0xd4] ss:$8 sps:$4 sm:$0xff]  }
 0x1b8   :  { %2380 = vmatprep.subr.bf16.mxu1 %v4493_v29  ;;  %v4581_v29 = vld [vmem:[#allocation7 + $0x100] ss:$8 sps:$4 sm:$0xff]  }
 0x1ba   :  { %2340 = vmatpush2.bf16.msra.mxu0 %v4488_v30  ;;  %v4586_v30 = vld [vmem:[#allocation7 + $0x1f4] ss:$8 sps:$4 sm:$0xff]  }
 0x1bb   :  { %2381 = vmatpush2.bf16.msra.mxu1 %v4491_v31  ;;  %2341 = vmatprep.subr.bf16.mxu0 %v4496_v32  ;;  %v4542_v31 = vld [vmem:[#allocation7 + $0xd0] ss:$8 sps:$4 sm:$0xff]   ;;  %v4547_v32 = vld [vmem:[#allocation7 + $0xc4] ss:$8 sps:$4 sm:$0xff]  }
 0x1bc   :  { %2382 = vmatprep.subr.bf16.mxu1 %v4499_v33  ;;  %v4584_v33 = vld [vmem:[#allocation7 + $0x1f0] ss:$8 sps:$4 sm:$0xff]  }
 0x1be   :  { %2342 = vmatpush2.bf16.msra.mxu0 %v4494_v34  ;;  %v4589_v34 = vld [vmem:[#allocation7 + $0x1e4] ss:$8 sps:$4 sm:$0xff]  }
 0x1bf   :  { %2383 = vmatpush2.bf16.msra.mxu1 %v4497_v35  ;;  %2343 = vmatprep.subr.bf16.mxu0 %v4502_v36  ;;  %v4545_v35 = vld [vmem:[#allocation7 + $0xc0] ss:$8 sps:$4 sm:$0xff]   ;;  %v4550_v36 = vld [vmem:[#allocation7 + $0xb4] ss:$8 sps:$4 sm:$0xff]  }
 0x1c0   :  { %2384 = vmatprep.subr.bf16.mxu1 %v4505_v37  ;;  %v4587_v37 = vld [vmem:[#allocation7 + $0x1e0] ss:$8 sps:$4 sm:$0xff]  }
 0x1c2   :  { %2344 = vmatpush2.bf16.msra.mxu0 %v4500_v38  ;;  %v4592_v38 = vld [vmem:[#allocation7 + $0x1d4] ss:$8 sps:$4 sm:$0xff]  }
 0x1c3   :  { %2385 = vmatpush2.bf16.msra.mxu1 %v4503_v39  ;;  %2345 = vmatprep.subr.bf16.mxu0 %v4508_v40  ;;  %v4548_v39 = vld [vmem:[#allocation7 + $0xb0] ss:$8 sps:$4 sm:$0xff]   ;;  %v4553_v40 = vld [vmem:[#allocation7 + $0xa4] ss:$8 sps:$4 sm:$0xff]  }
 0x1c4   :  { %2386 = vmatprep.subr.bf16.mxu1 %v4511_v43  ;;  %v4590_v43 = vld [vmem:[#allocation7 + $0x1d0] ss:$8 sps:$4 sm:$0xff]  }
 0x1c6   :  { %2346 = vmatpush2.bf16.msra.mxu0 %v4506_v41  ;;  %v4595_v41 = vld [vmem:[#allocation7 + $0x1c4] ss:$8 sps:$4 sm:$0xff]  }
 0x1c7   :  { %2387 = vmatpush2.bf16.msra.mxu1 %v4509_v44  ;;  %2801 = vmatprep.subr.bf16.mxu0 %v4514_v47  ;;  %v4551_v44 = vld [vmem:[#allocation7 + $0xa0] ss:$8 sps:$4 sm:$0xff]   ;;  %v4556_v47 = vld [vmem:[#allocation7 + $0x94] ss:$8 sps:$4 sm:$0xff]  }
 0x1c9   :  { %2348 = vmatmul.mubr.bf16.vlgmr.msra.gmra.mxu0 %v4844_v28  ;;  %v4855_v49 = vpop.f32.mrf.mxu0  ;;  %v4858_v46 = vpop.f32.mrf.mxu1  ;;  %v4523_v28 = vld [vmem:[#allocation7 + $0x44] ss:$8 sps:$4 sm:$0xff]  }
 0x1ca   :  { %2389 = vmatmul.mubr.bf16.vlgmr.msra.gmra.mxu1 %v4842_v27  ;;  %2802 = vmatpush1.bf16.msra.mxu0 %v4512_v45  ;;  %v4562_v27 = vld [vmem:[#allocation7 + $0x174] ss:$8 sps:$4 sm:$0xff]   ;;  %v4593_v45 = vld [vmem:[#allocation7 + $0x1c0] ss:$8 sps:$4 sm:$0xff]  }
 0x1cb   :  { %v4860_v42 = vpop.f32.mrf.mxu0  ;;  %2803 = vmatprep.subr.bf16.mxu0 %v4517_v48  ;;  %v4862_v16 = vpop.f32.mrf.mxu1  ;;  %2842 = vmatprep.subr.bf16.mxu1 %v4562_v27  ;;  %v4598_v48 = vld [vmem:[#allocation7 + $0x1b4] ss:$8 sps:$4 sm:$0xff]  }
 0x1cc   :  { %2843 = vmatpush1.bf16.msra.mxu1 %v4560_v56 }
 0x1cd   :  { %v2107_v52 = vpop.f32.mrf.mxu0  ;;  %v2148_v53 = vpop.f32.mrf.mxu1  ;;  %2844 = vmatprep.subr.bf16.mxu1 %v4565_v57 }
 0x1ce   :  { %2804 = vmatpush1.bf16.msra.mxu0 %v4515_v50  ;;  %v767_v50 = vld [vmem:[%s5119_s4] sm:$0xf]  ;;  %v4559_v52 = vld [vmem:[#allocation7 + $0x84] ss:$8 sps:$4 sm:$0xff]   ;;  %v4596_v53 = vld [vmem:[#allocation7 + $0x1b0] ss:$8 sps:$4 sm:$0xff]  }
 0x1cf   :  { %v2108_v54 = vpop.f32.mrf.mxu0  ;;  %2805 = vmatprep.subr.bf16.mxu0 %v4520_v51  ;;  %v2149_v55 = vpop.f32.mrf.mxu1  ;;  %v4554_v51 = vld [vmem:[#allocation7 + $0x90] ss:$8 sps:$4 sm:$0xff]  }
 0x1d0   :  { %2845 = vmatpush1.bf16.msra.mxu1 %v4563_v60  ;;  %v776_v54 = vrot.slane %v767_v50, %v4797_v21 }
 0x1d1   :  { %2846 = vmatprep.subr.bf16.mxu1 %v4568_v62 }
 0x1d2   :  { %2806 = vmatpush1.bf16.msra.mxu0 %v4518_v25  ;;  %v772_v25 = vrot.slane %v767_v50, %v4788_v0  ;;  %v2106_v56 = vadd.f32 %v4860_v42, %v776_v54 }
 0x1d3   :  { %2807 = vmatprep.subr.bf16.mxu0 %v4523_v28  ;;  %v4557_v28 = vld [vmem:[#allocation7 + $0x80] ss:$8 sps:$4 sm:$0xff]  }
 0x1d4   :  { %2847 = vmatpush1.bf16.msra.mxu1 %v4566_v3  ;;  %v2104_v55 = vadd.f32 %v4855_v49, %v772_v25  ;;  %v4604_v49 = vld [vmem:[#allocation7 + $0x194] ss:$8 sps:$4 sm:$0xff]  }
 0x1d5   :  { %2848 = vmatprep.subr.bf16.mxu1 %v4571_v4 }
 0x1d6   :  { %2808 = vmatpush1.bf16.msra.mxu0 %v4521_v58  ;;  %v2145_v27 = vadd.f32 %v4858_v46, %v2104_v55  ;;  %v4601_v58 = vld [vmem:[#allocation7 + $0x1a4] ss:$8 sps:$4 sm:$0xff]   ;;  %v4693_v55 = vmov 1983009808  }
 0x1d7   :  { %2809 = vmatprep.subr.bf16.mxu0 %v4526_v59  ;;  %v2147_v59 = vadd.f32 %v4862_v16, %v2106_v56  ;;  %v4607_v16 = vld [vmem:[#allocation7 + $0x184] ss:$8 sps:$4 sm:$0xff]   ;;  %v2887_v56 = vunpack.c.l.s4 %v4693_v55 }
 0x1d8   :  { %2849 = vmatpush1.bf16.msra.mxu1 %v4569_v7 }
 0x1d9   :  { %2850 = vmatprep.subr.bf16.mxu1 %v4574_v8  ;;  %v4602_v8 = vld [vmem:[#allocation7 + $0x190] ss:$8 sps:$4 sm:$0xff]  }
 0x1da   :  { %2810 = vmatpush1.bf16.msra.mxu0 %v4524_v63  ;;  %v4599_v63 = vld [vmem:[#allocation7 + $0x1a0] ss:$8 sps:$4 sm:$0xff]  }
 0x1db   :  { %2811 = vmatprep.subr.bf16.mxu0 %v4529_v2 }
 0x1dc   :  { %2851 = vmatpush1.bf16.msra.mxu1 %v4572_v11 }
 0x1dd   :  { %2852 = vmatprep.subr.bf16.mxu1 %v4577_v12 }
 0x1de   :  { %2812 = vmatpush1.bf16.msra.mxu0 %v4527_v5 }
 0x1df   :  { %2813 = vmatprep.subr.bf16.mxu0 %v4532_v6 }
 0x1e0   :  { %2853 = vmatpush1.bf16.msra.mxu1 %v4575_v15 }
 0x1e1   :  { %2854 = vmatprep.subr.bf16.mxu1 %v4580_v17 }
 0x1e2   :  { %2814 = vmatpush1.bf16.msra.mxu0 %v4530_v9 }
 0x1e3   :  { %2815 = vmatprep.subr.bf16.mxu0 %v4535_v10 }
 0x1e4   :  { %2855 = vmatpush1.bf16.msra.mxu1 %v4578_v24 }
 0x1e5   :  { %2856 = vmatprep.subr.bf16.mxu1 %v4583_v26 }
 0x1e6   :  { %2816 = vmatpush1.bf16.msra.mxu0 %v4533_v13  ;;  %v4605_v13 = vld [vmem:[#allocation7 + $0x180] ss:$8 sps:$4 sm:$0xff]  }
 0x1e7   :  { %2817 = vmatprep.subr.bf16.mxu0 %v4538_v14 }
 0x1e8   :  { %2857 = vmatpush1.bf16.msra.mxu1 %v4581_v29  ;;  %v780_v29 = vrot.slane %v767_v50, %v117_v20 }
 0x1e9   :  { %2858 = vmatprep.subr.bf16.mxu1 %v4586_v30  ;;  %v784_v30 = vrot.slane %v767_v50, %v121_v22 }
 0x1ea   :  { %2818 = vmatpush2.bf16.msra.mxu0 %v4536_v19 }
 0x1eb   :  { %2819 = vmatprep.subr.bf16.mxu0 %v4541_v23 }
 0x1ec   :  { %2859 = vmatpush2.bf16.msra.mxu1 %v4584_v33 }
 0x1ed   :  { %2860 = vmatprep.subr.bf16.mxu1 %v4589_v34 }
 0x1ee   :  { %2820 = vmatpush2.bf16.msra.mxu0 %v4539_v1 }
 0x1ef   :  { %2821 = vmatprep.subr.bf16.mxu0 %v4544_v61 }
 0x1f0   :  { %2861 = vmatpush2.bf16.msra.mxu1 %v4587_v37 }
 0x1f1   :  { %2862 = vmatprep.subr.bf16.mxu1 %v4592_v38 }
 0x1f2   :  { %2822 = vmatpush2.bf16.msra.mxu0 %v4542_v31 }
 0x1f3   :  { %2823 = vmatprep.subr.bf16.mxu0 %v4547_v32 }
 0x1f4   :  { %2863 = vmatpush2.bf16.msra.mxu1 %v4590_v43 }
 0x1f5   :  { %2864 = vmatprep.subr.bf16.mxu1 %v4595_v41 }
 0x1f6   :  { %2824 = vmatpush2.bf16.msra.mxu0 %v4545_v35 }
 0x1f7   :  { %2825 = vmatprep.subr.bf16.mxu0 %v4550_v36 }
 0x1f8   :  { %2865 = vmatpush2.bf16.msra.mxu1 %v4593_v45 }
 0x1f9   :  { %2866 = vmatprep.subr.bf16.mxu1 %v4598_v48 }
 0x1fa   :  { %2826 = vmatpush2.bf16.msra.mxu0 %v4548_v39 }
 0x1fb   :  { %2827 = vmatprep.subr.bf16.mxu0 %v4553_v40 }
 0x1fc   :  { %2867 = vmatpush2.bf16.msra.mxu1 %v4596_v53 }
 0x1fd   :  { %2868 = vmatprep.subr.bf16.mxu1 %v4601_v58  ;;  %v2888_v58 = vunpack.c.0.s8 %v2887_v56 }
 0x1fe   :  { %2828 = vmatpush2.bf16.msra.mxu0 %v4551_v44 }
 0x1ff   :  { %2829 = vmatprep.subr.bf16.mxu0 %v4556_v47 }
 0x200   :  { %2869 = vmatpush2.bf16.msra.mxu1 %v4599_v63 }
 0x201   :  { %2870 = vmatprep.subr.bf16.mxu1 %v4604_v49 }
 0x202   :  { %2830 = vmatpush2.bf16.msra.mxu0 %v4554_v51 }
 0x203   :  { %2831 = vmatprep.subr.bf16.mxu0 %v4559_v52 }
 0x204   :  { %2871 = vmatpush2.bf16.msra.mxu1 %v4602_v8 }
 0x205   :  { %2872 = vmatprep.subr.bf16.mxu1 %v4607_v16 }
 0x206   :  { %2832 = vmatpush2.bf16.msra.mxu0 %v4557_v28  ;;  %v2469_v28 = vld [vmem:[%s5121_s6] sm:$0x3]  ;;  %s4694_s6 = smov 80  }
 0x208   :  { %2873 = vmatpush2.bf16.msra.mxu1 %v4605_v13 }
 0x209   :  { %v2185_v57 = vpop.f32.mrf.mxu0  ;;  %v2226_v62 = vpop.f32.mrf.mxu1 }
 0x20a   :  { %v2186_v60 = vadd.f32 %v2185_v57, %v2145_v27  ;;  %v2474_v27 = vrot.slane %v2469_v28, %v4788_v0  ;;  %v2478_v57 = vrot.slane %v2469_v28, %v4797_v21 }
 0x20b   :  { %v2187_v2 = vpop.f32.mrf.mxu0  ;;  %v2228_v5 = vpop.f32.mrf.mxu1 }
 0x20c   :  { %v2227_v3 = vadd.f32 %v2226_v62, %v2186_v60  ;;  %v2188_v4 = vadd.f32 %v2187_v2, %v2147_v59  ;;  %v4883_v2 = vsub.s32 %v2888_v58, %v4785_v18 }
 0x20d   :  { %v2189_v6 = vpop.f32.mrf.mxu0  ;;  %v2230_v42 = vpop.f32.mrf.mxu1 }
 0x20e   :  { %v2229_v7 = vadd.f32 %v2228_v5, %v2188_v4  ;;  %v2397_v9 = vmax.f32 %v2227_v3, 0.0 }
 0x20f   :  { %v2190_v46 = vpop.f32.mrf.mxu0  ;;  %v2231_v11 = vpop.f32.mrf.mxu1 }
 0x210   :  { %v2398_v10 = vmax.f32 %v2229_v7, 0.0  ;;  %v2401_v14 = vpack.c.bf16 %v2397_v9, %v2397_v9 }
 0x212   :  { %v2402_v12 = vpack.c.bf16 %v2398_v10, %v2398_v10 }
 0x214   :  { %2833 = vmatprep.mubr.bf16.mxu0 %v2402_v12 }
 0x215   :  { %2834 = vmatmul.mubr.bf16.vlgmr.msra.gmra.mxu0 %v2401_v14 }
 0x249   :  { %v2267_v15 = vpop.f32.mrf.mxu0 }
 0x24a   :  { %v2308_v17 = vpop.f32.mrf.mxu1  ;;  %v2268_v31 = vadd.f32 %v2267_v15, %v780_v29 }
 0x24b   :  { %v2269_v19 = vpop.f32.mrf.mxu0 }
 0x24c   :  { %v2310_v23 = vpop.f32.mrf.mxu1  ;;  %v2270_v32 = vadd.f32 %v2269_v19, %v784_v30  ;;  %v2309_v33 = vadd.f32 %v2308_v17, %v2268_v31 }
 0x24d   :  { %v2271_v24 = vpop.f32.mrf.mxu0 }
 0x24e   :  { %v2312_v26 = vpop.f32.mrf.mxu1  ;;  %v2311_v35 = vadd.f32 %v2310_v23, %v2270_v32 }
 0x24f   :  { %v2272_v1 = vpop.f32.mrf.mxu0 }
 0x250   :  { %v2313_v61 = vpop.f32.mrf.mxu1 }
 0x289   :  { %v2349_v34 = vpop.f32.mrf.mxu0 }
 0x28a   :  { %v2350_v36 = vadd.f32 %v2349_v34, %v2309_v33  ;;  %v2390_v37 = vpop.f32.mrf.mxu1 }
 0x28b   :  { %v2351_v38 = vpop.f32.mrf.mxu0 }
 0x28c   :  { %v2391_v39 = vadd.f32 %v2390_v37, %v2350_v36  ;;  %v2352_v40 = vadd.f32 %v2351_v38, %v2311_v35  ;;  %v2392_v43 = vpop.f32.mrf.mxu1 }
 0x28d   :  { %v2353_v41 = vpop.f32.mrf.mxu0 }
 0x28e   :  { %v2393_v44 = vadd.f32 %v2392_v43, %v2352_v40  ;;  %v2394_v47 = vpop.f32.mrf.mxu1  ;;  %v2399_v45 = vmax.f32 %v2391_v39, 0.0 }
 0x28f   :  { %v2354_v48 = vpop.f32.mrf.mxu0 }
 0x290   :  { %v2400_v20 = vmax.f32 %v2393_v44, 0.0  ;;  %v2395_v51 = vpop.f32.mrf.mxu1  ;;  %v2403_v22 = vpack.c.bf16 %v2399_v45, %v2399_v45 }
 0x292   :  { %v2404_v52 = vpack.c.bf16 %v2400_v20, %v2400_v20 }
 0x294   :  { %2874 = vmatprep.mubr.bf16.mxu1 %v2404_v52 }
 0x295   :  { %2875 = vmatmul.mubr.bf16.vlgmr.msra.gmra.mxu1 %v2403_v22 }
 0x2d5   :  { %v2835_v50 = vpop.f32.mrf.mxu0 }
 0x2d6   :  { %v2836_v60 = vadd.f32 %v2835_v50, %v2474_v27 }
 0x2d7   :  { %v2837_v53 = vpop.f32.mrf.mxu0 }
 0x2d8   :  { %v2838_v62 = vadd.f32 %v2837_v53, %v2478_v57 }
 0x2d9   :  { %v2839_v25 = vpop.f32.mrf.mxu0 }
 0x2db   :  { %v2840_v54 = vpop.f32.mrf.mxu0 }
 0x355   :  { %v2876_v59 = vpop.f32.mrf.mxu1 }
 0x356   :  { %v2877_v3 = vadd.f32 %v2876_v59, %v2836_v60  ;;  %v4701_v59 = vmov 0.0  }
 0x357   :  { %v2878_v63 = vpop.f32.mrf.mxu1  ;;  %4067 = vmatprep.subr.mxu1 %v4701_v59  ;;  %4058 = vmatprep.subr.mxu0 %v4701_v59 }
 0x358   :  { %v2879_v4 = vadd.f32 %v2878_v63, %v2838_v62 }
 0x359   :  { %v2880_v5 = vpop.f32.mrf.mxu1 }
 0x35a   :  { %v2885_v6 = vcombine.low %v2877_v3, %v2879_v4 }
 0x35b   :  { %v2881_v49 = vpop.f32.mrf.mxu1 }
 0x35c   :  { %v2892_v0 = vrot.slane %v2885_v6, %v4883_v2 }
 0x35e   :  { %2897 = vst.msk [vmem:[#allocation2] sm:$0xf] %vm2896_vm5, %v2892_v0 }
 0x365   :  { %v4887_v21 = vld [vmem:[#allocation2] sm:$0xf] }
 0x366   :  { %v2899_v7 = vmul.f32 %v4887_v21, %v4887_v21 }
 0x368   :  { %2901 = vrot.lane.b32.xlu0 %v2899_v7, %s4694_s6 }
 0x36c   :  { %2905 = vrot.lane.b32.xlu0 %v2899_v7, %s4687_s16 }
 0x3da   :  { %v2902_v18 = vpop.permute.xlu0 %2901 }
 0x3db   :  { %v2904_v42 = vadd.f32 %v2902_v18, %v2899_v7 }
 0x3de   :  { %v2906_v8 = vpop.permute.xlu0 %2905 }
 0x3df   :  { %v2908_v9 = vadd.f32 %v2906_v8, %v2904_v42 }
 0x3e1   :  { %4608 = vrsqrt.f32 %v2908_v9 }
 0x3ee   :  { %v4609_v46 = vpop.eup %4608 }
 0x3ef   :  { %v2910_v10 = vmin.f32 %v4609_v46, 1e+12 }
 0x3f1   :  { %2917 = vrot.lane.b32.xlu0 %v2910_v10, %s4695_s28  ;;  %2913 = vrot.lane.b32.xlu1 %v2910_v10, %s4696_s29  ;;  %v4911_v24 = vmul.f32 %v2910_v10, %v4887_v21 }
 0x3f3   :  { %v3058_v18 = vadd.f32 1.0, %v4911_v24  ;;  %v3061_v42 = vsub.f32 1.0, %v4911_v24 }
 0x3f5   :  { %2922 = vrot.lane.b32.xlu1 %v4887_v21, %s4697_s30 }
 0x463   :  { %v2914_v11 = vpop.permute.xlu1 %2913  ;;  %v2918_v16 = vpop.permute.xlu0 %2917 }
 0x464   :  { %v4897_v12 = vmul.f32 %v2914_v11, %v4887_v21  ;;  %v4901_v17 = vmul.f32 %v2918_v16, %v4887_v21 }
 0x467   :  { %v2923_v13 = vpop.permute.xlu1 %2922 }
 0x468   :  { %v2932_v14 = vrot.slane %v2923_v13, 2  ;;  %v2926_v15 = vmul.f32 %v2923_v13, %v4897_v12  ;;  %v2925_v26 = vmul.f32 %v2923_v13, %v4911_v24 }
 0x46a   :  { %2928 = vrot.lane.b32.xlu1 %v2926_v15, %s4694_s6  ;;  %v2934_v19 = vsel %vm2933_vm6, %v2923_v13, %v2932_v14 }
 0x46b   :  { %v2936_v23 = vmul.f32 %v2934_v19, %v4901_v17 }
 0x46d   :  { %2938 = vrot.lane.b32.xlu0 %v2936_v23, %s4687_s16 }
 0x46e   :  { %2959 = vrot.lane.b32.xlu1 %v4901_v17, %s4687_s16 }
 0x471   :  { %2949 = vrot.lane.b32.xlu0 %v4897_v12, %s4694_s6 }
 0x4dc   :  { %v2929_v1 = vpop.permute.xlu1 %2928 }
 0x4dd   :  { %v2931_v61 = vadd.f32 %v2929_v1, %v2925_v26 }
 0x4df   :  { %v2939_v29 = vpop.permute.xlu0 %2938 }
 0x4e0   :  { %v2941_v30 = vadd.f32 %v2939_v29, %v2931_v61  ;;  %v2960_v31 = vpop.permute.xlu1 %2959 }
 0x4e2   :  { %v2962_v32 = vmul.f32 %v2960_v31, %v2941_v30  ;;  %v2942_v35 = vmul.f32 %v2941_v30, %v4911_v24 }
 0x4e3   :  { %v2950_v33 = vpop.permute.xlu0 %2949 }
 0x4e4   :  { %v2952_v34 = vmul.f32 %v2950_v33, %v2941_v30  ;;  %2964 = vrot.lane.b32.xlu1 %v2962_v32, %s4698_s9 }
 0x4e6   :  { %2954 = vrot.lane.b32.xlu0 %v2952_v34, %s4699_s10 }
 0x4e8   :  { %2944 = vrot.lane.b32.xlu1 %v2942_v35, %s4700_s11 }
 0x556   :  { %v2965_v36 = vpop.permute.xlu1 %2964 }
 0x557   :  { %v2966_v37 = vrot.slane %v2965_v36, 6 }
 0x558   :  { %v2955_v38 = vpop.permute.xlu0 %2954 }
 0x559   :  { %v2968_v39 = vsel %vm2967_vm7, %v2966_v37, %v2965_v36  ;;  %v2957_v40 = vsub.f32 %v4887_v21, %v2955_v38 }
 0x55a   :  { %v2970_v43 = vsub.f32 %v4887_v21, %v2968_v39  ;;  %v2945_v47 = vpop.permute.xlu1 %2944 }
 0x55b   :  { %v2972_v41 = vmul.f32 %v2957_v40, %v2957_v40  ;;  %v2947_v45 = vsub.f32 %v4887_v21, %v2945_v47 }
 0x55c   :  { %v2978_v44 = vmul.f32 %v2970_v43, %v2970_v43 }
 0x55d   :  { %2974 = vrot.lane.b32.xlu1 %v2972_v41, %s4694_s6  ;;  %v2971_v20 = vmul.f32 %v2947_v45, %v2947_v45 }
 0x55e   :  { %2980 = vrot.lane.b32.xlu0 %v2978_v44, %s4687_s16 }
 0x5cf   :  { %v2975_v48 = vpop.permute.xlu1 %2974 }
 0x5d0   :  { %v2981_v51 = vpop.permute.xlu0 %2980  ;;  %v2977_v22 = vadd.f32 %v2975_v48, %v2971_v20 }
 0x5d1   :  { %v2982_v52 = vrot.slane %v2981_v51, 2 }
 0x5d3   :  { %v2984_v50 = vsel %vm2983_vm8, %v2981_v51, %v2982_v52  ;;  %vm3072_vm8 = vcmask 195584  }
 0x5d4   :  { %v2986_v53 = vadd.f32 %v2984_v50, %v2977_v22 }
 0x5d6   :  { %4610 = vrsqrt.f32 %v2986_v53 }
 0x5e3   :  { %v4611_v25 = vpop.eup %4610 }
 0x5e4   :  { %v2988_v54 = vmin.f32 %v4611_v25, 1e+12 }
 0x5e6   :  { %2991 = vrot.lane.b32.xlu1 %v2988_v54, %s4696_s29  ;;  %2995 = vrot.lane.b32.xlu0 %v2988_v54, %s4695_s28  ;;  %v2989_v28 = vmul.f32 %v2988_v54, %v2947_v45 }
 0x5ea   :  { %3041 = vrot.lane.b32.xlu1 %v2989_v28, %s4700_s11 }
 0x5ee   :  { %3021 = vrot.lane.b32.xlu1 %v2989_v28, %s4699_s10 }
 0x658   :  { %v2996_v55 = vpop.permute.xlu0 %2995  ;;  %v2992_v27 = vpop.permute.xlu1 %2991 }
 0x659   :  { %v2997_v56 = vrot.slane %v2996_v55, 6  ;;  %v2994_v60 = vmul.f32 %v2992_v27, %v2957_v40 }
 0x65b   :  { %v2999_v57 = vsel %vm2998_vm9, %v2997_v56, %v2996_v55  ;;  %v3052_v3 = vsub.f32 0.0, %v2994_v60  ;;  %vm3006_vm9 = vcmask 457728  }
 0x65c   :  { %v4928_v58 = vmul.f32 %v2999_v57, %v2970_v43  ;;  %v4934_v62 = vpop.permute.xlu1 %3041 }
 0x65d   :  { %v3044_v63 = vmul.f32 %v4934_v62, %v4897_v12 }
 0x65e   :  { %3025 = vrot.lane.b32.xlu0 %v4928_v58, %s4690_s22 }
 0x660   :  { %v3022_v35 = vpop.permute.xlu1 %3021 }
 0x661   :  { %v3024_v36 = vmul.f32 %v3022_v35, %v4901_v17 }
 0x662   :  { %3037 = vrot.lane.b32.xlu0 %v2994_v60, %s4702_s12 }
 0x666   :  { %3046 = vrot.lane.b32.xlu0 %v3044_v63, %s4694_s6 }
 0x66a   :  { %3054 = vrot.lane.b32.xlu0 %v3052_v3, %s4702_s12 }
 0x66e   :  { %3011 = vrot.lane.b32.xlu0 %v2994_v60, %s4700_s11 }
 0x672   :  { %3003 = vrot.lane.b32.xlu0 %v4928_v58, %s4702_s12 }
 0x6d0   :  { %v3026_v4 = vpop.permute.xlu0 %3025 }
 0x6d1   :  { %v3027_v5 = vrot.slane %v3026_v4, 2 }
 0x6d3   :  { %v3029_v6 = vsel %vm3028_vm10, %v3026_v4, %v3027_v5 }
 0x6d4   :  { %v3031_v49 = vmul.f32 %v3029_v6, %v4911_v24  ;;  %v3038_v0 = vpop.permute.xlu0 %3037 }
 0x6d5   :  { %v3040_v7 = vmul.f32 %v3038_v0, %v4911_v24  ;;  %vm3051_vm11 = vcmp.gt.f32.partialorder %v4911_v24, %v3038_v0  ;;  %v3066_v46 = vadd.f32 %v3058_v18, %v3038_v0  ;;  %v3059_v10 = vsub.f32 %v3058_v18, %v3038_v0 }
 0x6d6   :  { %3033 = vrot.lane.b32.xlu1 %v3031_v49, %s4695_s28  ;;  %v3062_v11 = vadd.f32 %v3061_v42, %v3038_v0  ;;  %v3064_v16 = vsub.f32 %v3061_v42, %v3038_v0  ;;  %vm3087_vm14 = vmxor %vm3051_vm11, %vm4703_vm13 }
 0x6d8   :  { %v3047_v8 = vpop.permute.xlu0 %3046 }
 0x6d9   :  { %v3049_v9 = vsub.f32 %v3040_v7, %v3047_v8  ;;  %v3076_v8 = vadd.f32 %v4934_v62, %v4897_v12 }
 0x6db   :  { %vm3050_vm12 = vcmp.lt.f32.partialorder %v3049_v9, 1e-06  ;;  %v3067_v13 = vadd.f32 %v3066_v46, %v3049_v9  ;;  %v3060_v14 = vsub.f32 %v3059_v10, %v3049_v9  ;;  %v3063_v15 = vsub.f32 %v3062_v11, %v3049_v9 }
 0x6dc   :  { %vm3084_vm15 = vmand %vm3050_vm12, %vm3051_vm11  ;;  %v3055_v19 = vpop.permute.xlu0 %3054  ;;  %v3065_v23 = vadd.f32 %v3064_v16, %v3049_v9 }
 0x6dd   :  { %vm3088_vm0 = vmand %vm3050_vm12, %vm3087_vm14  ;;  %vm3057_vm1 = vcmp.lt.f32.partialorder %v4911_v24, %v3055_v19  ;;  %v4954_v26 = vsel %vm3084_vm15, 1.0, %v4701_v59 }
 0x6de   :  { %vm3091_vm2 = vmxor %vm3050_vm12, %vm4703_vm13  ;;  %v4035_v1 = vsel %vm3088_vm0, 1.0, %v4701_v59  ;;  %v4959_v61 = vmul.f32 %v4954_v26, %v3060_v14 }
 0x6df   :  { %vm3092_vm4 = vmand %vm3091_vm2, %vm3057_vm1  ;;  %v3100_v29 = vmul.f32 %v4035_v1, %v3063_v15  ;;  %v4123_v34 = vpack.i.bf16 %v4954_v26, %v4035_v1 }
 0x6e0   :  { %v4036_v30 = vsel %vm3092_vm4, 1.0, %v4701_v59  ;;  %vm3095_vm5 = vmxor %vm3057_vm1, %vm4703_vm13  ;;  %v3012_v40 = vpop.permute.xlu0 %3011  ;;  %vm3124_vm13 = vcmask 588800  }
 0x6e1   :  { %vm3096_vm6 = vmand %vm3091_vm2, %vm3095_vm5  ;;  %v3101_v31 = vadd.f32 %v3100_v29, %v4959_v61  ;;  %v3102_v24 = vmul.f32 %v4036_v30, %v3065_v23  ;;  %v4118_v39 = vpack.i.bf16 %v4035_v1, %v4036_v30  ;;  %v3014_v43 = vmul.f32 %v3012_v40, %v4901_v17 }
 0x6e2   :  { %v4037_v32 = vsel %vm3096_vm6, 1.0, %v4701_v59 }
 0x6e3   :  { %3167 = vrot.lane.b32.xlu0 %v4037_v32, %s4698_s9  ;;  %v3103_v33 = vadd.f32 %v3102_v24, %v3101_v31  ;;  %v4976_v41 = vmul.f32 %v4037_v32, %v3067_v13 }
 0x6e4   :  { %v3004_v47 = vpop.permute.xlu0 %3003 }
 0x6e5   :  { %v3105_v44 = vadd.f32 %v4976_v41, %v3103_v33  ;;  %v3005_v20 = vrot.slane %v3004_v47, 2 }
 0x6e7   :  { %4124 = vrot.lane.b32.xlu0 %v4123_v34, %s4696_s29  ;;  %4612 = vrsqrt.f32 %v3105_v44  ;;  %v3083_v34 = vsub.f32 %v4897_v12, %v4934_v62 }
 0x6f4   :  { %v4613_v6 = vpop.eup %4612 }
 0x6f5   :  { %v3107_v42 = vmul.f32 0.5, %v4613_v6 }
 0x748   :  { %v3034_v37 = vpop.permute.xlu1 %3033 }
 0x749   :  { %v3036_v38 = vsub.f32 %v3024_v36, %v3034_v37 }
 0x74b   :  { %3069 = vrot.lane.b32.xlu1 %v3036_v38, %s4700_s11 }
 0x74f   :  { %4119 = vrot.lane.b32.xlu1 %v4118_v39, %s4698_s9 }
 0x753   :  { %3016 = vrot.lane.b32.xlu1 %v3014_v43, %s4694_s6 }
 0x755   :  { %v3168_v55 = vpop.permute.xlu0 %3167 }
 0x756   :  { %v3169_v0 = vrot.slane %v3168_v55, 6 }
 0x757   :  { %3077 = vrot.lane.b32.xlu1 %v4901_v17, %s4694_s6  ;;  %v3007_v17 = vsel %vm3006_vm9, %v3004_v47, %v3005_v20 }
 0x758   :  { %v3009_v56 = vmul.f32 %v3007_v17, %v4897_v12  ;;  %v3170_v9 = vsel %vm2967_vm7, %v3169_v0, %v3168_v55 }
 0x759   :  { %v4125_v49 = vpop.permute.xlu0 %4124 }
 0x75a   :  { %v4126_v7 = vunpack.i.l.bf16 %v4125_v49  ;;  %v4127_v13 = vunpack.i.h.bf16 %v4125_v49 }
 0x75b   :  { %3129 = vrot.lane.b32.xlu1 %v4036_v30, %s4696_s29 }
 0x75c   :  { %v3154_v46 = vmul.f32 %v4126_v7, %v3076_v8  ;;  %v3184_v1 = vmul.f32 %v4127_v13, %v3076_v8 }
 0x7bd   :  { %v3070_v45 = vpop.permute.xlu1 %3069 }
 0x7be   :  { %v3071_v48 = vrot.slane %v3070_v45, 6 }
 0x7c0   :  { %v3073_v52 = vsel %vm3072_vm8, %v3071_v48, %v3070_v45 }
 0x7c1   :  { %v4120_v51 = vpop.permute.xlu1 %4119  ;;  %v3082_v54 = vadd.f32 %v3073_v52, %v4928_v58  ;;  %v4990_v18 = vsub.f32 %v4928_v58, %v3073_v52 }
 0x7c2   :  { %v4122_v22 = vunpack.i.h.bf16 %v4120_v51  ;;  %v4121_v50 = vunpack.i.l.bf16 %v4120_v51 }
 0x7c3   :  { %v3172_v10 = vmul.f32 %v3170_v9, %v4990_v18 }
 0x7c4   :  { %v3215_v53 = vrot.slane %v4122_v22, 6  ;;  %v3192_v25 = vrot.slane %v4121_v50, 6 }
 0x7c5   :  { %v3017_v28 = vpop.permute.xlu1 %3016 }
 0x7c6   :  { %v3216_v27 = vsel %vm2967_vm7, %v3215_v53, %v4122_v22  ;;  %v3193_v57 = vsel %vm2967_vm7, %v3192_v25, %v4121_v50  ;;  %v3019_v3 = vsub.f32 %v3009_v56, %v3017_v28 }
 0x7c7   :  { %v3218_v60 = vmul.f32 %v3216_v27, %v3082_v54  ;;  %v3195_v63 = vmul.f32 %v3193_v57, %v3082_v54 }
 0x7c9   :  { %v3078_v4 = vpop.permute.xlu1 %3077  ;;  %3220 = vrot.lane.b32.xlu0 %v3218_v60, %s4702_s12  ;;  %3197 = vrot.lane.b32.xlu1 %v3195_v63, %s4702_s12 }
 0x7ca   :  { %v3081_v5 = vsub.f32 %v3019_v3, %v3078_v4  ;;  %v3080_v16 = vadd.f32 %v3078_v4, %v3019_v3 }
 0x7cc   :  { %v3119_v12 = vmul.f32 %v4126_v7, %v3081_v5 }
 0x7cd   :  { %3186 = vrot.lane.b32.xlu0 %v3100_v29, %s4696_s29  ;;  %3203 = vrot.lane.b32.xlu1 %v4037_v32, %s4696_s29  ;;  %v3130_v11 = vpop.permute.xlu1 %3129 }
 0x7ce   :  { %v3160_v58 = vmul.f32 %v3130_v11, %v3080_v16  ;;  %v3132_v62 = vmul.f32 %v3130_v11, %v3083_v34 }
 0x7d1   :  { %3227 = vrot.lane.b32.xlu0 %v3102_v24, %s4696_s29  ;;  %3208 = vrot.lane.b32.xlu1 %v3107_v42, %s4696_s29  ;;  %v3212_v24 = vmul.f32 %v4127_v13, %v3080_v16 }
 0x7d5   :  { %3156 = vrot.lane.b32.xlu0 %v3154_v46, %s4694_s6  ;;  %3174 = vrot.lane.b32.xlu1 %v3172_v10, %s4690_s22 }
 0x7d9   :  { %3162 = vrot.lane.b32.xlu0 %v3160_v58, %s4694_s6 }
 0x83b   :  { %v3221_v14 = vpop.permute.xlu0 %3220  ;;  %v3198_v15 = vpop.permute.xlu1 %3197 }
 0x83c   :  { %v3222_v19 = vrot.slane %v3221_v14, 2  ;;  %v3199_v23 = vrot.slane %v3198_v15, 2 }
 0x83e   :  { %v3223_v29 = vsel %vm3006_vm9, %v3221_v14, %v3222_v19  ;;  %v3200_v33 = vsel %vm3006_vm9, %v3198_v15, %v3199_v23 }
 0x83f   :  { %v3187_v30 = vpop.permute.xlu0 %3186  ;;  %v3204_v31 = vpop.permute.xlu1 %3203  ;;  %v3225_v37 = vadd.f32 %v3223_v29, %v3212_v24 }
 0x840   :  { %v3189_v32 = vadd.f32 %v3187_v30, %v3184_v1  ;;  %v3206_v36 = vmul.f32 %v3204_v31, %v3081_v5  ;;  %v3231_v39 = vmul.f32 %v3204_v31, %v3083_v34  ;;  %v4704_v30 = vmov 1.0  }
 0x842   :  { %v3202_v35 = vadd.f32 %v3200_v33, %v3189_v32 }
 0x843   :  { %v3228_v38 = vpop.permute.xlu0 %3227  ;;  %v3209_v44 = vpop.permute.xlu1 %3208 }
 0x844   :  { %v3230_v40 = vadd.f32 %v3228_v38, %v3225_v37  ;;  %v3207_v43 = vadd.f32 %v3206_v36, %v3202_v35 }
 0x846   :  { %v3232_v47 = vadd.f32 %v3231_v39, %v3230_v40  ;;  %v5005_v45 = vmul.f32 %v3209_v44, %v3207_v43 }
 0x847   :  { %v3157_v52 = vpop.permute.xlu0 %3156  ;;  %v3175_v22 = vpop.permute.xlu1 %3174 }
 0x848   :  { %v5007_v48 = vmul.f32 %v3232_v47, %v3209_v44  ;;  %v3235_v20 = vmul.f32 %v5005_v45, %v5005_v45  ;;  %v3159_v17 = vadd.f32 %v3157_v52, %v4959_v61  ;;  %v3176_v53 = vrot.slane %v3175_v22, 2 }
 0x84a   :  { %v3241_v51 = vmul.f32 %v5007_v48, %v5007_v48  ;;  %3237 = vrot.lane.b32.xlu1 %v3235_v20, %s4694_s6  ;;  %v3177_v54 = vsel %vm3028_vm10, %v3175_v22, %v3176_v53 }
 0x84b   :  { %v3163_v50 = vpop.permute.xlu0 %3162 }
 0x84c   :  { %3243 = vrot.lane.b32.xlu0 %v3241_v51, %s4694_s6  ;;  %v3165_v25 = vadd.f32 %v3163_v50, %v3159_v17 }
 0x84e   :  { %3109 = vrot.lane.b32.xlu1 %v4954_v26, %s4698_s9  ;;  %v3179_v26 = vadd.f32 %v3177_v54, %v3165_v25 }
 0x850   :  { %3121 = vrot.lane.b32.xlu0 %v3119_v12, %s4699_s10  ;;  %v5024_v28 = vmul.f32 %v3179_v26, %v3107_v42 }
 0x852   :  { %3134 = vrot.lane.b32.xlu1 %v3132_v62, %s4699_s10  ;;  %v3234_v55 = vmul.f32 %v5024_v28, %v5024_v28 }
 0x854   :  { %3141 = vrot.lane.b32.xlu0 %v4976_v41, %s4698_s9 }
 0x856   :  { %3148 = vrot.lane.b32.xlu1 %v3107_v42, %s4698_s9 }
 0x8bc   :  { %v3238_v56 = vpop.permute.xlu1 %3237 }
 0x8bd   :  { %v3240_v27 = vadd.f32 %v3238_v56, %v3234_v55 }
 0x8be   :  { %v3244_v41 = vpop.permute.xlu0 %3243 }
 0x8bf   :  { %v5028_v57 = vadd.f32 %v3244_v41, %v3240_v27 }
 0x8c0   :  { %v3110_v5 = vpop.permute.xlu1 %3109 }
 0x8c1   :  { %4614 = vrsqrt.f32 %v5028_v57  ;;  %vm3249_vm11 = vcmp.eq.f32.partialorder %v5028_v57, inf  ;;  %v3252_v63 = vand.u32 2147483648, %v5028_v57  ;;  %vm3251_vm12 = vcmp.eq.f32.partialorder %v5028_v57, 0.0 }
 0x8c2   :  { %v3111_v6 = vrot.slane %v3110_v5, 6  ;;  %v3122_v49 = vpop.permute.xlu0 %3121 }
 0x8c3   :  { %v3123_v7 = vrot.slane %v3122_v49, 6 }
 0x8c4   :  { %v3112_v0 = vsel %vm2967_vm7, %v3111_v6, %v3110_v5  ;;  %v3135_v42 = vpop.permute.xlu1 %3134  ;;  %v3337_v5 = vld [vmem:[%s5122_s7 + $0x10] sm:$0xff]  ;;  %v3336_v6 = vld [vmem:[%s5122_s7 + $0x8] sm:$0xff] }
 0x8c5   :  { %v3114_v8 = vmul.f32 %v3112_v0, %v4990_v18  ;;  %v3125_v9 = vsel %vm3124_vm13, %v3123_v7, %v3122_v49  ;;  %v3136_v46 = vrot.slane %v3135_v42, 6  ;;  %v4705_v7 = vmov 0.7853982   ;;  %4068 = vmatpush3.msra.mxu1 %v3337_v5 }
 0x8c6   :  { %v3142_v10 = vpop.permute.xlu0 %3141  ;;  %4069 = vmatprep.subr.mxu1 %v4701_v59 }
 0x8c7   :  { %v3127_v11 = vadd.f32 %v3125_v9, %v3114_v8  ;;  %v3137_v16 = vsel %vm3124_vm13, %v3136_v46, %v3135_v42  ;;  %v3143_v58 = vrot.slane %v3142_v10, 6  ;;  %v3335_v9 = vld [vmem:[%s5122_s7] sm:$0xff]  ;;  %4070 = vmatpush3.msra.mxu1 %v3336_v6  ;;  %vm4706_vm13 = vmmov 0  }
 0x8c8   :  { %v3149_v13 = vpop.permute.xlu1 %3148  ;;  %4073 = vmatprep.mubr.msk.f32.mxu1 %vm4706_vm13, %v4701_v59  ;;  %4071 = vmatprep.subr.mxu1 %v4701_v59 }
 0x8c9   :  { %v3139_v14 = vadd.f32 %v3137_v16, %v3127_v11  ;;  %v3144_v15 = vsel %vm2967_vm7, %v3143_v58, %v3142_v10  ;;  %v3150_v19 = vrot.slane %v3149_v13, 6  ;;  %4064 = vmatprep.mubr.msk.f32.mxu0 %vm4706_vm13, %v4701_v59  ;;  %4072 = vmatpush3.msra.mxu1 %v3335_v9 }
 0x8ca   :  { %4085 = vmatprep.subr.mxu1 %v4701_v59 }
 0x8cb   :  { %v3146_v23 = vadd.f32 %v3144_v15, %v3139_v14  ;;  %v3151_v1 = vsel %vm2967_vm7, %v3150_v19, %v3149_v13 }
 0x8cd   :  { %v3153_v29 = vmul.f32 %v3151_v1, %v3146_v23 }
 0x8ce   :  { %v4615_v60 = vpop.eup %4614 }
 0x8cf   :  { %3315 = vrot.lane.b32.xlu1 %v4615_v60, %s4698_s9  ;;  %v3248_v61 = vmul.f32 %v4615_v60, %v5028_v57  ;;  %vm3254_vm14 = vcmp.lt.f32.partialorder %v3153_v29, 0.0 }
 0x8d0   :  { %v3255_v31 = vsel %vm3254_vm14, -1.0, %v4704_v30  ;;  %vm3312_vm14 = vcmp.gt.f32.partialorder %v5028_v57, 0.0  ;;  %v3340_v30 = vld [vmem:[%s5122_s7 + $0x28] sm:$0xff] }
 0x8d1   :  { %v3250_v3 = vsel %vm3249_vm11, %v5028_v57, %v3248_v61  ;;  %v3263_v32 = vmul.f32 %v3255_v31, %v3153_v29  ;;  %4059 = vmatpush3.msra.mxu0 %v3340_v30  ;;  %v3583_v57 = vld [vmem:[%s5122_s7 + $0x50] sm:$0x3] }
 0x8d2   :  { %v3253_v4 = vsel %vm3251_vm12, %v3252_v63, %v3250_v3  ;;  %4060 = vmatprep.subr.mxu0 %v4701_v59 }
 0x8d3   :  { %3257 = vrot.lane.b32.xlu0 %v3253_v4, %s4698_s9  ;;  %v3264_v35 = vand.u32 2147483647, %v3263_v32  ;;  %vm3294_vm0 = vcmp.lt.s32.totalorder %v3263_v32, 0  ;;  %vm3291_vm2 = vcmp.lt.f32.partialorder %v3263_v32, 0.0  ;;  %vm3298_vm6 = vcmp.ne.f32.partialorder %v3263_v32, %v3263_v32 }
 0x8d4   :  { %v3295_v3 = vsel %vm3294_vm0, 3.1415927, %v4701_v59  ;;  %v3303_v42 = vsel %vm3291_vm2, 2.3561945, %v4705_v7 }
 0x8d5   :  { %vm3304_vm11 = vcmp.eq.s32.totalorder %v3264_v35, inf }
 0x941   :  { %v3316_v49 = vpop.permute.xlu1 %3315 }
 0x942   :  { %v3317_v11 = vrot.slane %v3316_v49, 6 }
 0x944   :  { %v3318_v13 = vsel %vm2967_vm7, %v3317_v11, %v3316_v49 }
 0x945   :  { %v3258_v24 = vpop.permute.xlu0 %3257 }
 0x946   :  { %v3259_v18 = vrot.slane %v3258_v24, 6 }
 0x948   :  { %v3260_v33 = vsel %vm2967_vm7, %v3259_v18, %v3258_v24  ;;  %v3582_v24 = vld [vmem:[%s5122_s7 + $0x48] sm:$0xff] }
 0x949   :  { %v3262_v34 = vmul.f32 %v3260_v33, %v3255_v31  ;;  %v3339_v31 = vld [vmem:[%s5122_s7 + $0x20] sm:$0xff] }
 0x94a   :  { %4061 = vmatpush3.msra.mxu0 %v3339_v31 }
 0x94b   :  { %v3265_v36 = vand.u32 2147483647, %v3262_v34  ;;  %vm3299_vm1 = vcmp.ne.f32.partialorder %v3262_v34, %v3262_v34  ;;  %vm3296_vm5 = vcmp.eq.f32.partialorder %v3262_v34, 0.0  ;;  %v3309_v10 = vand.u32 2147483648, %v3262_v34  ;;  %4062 = vmatprep.subr.mxu0 %v4701_v59 }
 0x94c   :  { %vm3300_vm9 = vmor %vm3298_vm6, %vm3299_vm1 }
 0x94d   :  { %v3267_v37 = vmax.f32 %v3264_v35, %v3265_v36  ;;  %v3266_v38 = vmin.f32 %v3264_v35, %v3265_v36  ;;  %vm3288_vm15 = vcmp.gt.f32.partialorder %v3265_v36, %v3264_v35  ;;  %vm3305_vm4 = vcmp.eq.s32.totalorder %v3265_v36, inf }
 0x94e   :  { %vm3306_vm12 = vmand %vm3304_vm11, %vm3305_vm4  ;;  %v3590_v36 = vrot.slane %v4887_v21, %v4883_v2  ;;  %v3496_v21 = vld [vmem:[%s5122_s7 + $0x30] sm:$0xff] }
 0x94f   :  { %4616 = vrcp.f32 %v3267_v37 }
 0x950   :  { %v3591_v37 = vcombine.high %v3590_v36, %v3590_v36 }
 0x95c   :  { %v4617_v39 = vpop.eup %4616 }
 0x95d   :  { %v3269_v40 = vmul.f32 %v4617_v39, %v3266_v38 }
 0x95f   :  { %v3270_v43 = vmul.f32 %v3269_v40, %v3269_v40 }
 0x961   :  { %v3271_v44 = vmul.f32 0.002785687, %v3270_v43 }
 0x963   :  { %v3272_v47 = vadd.f32 -0.015866, %v3271_v44 }
 0x965   :  { %v3273_v20 = vmul.f32 %v3272_v47, %v3270_v43 }
 0x967   :  { %v3274_v51 = vadd.f32 0.04247222, %v3273_v20 }
 0x969   :  { %v3275_v12 = vmul.f32 %v3274_v51, %v3270_v43 }
 0x96b   :  { %v3276_v62 = vadd.f32 -0.074975304, %v3275_v12 }
 0x96d   :  { %v3277_v52 = vmul.f32 %v3276_v62, %v3270_v43 }
 0x96f   :  { %v3278_v22 = vadd.f32 0.1064488, %v3277_v52 }
 0x971   :  { %v3279_v50 = vmul.f32 %v3278_v22, %v3270_v43 }
 0x973   :  { %v3280_v17 = vadd.f32 -0.14207031, %v3279_v50 }
 0x975   :  { %v3281_v53 = vmul.f32 %v3280_v17, %v3270_v43 }
 0x977   :  { %v3282_v25 = vadd.f32 0.19993454, %v3281_v53 }
 0x979   :  { %v3283_v54 = vmul.f32 %v3282_v25, %v3270_v43 }
 0x97b   :  { %v3284_v26 = vadd.f32 -0.33333147, %v3283_v54 }
 0x97d   :  { %v3285_v55 = vmul.f32 %v3284_v26, %v3270_v43 }
 0x97f   :  { %v3286_v56 = vmul.f32 %v3285_v55, %v3269_v40 }
 0x981   :  { %v3287_v27 = vadd.f32 %v3286_v56, %v3269_v40 }
 0x983   :  { %v3289_v41 = vsub.f32 1.5707964, %v3287_v27 }
 0x985   :  { %v3290_v60 = vsel %vm3288_vm15, %v3289_v41, %v3287_v27 }
 0x986   :  { %v3292_v61 = vsub.f32 3.1415927, %v3290_v60 }
 0x988   :  { %v3293_v63 = vsel %vm3291_vm2, %v3292_v61, %v3290_v60 }
 0x989   :  { %v3297_v4 = vsel %vm3296_vm5, %v3295_v3, %v3293_v63 }
 0x98a   :  { %v3301_v0 = vsel %vm3300_vm9, nan, %v3297_v4 }
 0x98b   :  { %v3307_v8 = vsel %vm3306_vm12, %v3303_v42, %v3301_v0 }
 0x98c   :  { %v3308_v46 = vand.u32 2147483647, %v3307_v8 }
 0x98e   :  { %v3310_v16 = vor.u32 %v3309_v10, %v3308_v46 }
 0x990   :  { %v3311_v58 = vmul.f32 2.0, %v3310_v16 }
 0x992   :  { %v3320_v14 = vmul.f32 %v3318_v13, %v3311_v58 }
 0x994   :  { %3322 = vrot.lane.b32.xlu0 %v3320_v14, %s4690_s22 }
 0xa06   :  { %v3323_v15 = vpop.permute.xlu0 %3322 }
 0xa07   :  { %v3324_v19 = vrot.slane %v3323_v15, 2 }
 0xa09   :  { %v3325_v23 = vsel %vm3028_vm10, %v3323_v15, %v3324_v19 }
 0xa0a   :  { %v3327_v1 = vsel %vm3312_vm14, %v3325_v23, 2.0 }
 0xa0b   :  { %3330 = vrot.lane.b32.xlu1 %v3327_v1, %s4696_s29  ;;  %v3328_v29 = vmul.f32 %v3327_v1, %v5024_v28  ;;  %v3338_v28 = vld [vmem:[%s5122_s7 + $0x18] sm:$0xff] }
 0xa0c   :  { %4063 = vmatpush3.msra.mxu0 %v3338_v28 }
 0xa0d   :  { %4074 = vmatmul.mubr.msk.f32.vlgmr.msra.gmra.mxu1 %vm3072_vm8, %v3328_v29  ;;  %4076 = vmatprep.subr.mxu0 %v4701_v59 }
 0xa0e   :  { %4089 = vmatprep.mubr.msk.f32.mxu1 %vm4706_vm13, %v4701_v59  ;;  %4086 = vmatpush3.msk.msra.mxu1 %vm2894_vm3, %v3583_v57  ;;  %vm3594_vm3 = vcmask 80896  }
 0xa0f   :  { %4087 = vmatprep.subr.mxu1 %v4701_v59 }
 0xa10   :  { %4088 = vmatpush3.msra.mxu1 %v3582_v24 }
 0xa7d   :  { %v3331_v18 = vpop.permute.xlu1 %3330 }
 0xa7e   :  { %v3333_v32 = vmul.f32 %v3331_v18, %v5005_v45  ;;  %v3334_v33 = vmul.f32 %v3331_v18, %v5007_v48  ;;  %v3498_v45 = vld [vmem:[%s5122_s7 + $0x40] sm:$0xff] }
 0xa80   :  { %v3348_v34 = vrot.slane %v3333_v32, %v4883_v2  ;;  %v3506_v35 = vrot.slane %v3334_v33, %v4883_v2  ;;  %v3497_v2 = vld [vmem:[%s5122_s7 + $0x38] sm:$0xff] }
 0xa82   :  { %3507 = vrot.lane.b32.xlu1 %v3506_v35, %s4694_s6  ;;  %3349 = vrot.lane.b32.xlu0 %v3348_v34, %s4694_s6 }
 0xa86   :  { %3592 = vrot.lane.b32.xlu0 %v3591_v37, %s4707_s25 }
 0xacd   :  { %v3492_v38 = vpop.f32.mrf.mxu1 }
 0xacf   :  { %v4075_v39 = vpop.f32.mrf.mxu1 }
 0xaf4   :  { %v3350_v48 = vpop.permute.xlu0 %3349  ;;  %v3508_v43 = vpop.permute.xlu1 %3507 }
 0xaf5   :  { %4065 = vmatmul.mubr.msk.f32.vlgmr.msra.gmra.mxu0 %vm3072_vm8, %v3350_v48 }
 0xaf6   :  { %4077 = vmatpush3.msra.mxu0 %v3498_v45  ;;  %4082 = vmatprep.mubr.msk.f32.mxu0 %vm4706_vm13, %v4701_v59 }
 0xaf7   :  { %4078 = vmatprep.subr.mxu0 %v4701_v59 }
 0xaf8   :  { %4079 = vmatpush3.msra.mxu0 %v3497_v2  ;;  %v3593_v40 = vpop.permute.xlu0 %3592 }
 0xaf9   :  { %4080 = vmatprep.subr.mxu0 %v4701_v59  ;;  %4090 = vmatmul.mubr.msk.f32.vlgmr.msra.gmra.mxu1 %vm3594_vm3, %v3593_v40 }
 0xafa   :  { %4081 = vmatpush3.msra.mxu0 %v3496_v21 }
 0xafb   :  { %4083 = vmatmul.mubr.msk.f32.vlgmr.msra.gmra.mxu0 %vm3072_vm8, %v3508_v43 }
 0xbb5   :  { %v3419_v44 = vpop.f32.mrf.mxu0 }
 0xbb6   :  { %v3493_v51 = vadd.f32 %v3492_v38, %v3419_v44 }
 0xbb7   :  { %v4066_v47 = vpop.f32.mrf.mxu0 }
 0xbb9   :  { %v3666_v20 = vpop.f32.mrf.mxu1 }
 0xbbb   :  { %v3577_v12 = vpop.f32.mrf.mxu0  ;;  %v4091_v62 = vpop.f32.mrf.mxu1 }
 0xbbc   :  { %v3581_v52 = vadd.f32 %v3577_v12, %v3493_v51 }
 0xbbd   :  { %v4084_v22 = vpop.f32.mrf.mxu0 }
 0xbbe   :  { %v3670_v50 = vadd.f32 %v3666_v20, %v3581_v52 }
 0xbc0   :  { %3671 = vst [vmem:[%s5123_s8] sm:$0x3] %v3670_v50 }
 0xbc1   :  { %3676 = vsyncpa [#allocation4], 1 }
 0xbc2   :  { %3677 = vsyncpa [#allocation6], 1 }

// kernel: _lambda_.1
= control target key start
LH: loop header
LB: loop body
LE: loop exit
PB: predicated region body
PF: predicated region fallthrough
CT: control target
= control target key end

     0   :  { %13 = vsyncpa [#allocation4], 0  ;;  %s5115_s0 = inlined_call_operand.vmem [shape: f32[2,63], index: 0, kind: input, shape index: {}]   ;;  %s5116_s1 = inlined_call_operand.hbm [shape: bf16[63,1024], index: 1, kind: input, shape index: {}]   ;;  %s5117_s2 = inlined_call_operand.vmem [shape: f32[1,1024], index: 2, kind: input, shape index: {}]   ;;  %s5118_s3 = inlined_call_operand.hbm [shape: bf16[1024,512], index: 3, kind: input, shape index: {}]   ;;  %s5119_s4 = inlined_call_operand.vmem [shape: f32[1,512], index: 4, kind: input, shape index: {}]   ;;  %s5120_s5 = inlined_call_operand.hbm [shape: bf16[512,154], index: 5, kind: input, shape index: {}]   ;;  %s5121_s6 = inlined_call_operand.vmem [shape: f32[1,154], index: 6, kind: input, shape index: {}]   ;;  %s5122_s7 = inlined_call_operand.vmem [shape: f32[82,128], index: 7, kind: input, shape index: {}]   ;;  %s5123_s8 = inlined_call_operand.vmem [shape: f32[2,128], index: 8, kind: output, shape index: {}]  }
   0x1   :  { %14 = vsyncpa [#allocation6], 0  ;;  %s4682_s27 = smov [#allocation5]  }
   0x2   :  { %s36_s28 = sshll.u32 %s4682_s27, 4  ;;  %s37_s28 = int_to_ptr.vmem [resolvable:$true] %s36_s28 }
   0x3   :  { %s4626_s29 = scalar_lea.vmem %s37_s28, 32768  ;;  %p4631_p1 = scmp.lt.s32.totalorder %s37_s28, %s37_s28 }
   0x4   :  { %p4627_p0 = scmp.ne.s32.totalorder %s37_s28, %s4626_s29  ;;  %p4632_p2 = scmp.lt.s32.totalorder %s4626_s29, %s4626_s29 }
   0x6   :  { %p4633_p3 = por %p4632_p2, %p4631_p1 }
   0x8   :  { %p4634_p4 = pnand %p4633_p3, %p4627_p0 }
   0xa   :  { %4637 = shalt.err (!%p4634_p4)
}
   0xb   :  { %s4683_s30 = smov 256   ;;  %s4684_s9 = smov 16  }
   0xc   :  { %42 = dma.hbm_to_vmem [thread:$0]  %s5118_s3, 32768, %s37_s28, [#allocation6], %s4683_s30, %s4683_s30, %s4684_s9  }
   0xd   :  { %s4685_s12 = smov [#allocation3]  }
   0xe   :  { %s22_s13 = sshll.u32 %s4685_s12, 4  ;;  %s23_s13 = int_to_ptr.vmem [resolvable:$true] %s22_s13 }
   0xf   :  { %s4646_s14 = scalar_lea.vmem %s23_s13, 4096  ;;  %p4651_p6 = scmp.lt.s32.totalorder %s23_s13, %s23_s13 }
  0x10   :  { %p4647_p5 = scmp.ne.s32.totalorder %s23_s13, %s4646_s14  ;;  %p4652_p7 = scmp.lt.s32.totalorder %s4646_s14, %s4646_s14 }
  0x12   :  { %p4653_p8 = por %p4652_p7, %p4651_p6 }
  0x14   :  { %p4654_p9 = pnand %p4653_p8, %p4647_p5 }
  0x16   :  { %4657 = shalt.err (!%p4654_p9)
}
  0x17   :  { %s4686_s15 = smov 512   ;;  %s4687_s16 = smov 32  }
  0x18   :  { %28 = dma.hbm_to_vmem [thread:$0]  %s5116_s1, 4096, %s23_s13, [#allocation4], %s4686_s15, %s4686_s15, %s4687_s16  }
  0x19   :  { %s4688_s19 = smov [#allocation7]  }
  0x1a   :  { %s50_s20 = sshll.u32 %s4688_s19, 4  ;;  %s51_s20 = int_to_ptr.vmem [resolvable:$true] %s50_s20 }
  0x1b   :  { %s4666_s3 = scalar_lea.vmem %s51_s20, 8192  ;;  %p4671_p11 = scmp.lt.s32.totalorder %s51_s20, %s51_s20 }
  0x1c   :  { %p4667_p10 = scmp.ne.s32.totalorder %s51_s20, %s4666_s3  ;;  %p4672_p12 = scmp.lt.s32.totalorder %s4666_s3, %s4666_s3 }
  0x1e   :  { %p4673_p13 = por %p4672_p12, %p4671_p11 }
  0x20   :  { %p4674_p0 = pnand %p4673_p13, %p4667_p10 }
  0x22   :  { %4677 = shalt.err (!%p4674_p0)
}
  0x23   :  { %s4689_s21 = smov 128   ;;  %s4690_s22 = smov 8  }
  0x24   :  { %56 = dma.hbm_to_vmem [thread:$0]  %s5120_s5, 8192, %s51_s20, [#allocation6], %s4689_s21, %s4689_s21, %s4690_s22  }
  0x25   :  { %4678 = dma.done.wait [#allocation4], 4096  }
  0x26   :  { %4679 = vsyncadd [#allocation4], 4294963200 }
  0x27   :  { %4680 = dma.done.wait [#allocation6], 40960  }
  0x28   :  { %4681 = vsyncadd [#allocation6], 4294926336  ;;  %vm303_vm0 = vcmask 1046528   ;;  %v4691_v0 = vmov 0   ;;  %vm304_vm1 = vcmask 1047552   ;;  %v4692_v1 = vmov 65535  }
  0x29   :  { %363 = vmatprep.mubr.bf16.mxu0 %v4691_v0  ;;  %404 = vmatprep.mubr.bf16.mxu1 %v4691_v0  ;;  %v305_v2 = vsel %vm303_vm0, 4294967295, %v4692_v1  ;;  %v97_v3 = vld [vmem:[#allocation3 + $0xc0] sm:$0xff]  ;;  %v98_v6 = vld [vmem:[#allocation3 + $0xc8] sm:$0xff]  ;;  %v99_v33 = vld [vmem:[#allocation3 + $0xd0] sm:$0xff]  ;;  %vm299_vm2 = vcmask 515072   ;;  %vm2894_vm3 = vcmask 1041408  }
  0x2a   :  { %v101_v4 = vld [vmem:[#allocation3 + $0xe0] sm:$0xff]  ;;  %v4766_v5 = vsel %vm304_vm1, %v305_v2, 0  ;;  %v102_v8 = vld [vmem:[#allocation3 + $0xe8] sm:$0xff]  ;;  %v103_v34 = vld [vmem:[#allocation3 + $0xf0] sm:$0xff]  ;;  %vm2895_vm4 = vcmask 207874   ;;  %s4695_s28 = smov 96  }
  0x2b   :  { %v3703_v7 = vcombine.high %v97_v3, %v101_v4  ;;  %v3702_v9 = vcombine.low %v97_v3, %v101_v4  ;;  %v89_v10 = vld [vmem:[#allocation3 + $0x80] sm:$0xff]  ;;  %v3705_v12 = vcombine.high %v98_v6, %v102_v8  ;;  %v3704_v13 = vcombine.low %v98_v6, %v102_v8  ;;  %v90_v14 = vld [vmem:[#allocation3 + $0x88] sm:$0xff]  ;;  %v100_v36 = vld [vmem:[#allocation3 + $0xd8] sm:$0xff]  ;;  %s4696_s29 = smov 48   ;;  %s4697_s30 = smov 104  }
  0x2c   :  { %v93_v11 = vld [vmem:[#allocation3 + $0xa0] sm:$0xff]  ;;  %v94_v15 = vld [vmem:[#allocation3 + $0xa8] sm:$0xff]  ;;  %v104_v37 = vld [vmem:[#allocation3 + $0xf8] sm:$0xff]  ;;  %v3707_v41 = vcombine.high %v99_v33, %v103_v34  ;;  %v3706_v46 = vcombine.low %v99_v33, %v103_v34  ;;  %vm2933_vm6 = vcmask 850944   ;;  %s4698_s9 = smov 120   ;;  %s4699_s10 = smov 72  }
  0x2d   :  { %v311_v16 = vand.u32 %v3703_v7, %v4766_v5  ;;  %v308_v17 = vand.u32 %v3702_v9, %v4766_v5  ;;  %v3695_v18 = vcombine.high %v89_v10, %v93_v11  ;;  %v317_v19 = vand.u32 %v3705_v12, %v4766_v5  ;;  %v81_v22 = vld [vmem:[#allocation3 + $0x40] sm:$0xff]  ;;  %v82_v24 = vld [vmem:[#allocation3 + $0x48] sm:$0xff]  ;;  %v71_v45 = vld [vmem:[%s5115_s0] sm:$0x3]  ;;  %s4700_s11 = smov 24   ;;  %s4702_s12 = smov 56  }
  0x2e   :  { %v314_v20 = vand.u32 %v3704_v13, %v4766_v5  ;;  %v3697_v21 = vcombine.high %v90_v14, %v94_v15  ;;  %v85_v23 = vld [vmem:[#allocation3 + $0x60] sm:$0xff]  ;;  %v86_v25 = vld [vmem:[#allocation3 + $0x68] sm:$0xff]  ;;  %v3694_v26 = vcombine.low %v89_v10, %v93_v11  ;;  %v3696_v27 = vcombine.low %v90_v14, %v94_v15  ;;  %v91_v50 = vld [vmem:[#allocation3 + $0x90] sm:$0xff]  ;;  %s4707_s25 = smov 112  }
  0x2f   :  { %339 = vmatprep.subr.bf16.mxu0 %v311_v16  ;;  %380 = vmatprep.subr.bf16.mxu1 %v317_v19  ;;  %v3687_v28 = vcombine.high %v81_v22, %v85_v23  ;;  %v73_v29 = vld [vmem:[#allocation3] sm:$0xff]  ;;  %v3689_v31 = vcombine.high %v82_v24, %v86_v25  ;;  %v74_v32 = vld [vmem:[#allocation3 + $0x8] sm:$0xff]  ;;  %v3686_v38 = vcombine.low %v81_v22, %v85_v23  ;;  %v95_v52 = vld [vmem:[#allocation3 + $0xb0] sm:$0xff]  ;;  %vm2967_vm7 = vcmask 982016  }
  0x30   :  { %340 = vmatpush1.bf16.msra.mxu0 %v308_v17  ;;  %381 = vmatpush1.bf16.msra.mxu1 %v314_v20  ;;  %v77_v30 = vld [vmem:[#allocation3 + $0x20] sm:$0xff]  ;;  %v78_v35 = vld [vmem:[#allocation3 + $0x28] sm:$0xff]  ;;  %v3688_v39 = vcombine.low %v82_v24, %v86_v25  ;;  %v3709_v43 = vcombine.high %v100_v36, %v104_v37  ;;  %v323_v48 = vand.u32 %v3707_v41, %v4766_v5  ;;  %v92_v54 = vld [vmem:[#allocation3 + $0x98] sm:$0xff]  ;;  %vm2983_vm8 = vcmask 261120  }
  0x31   :  { %341 = vmatprep.subr.bf16.mxu0 %v3695_v18  ;;  %382 = vmatprep.subr.bf16.mxu1 %v3697_v21  ;;  %v3679_v40 = vcombine.high %v73_v29, %v77_v30  ;;  %v3681_v42 = vcombine.high %v74_v32, %v78_v35  ;;  %v3678_v44 = vcombine.low %v73_v29, %v77_v30  ;;  %v96_v55 = vld [vmem:[#allocation3 + $0xb8] sm:$0xff]  ;;  %v83_v59 = vld [vmem:[#allocation3 + $0x50] sm:$0xff]  ;;  %vm2896_vm5 = vmor %vm2895_vm4, %vm2894_vm3  ;;  %vm2998_vm9 = vcmask 785408  }
  0x32   :  { %v3680_v47 = vcombine.low %v74_v32, %v78_v35  ;;  %v3708_v49 = vcombine.low %v100_v36, %v104_v37  ;;  %v329_v51 = vand.u32 %v3709_v43, %v4766_v5  ;;  %v72_v53 = vpack.c.bf16 %v71_v45, %v71_v45  ;;  %v87_v61 = vld [vmem:[#allocation3 + $0x70] sm:$0xff]  ;;  %v84_v62 = vld [vmem:[#allocation3 + $0x58] sm:$0xff] }
  0x33   :  { %v320_v56 = vand.u32 %v3706_v46, %v4766_v5  ;;  %v3699_v58 = vcombine.high %v91_v50, %v95_v52  ;;  %v3701_v60 = vcombine.high %v92_v54, %v96_v55  ;;  %v88_v63 = vld [vmem:[#allocation3 + $0x78] sm:$0xff]  ;;  %v3698_v1 = vcombine.low %v91_v50, %v95_v52  ;;  %v75_v4 = vld [vmem:[#allocation3 + $0x10] sm:$0xff] }
  0x34   :  { %342 = vmatpush1.bf16.msra.mxu0 %v3694_v26  ;;  %383 = vmatpush1.bf16.msra.mxu1 %v3696_v27  ;;  %v326_v57 = vand.u32 %v3708_v49, %v4766_v5  ;;  %v3700_v2 = vcombine.low %v92_v54, %v96_v55  ;;  %v3691_v3 = vcombine.high %v83_v59, %v87_v61  ;;  %v79_v6 = vld [vmem:[#allocation3 + $0x30] sm:$0xff]  ;;  %v76_v7 = vld [vmem:[#allocation3 + $0x18] sm:$0xff]  ;;  %vm3028_vm10 = vcmask 64512  }
  0x35   :  { %343 = vmatprep.subr.bf16.mxu0 %v3687_v28  ;;  %384 = vmatprep.subr.bf16.mxu1 %v3689_v31  ;;  %v3693_v5 = vcombine.high %v84_v62, %v88_v63  ;;  %v80_v8 = vld [vmem:[#allocation3 + $0x38] sm:$0xff]  ;;  %v3690_v9 = vcombine.low %v83_v59, %v87_v61  ;;  %v3692_v10 = vcombine.low %v84_v62, %v88_v63  ;;  %v4130_v15 = vld [vmem:[#allocation5 + $0xe4] ss:$16 sps:$4 sm:$0xff]   ;;  %v4128_v17 = vld [vmem:[#allocation5 + $0xe0] ss:$16 sps:$4 sm:$0xff]   ;;  %vm4703_vm13 = vmmov 1  }
  0x36   :  { %v3683_v11 = vcombine.high %v75_v4, %v79_v6  ;;  %v3685_v12 = vcombine.high %v76_v7, %v80_v8  ;;  %v3682_v13 = vcombine.low %v75_v4, %v79_v6  ;;  %v3684_v14 = vcombine.low %v76_v7, %v80_v8  ;;  %v4133_v16 = vld [vmem:[#allocation5 + $0x2e4] ss:$16 sps:$4 sm:$0xff]   ;;  %v4131_v18 = vld [vmem:[#allocation5 + $0x2e0] ss:$16 sps:$4 sm:$0xff]  }
  0x37   :  { %v4139_v19 = vld [vmem:[#allocation5 + $0x2c4] ss:$16 sps:$4 sm:$0xff]   ;;  %v4134_v20 = vld [vmem:[#allocation5 + $0xc0] ss:$16 sps:$4 sm:$0xff]  }
  0x38   :  { %344 = vmatpush1.bf16.msra.mxu0 %v3686_v38  ;;  %385 = vmatpush1.bf16.msra.mxu1 %v3688_v39  ;;  %v4137_v21 = vld [vmem:[#allocation5 + $0x2c0] ss:$16 sps:$4 sm:$0xff]   ;;  %v4142_v22 = vld [vmem:[#allocation5 + $0xa4] ss:$16 sps:$4 sm:$0xff]  }
  0x39   :  { %345 = vmatprep.subr.bf16.mxu0 %v3679_v40  ;;  %386 = vmatprep.subr.bf16.mxu1 %v3681_v42  ;;  %v4145_v23 = vld [vmem:[#allocation5 + $0x2a4] ss:$16 sps:$4 sm:$0xff]   ;;  %v4140_v24 = vld [vmem:[#allocation5 + $0xa0] ss:$16 sps:$4 sm:$0xff]  }
  0x3a   :  { %v4143_v25 = vld [vmem:[#allocation5 + $0x2a0] ss:$16 sps:$4 sm:$0xff]   ;;  %v4148_v26 = vld [vmem:[#allocation5 + $0x84] ss:$16 sps:$4 sm:$0xff]  }
  0x3b   :  { %v4151_v27 = vld [vmem:[#allocation5 + $0x284] ss:$16 sps:$4 sm:$0xff]   ;;  %v4146_v28 = vld [vmem:[#allocation5 + $0x80] ss:$16 sps:$4 sm:$0xff]  }
  0x3c   :  { %346 = vmatpush1.bf16.msra.mxu0 %v3678_v44  ;;  %387 = vmatpush1.bf16.msra.mxu1 %v3680_v47  ;;  %v4149_v29 = vld [vmem:[#allocation5 + $0x280] ss:$16 sps:$4 sm:$0xff]   ;;  %v4154_v30 = vld [vmem:[#allocation5 + $0x64] ss:$16 sps:$4 sm:$0xff]  }
  0x3d   :  { %421 = vmatprep.subr.bf16.mxu0 %v323_v48  ;;  %462 = vmatprep.subr.bf16.mxu1 %v329_v51  ;;  %v4152_v31 = vld [vmem:[#allocation5 + $0x60] ss:$16 sps:$4 sm:$0xff]   ;;  %v4157_v32 = vld [vmem:[#allocation5 + $0x264] ss:$16 sps:$4 sm:$0xff]  }
  0x3e   :  { %v4155_v33 = vld [vmem:[#allocation5 + $0x260] ss:$16 sps:$4 sm:$0xff]   ;;  %v4160_v34 = vld [vmem:[#allocation5 + $0x44] ss:$16 sps:$4 sm:$0xff]  }
  0x3f   :  { %3710 = vmatmul.mubr.msk.bf16.vlgmr.msra.gmra.mxu0 %vm299_vm2, %v72_v53  ;;  %3711 = vmatmul.mubr.msk.bf16.vlgmr.msra.gmra.mxu1 %vm299_vm2, %v72_v53  ;;  %v4163_v35 = vld [vmem:[#allocation5 + $0x244] ss:$16 sps:$4 sm:$0xff]   ;;  %v4158_v36 = vld [vmem:[#allocation5 + $0x40] ss:$16 sps:$4 sm:$0xff]  }
  0x40   :  { %422 = vmatpush1.bf16.msra.mxu0 %v320_v56  ;;  %463 = vmatpush1.bf16.msra.mxu1 %v326_v57  ;;  %v4161_v37 = vld [vmem:[#allocation5 + $0x240] ss:$16 sps:$4 sm:$0xff]   ;;  %v4166_v38 = vld [vmem:[#allocation5 + $0x24] ss:$16 sps:$4 sm:$0xff]  }
  0x41   :  { %423 = vmatprep.subr.bf16.mxu0 %v3699_v58  ;;  %464 = vmatprep.subr.bf16.mxu1 %v3701_v60  ;;  %v4169_v39 = vld [vmem:[#allocation5 + $0x224] ss:$16 sps:$4 sm:$0xff]   ;;  %v4164_v40 = vld [vmem:[#allocation5 + $0x20] ss:$16 sps:$4 sm:$0xff]  }
  0x42   :  { %445 = vmatprep.mubr.bf16.mxu0 %v4691_v0  ;;  %486 = vmatprep.mubr.bf16.mxu1 %v4691_v0  ;;  %v4136_v0 = vld [vmem:[#allocation5 + $0xc4] ss:$16 sps:$4 sm:$0xff]   ;;  %v4167_v41 = vld [vmem:[#allocation5 + $0x220] ss:$16 sps:$4 sm:$0xff]  }
  0x43   :  { %v4172_v42 = vld [vmem:[#allocation5 + $0x4] ss:$16 sps:$4 sm:$0xff]   ;;  %v4170_v44 = vld [vmem:[#allocation5] ss:$16 sps:$4 sm:$0xff]  }
  0x44   :  { %424 = vmatpush1.bf16.msra.mxu0 %v3698_v1  ;;  %465 = vmatpush1.bf16.msra.mxu1 %v3700_v2  ;;  %v4175_v43 = vld [vmem:[#allocation5 + $0x204] ss:$16 sps:$4 sm:$0xff]   ;;  %v4173_v45 = vld [vmem:[#allocation5 + $0x200] ss:$16 sps:$4 sm:$0xff]  }
  0x45   :  { %425 = vmatprep.subr.bf16.mxu0 %v3691_v3  ;;  %466 = vmatprep.subr.bf16.mxu1 %v3693_v5  ;;  %v4178_v46 = vld [vmem:[#allocation5 + $0x1e4] ss:$16 sps:$4 sm:$0xff]   ;;  %v4176_v48 = vld [vmem:[#allocation5 + $0x1e0] ss:$16 sps:$4 sm:$0xff]  }
  0x46   :  { %v4181_v47 = vld [vmem:[#allocation5 + $0x3e4] ss:$16 sps:$4 sm:$0xff]   ;;  %v4179_v49 = vld [vmem:[#allocation5 + $0x3e0] ss:$16 sps:$4 sm:$0xff]  }
  0x47   :  { %v4184_v50 = vld [vmem:[#allocation5 + $0x1c4] ss:$16 sps:$4 sm:$0xff]   ;;  %v4182_v52 = vld [vmem:[#allocation5 + $0x1c0] ss:$16 sps:$4 sm:$0xff]  }
  0x48   :  { %426 = vmatpush1.bf16.msra.mxu0 %v3690_v9  ;;  %467 = vmatpush1.bf16.msra.mxu1 %v3692_v10  ;;  %v4187_v51 = vld [vmem:[#allocation5 + $0x3c4] ss:$16 sps:$4 sm:$0xff]   ;;  %v4188_v56 = vld [vmem:[#allocation5 + $0x1a0] ss:$16 sps:$4 sm:$0xff]  }
  0x49   :  { %427 = vmatprep.subr.bf16.mxu0 %v3683_v11  ;;  %468 = vmatprep.subr.bf16.mxu1 %v3685_v12  ;;  %v4190_v54 = vld [vmem:[#allocation5 + $0x1a4] ss:$16 sps:$4 sm:$0xff]   ;;  %v4191_v57 = vld [vmem:[#allocation5 + $0x3a0] ss:$16 sps:$4 sm:$0xff]  }
  0x4a   :  { %v4193_v55 = vld [vmem:[#allocation5 + $0x3a4] ss:$16 sps:$4 sm:$0xff]   ;;  %v4194_v60 = vld [vmem:[#allocation5 + $0x180] ss:$16 sps:$4 sm:$0xff]  }
  0x4b   :  { %v4196_v58 = vld [vmem:[#allocation5 + $0x184] ss:$16 sps:$4 sm:$0xff]   ;;  %v4197_v61 = vld [vmem:[#allocation5 + $0x380] ss:$16 sps:$4 sm:$0xff]  }
  0x4c   :  { %428 = vmatpush1.bf16.msra.mxu0 %v3682_v13  ;;  %469 = vmatpush1.bf16.msra.mxu1 %v3684_v14  ;;  %v4199_v59 = vld [vmem:[#allocation5 + $0x384] ss:$16 sps:$4 sm:$0xff]   ;;  %v4200_v1 = vld [vmem:[#allocation5 + $0x160] ss:$16 sps:$4 sm:$0xff]  }
  0x4d   :  { %2069 = vmatprep.subr.bf16.mxu0 %v4130_v15  ;;  %2110 = vmatprep.subr.bf16.mxu1 %v4133_v16  ;;  %v4202_v62 = vld [vmem:[#allocation5 + $0x164] ss:$16 sps:$4 sm:$0xff]   ;;  %v4203_v2 = vld [vmem:[#allocation5 + $0x360] ss:$16 sps:$4 sm:$0xff]  }
  0x4e   :  { %v4205_v63 = vld [vmem:[#allocation5 + $0x364] ss:$16 sps:$4 sm:$0xff]   ;;  %v4206_v5 = vld [vmem:[#allocation5 + $0x140] ss:$16 sps:$4 sm:$0xff]  }
  0x4f   :  { %3712 = vmatmul.mubr.msk.bf16.vlgmr.msra.gmra.mxu0 %vm299_vm2, %v72_v53  ;;  %3713 = vmatmul.mubr.msk.bf16.vlgmr.msra.gmra.mxu1 %vm299_vm2, %v72_v53  ;;  %v4185_v53 = vld [vmem:[#allocation5 + $0x3c0] ss:$16 sps:$4 sm:$0xff]   ;;  %v4208_v3 = vld [vmem:[#allocation5 + $0x144] ss:$16 sps:$4 sm:$0xff]  }
  0x50   :  { %2070 = vmatpush1.bf16.msra.mxu0 %v4128_v17  ;;  %2111 = vmatpush1.bf16.msra.mxu1 %v4131_v18  ;;  %v4211_v4 = vld [vmem:[#allocation5 + $0x344] ss:$16 sps:$4 sm:$0xff]   ;;  %v4209_v6 = vld [vmem:[#allocation5 + $0x340] ss:$16 sps:$4 sm:$0xff]   ;;  %v107_v17 = vlaneseq }
  0x51   :  { %2071 = vmatprep.subr.bf16.mxu0 %v4136_v0  ;;  %2112 = vmatprep.subr.bf16.mxu1 %v4139_v19  ;;  %v4214_v7 = vld [vmem:[#allocation5 + $0x124] ss:$16 sps:$4 sm:$0xff]   ;;  %v4212_v9 = vld [vmem:[#allocation5 + $0x120] ss:$16 sps:$4 sm:$0xff]  }
  0x52   :  { %v4217_v8 = vld [vmem:[#allocation5 + $0x324] ss:$16 sps:$4 sm:$0xff]   ;;  %v4215_v10 = vld [vmem:[#allocation5 + $0x320] ss:$16 sps:$4 sm:$0xff]   ;;  %v4785_v18 = vshrl.u32 %v107_v17, 7 }
  0x53   :  { %v4220_v11 = vld [vmem:[#allocation5 + $0x104] ss:$16 sps:$4 sm:$0xff]   ;;  %v4218_v13 = vld [vmem:[#allocation5 + $0x100] ss:$16 sps:$4 sm:$0xff]  }
  0x54   :  { %2072 = vmatpush1.bf16.msra.mxu0 %v4134_v20  ;;  %2113 = vmatpush1.bf16.msra.mxu1 %v4137_v21  ;;  %v4223_v12 = vld [vmem:[#allocation5 + $0x304] ss:$16 sps:$4 sm:$0xff]   ;;  %v4221_v14 = vld [vmem:[#allocation5 + $0x300] ss:$16 sps:$4 sm:$0xff]   ;;  %v4788_v0 = vsub.s32 0, %v4785_v18  ;;  %v117_v20 = vsub.s32 2, %v4785_v18 }
  0x55   :  { %2073 = vmatprep.subr.bf16.mxu0 %v4142_v22  ;;  %2114 = vmatprep.subr.bf16.mxu1 %v4145_v23  ;;  %v4226_v15 = vld [vmem:[#allocation5 + $0x4e4] ss:$16 sps:$4 sm:$0xff]   ;;  %v4793_v19 = vld [vmem:[%s5117_s2] sm:$0xff]  ;;  %v4797_v21 = vsub.s32 1, %v4785_v18  ;;  %v121_v22 = vsub.s32 3, %v4785_v18 }
  0x56   :  { %v4229_v16 = vld [vmem:[#allocation5 + $0x6e4] ss:$16 sps:$4 sm:$0xff]   ;;  %v110_v23 = vrot.slane %v4793_v19, %v4788_v0 }
  0x58   :  { %2074 = vmatpush1.bf16.msra.mxu0 %v4140_v24  ;;  %2115 = vmatpush1.bf16.msra.mxu1 %v4143_v25  ;;  %v118_v24 = vrot.slane %v4793_v19, %v117_v20  ;;  %v114_v25 = vrot.slane %v4793_v19, %v4797_v21 }
  0x59   :  { %2075 = vmatprep.subr.bf16.mxu0 %v4148_v26  ;;  %2116 = vmatprep.subr.bf16.mxu1 %v4151_v27  ;;  %v122_v27 = vrot.slane %v4793_v19, %v121_v22 }
  0x5c   :  { %2076 = vmatpush1.bf16.msra.mxu0 %v4146_v28  ;;  %2117 = vmatpush1.bf16.msra.mxu1 %v4149_v29 }
  0x5d   :  { %2077 = vmatprep.subr.bf16.mxu0 %v4154_v30  ;;  %2118 = vmatprep.subr.bf16.mxu1 %v4157_v32 }
  0x60   :  { %2078 = vmatpush1.bf16.msra.mxu0 %v4152_v31  ;;  %2119 = vmatpush1.bf16.msra.mxu1 %v4155_v33 }
  0x61   :  { %2079 = vmatprep.subr.bf16.mxu0 %v4160_v34  ;;  %2120 = vmatprep.subr.bf16.mxu1 %v4163_v35 }
  0x64   :  { %2080 = vmatpush1.bf16.msra.mxu0 %v4158_v36  ;;  %2121 = vmatpush1.bf16.msra.mxu1 %v4161_v37 }
  0x65   :  { %2081 = vmatprep.subr.bf16.mxu0 %v4166_v38  ;;  %2122 = vmatprep.subr.bf16.mxu1 %v4169_v39 }
  0x68   :  { %2082 = vmatpush1.bf16.msra.mxu0 %v4164_v40  ;;  %2123 = vmatpush1.bf16.msra.mxu1 %v4167_v41 }
  0x69   :  { %2083 = vmatprep.subr.bf16.mxu0 %v4172_v42  ;;  %2124 = vmatprep.subr.bf16.mxu1 %v4175_v43 }
  0x6c   :  { %2084 = vmatpush1.bf16.msra.mxu0 %v4170_v44  ;;  %2125 = vmatpush1.bf16.msra.mxu1 %v4173_v45  ;;  %v4224_v45 = vld [vmem:[#allocation5 + $0x4e0] ss:$16 sps:$4 sm:$0xff]  }
  0x6d   :  { %2085 = vmatprep.subr.bf16.mxu0 %v4178_v46  ;;  %2126 = vmatprep.subr.bf16.mxu1 %v4181_v47 }
  0x70   :  { %2086 = vmatpush2.bf16.msra.mxu0 %v4176_v48  ;;  %2127 = vmatpush2.bf16.msra.mxu1 %v4179_v49  ;;  %v4227_v48 = vld [vmem:[#allocation5 + $0x6e0] ss:$16 sps:$4 sm:$0xff]   ;;  %v4232_v49 = vld [vmem:[#allocation5 + $0x4c4] ss:$16 sps:$4 sm:$0xff]  }
  0x71   :  { %2087 = vmatprep.subr.bf16.mxu0 %v4184_v50  ;;  %2128 = vmatprep.subr.bf16.mxu1 %v4187_v51  ;;  %v4235_v50 = vld [vmem:[#allocation5 + $0x6c4] ss:$16 sps:$4 sm:$0xff]   ;;  %v4230_v51 = vld [vmem:[#allocation5 + $0x4c0] ss:$16 sps:$4 sm:$0xff]  }
  0x74   :  { %2088 = vmatpush2.bf16.msra.mxu0 %v4182_v52  ;;  %2129 = vmatpush2.bf16.msra.mxu1 %v4185_v53  ;;  %v129_v52 = vsub.s32 5, %v4785_v18  ;;  %v4233_v53 = vld [vmem:[#allocation5 + $0x6c0] ss:$16 sps:$4 sm:$0xff]  }
  0x75   :  { %2089 = vmatprep.subr.bf16.mxu0 %v4190_v54  ;;  %2130 = vmatprep.subr.bf16.mxu1 %v4193_v55  ;;  %v4238_v54 = vld [vmem:[#allocation5 + $0x4a4] ss:$16 sps:$4 sm:$0xff]   ;;  %v137_v55 = vsub.s32 7, %v4785_v18 }
  0x78   :  { %2090 = vmatpush2.bf16.msra.mxu0 %v4188_v56  ;;  %2131 = vmatpush2.bf16.msra.mxu1 %v4191_v57  ;;  %v4241_v56 = vld [vmem:[#allocation5 + $0x6a4] ss:$16 sps:$4 sm:$0xff]   ;;  %v4236_v57 = vld [vmem:[#allocation5 + $0x4a0] ss:$16 sps:$4 sm:$0xff]  }
  0x79   :  { %2091 = vmatprep.subr.bf16.mxu0 %v4196_v58  ;;  %2132 = vmatprep.subr.bf16.mxu1 %v4199_v59  ;;  %v130_v58 = vrot.slane %v4793_v19, %v129_v52  ;;  %v4239_v59 = vld [vmem:[#allocation5 + $0x6a0] ss:$16 sps:$4 sm:$0xff]  }
  0x7a   :  { %v4287_v52 = vld [vmem:[#allocation5 + $0x7a0] ss:$16 sps:$4 sm:$0xff]  }
  0x7c   :  { %2092 = vmatpush2.bf16.msra.mxu0 %v4194_v60  ;;  %2133 = vmatpush2.bf16.msra.mxu1 %v4197_v61  ;;  %v4244_v60 = vld [vmem:[#allocation5 + $0x484] ss:$16 sps:$4 sm:$0xff]  }
  0x7d   :  { %2093 = vmatprep.subr.bf16.mxu0 %v4202_v62  ;;  %2134 = vmatprep.subr.bf16.mxu1 %v4205_v63  ;;  %v138_v62 = vrot.slane %v4793_v19, %v137_v55  ;;  %v4247_v63 = vld [vmem:[#allocation5 + $0x684] ss:$16 sps:$4 sm:$0xff]   ;;  %v4290_v55 = vld [vmem:[#allocation5 + $0x580] ss:$16 sps:$4 sm:$0xff]  }
  0x80   :  { %2094 = vmatpush2.bf16.msra.mxu0 %v4200_v1  ;;  %2135 = vmatpush2.bf16.msra.mxu1 %v4203_v2 }
  0x81   :  { %2095 = vmatprep.subr.bf16.mxu0 %v4208_v3  ;;  %2136 = vmatprep.subr.bf16.mxu1 %v4211_v4  ;;  %v4242_v3 = vld [vmem:[#allocation5 + $0x480] ss:$16 sps:$4 sm:$0xff]  }
  0x84   :  { %2096 = vmatpush2.bf16.msra.mxu0 %v4206_v5  ;;  %2137 = vmatpush2.bf16.msra.mxu1 %v4209_v6  ;;  %v4245_v6 = vld [vmem:[#allocation5 + $0x680] ss:$16 sps:$4 sm:$0xff]  }
  0x85   :  { %2097 = vmatprep.subr.bf16.mxu0 %v4214_v7  ;;  %2138 = vmatprep.subr.bf16.mxu1 %v4217_v8  ;;  %v4250_v7 = vld [vmem:[#allocation5 + $0x464] ss:$16 sps:$4 sm:$0xff]  }
  0x88   :  { %2098 = vmatpush2.bf16.msra.mxu0 %v4212_v9  ;;  %2139 = vmatpush2.bf16.msra.mxu1 %v4215_v10  ;;  %v4253_v10 = vld [vmem:[#allocation5 + $0x664] ss:$16 sps:$4 sm:$0xff]  }
  0x89   :  { %2099 = vmatprep.subr.bf16.mxu0 %v4220_v11  ;;  %2140 = vmatprep.subr.bf16.mxu1 %v4223_v12 }
  0x8c   :  { %2100 = vmatpush2.bf16.msra.mxu0 %v4218_v13  ;;  %2141 = vmatpush2.bf16.msra.mxu1 %v4221_v14 }
  0x8d   :  { %2151 = vmatprep.subr.bf16.mxu0 %v4226_v15  ;;  %2192 = vmatprep.subr.bf16.mxu1 %v4229_v16  ;;  %v4248_v15 = vld [vmem:[#allocation5 + $0x460] ss:$16 sps:$4 sm:$0xff]  }
  0xff   :  { %v365_v26 = vpop.f32.mrf.mxu0  ;;  %v406_v29 = vpop.f32.mrf.mxu1 }
 0x100   :  { %v366_v28 = vadd.f32 %v365_v26, %v110_v23  ;;  %v407_v30 = vadd.f32 %v406_v29, %v118_v24  ;;  %v4251_v23 = vld [vmem:[#allocation5 + $0x660] ss:$16 sps:$4 sm:$0xff]   ;;  %v4256_v24 = vld [vmem:[#allocation5 + $0x444] ss:$16 sps:$4 sm:$0xff]  }
 0x101   :  { %v367_v31 = vpop.f32.mrf.mxu0  ;;  %v408_v33 = vpop.f32.mrf.mxu1  ;;  %v4259_v26 = vld [vmem:[#allocation5 + $0x644] ss:$16 sps:$4 sm:$0xff]  }
 0x102   :  { %v368_v32 = vadd.f32 %v367_v31, %v114_v25  ;;  %v495_v34 = vmax.f32 %v366_v28, 0.0  ;;  %v497_v35 = vmax.f32 %v407_v30, 0.0  ;;  %v409_v36 = vadd.f32 %v408_v33, %v122_v27  ;;  %v4254_v27 = vld [vmem:[#allocation5 + $0x440] ss:$16 sps:$4 sm:$0xff]   ;;  %v4262_v29 = vld [vmem:[#allocation5 + $0x424] ss:$16 sps:$4 sm:$0xff]  }
 0x103   :  { %v369_v37 = vpop.f32.mrf.mxu0  ;;  %v410_v39 = vpop.f32.mrf.mxu1  ;;  %v4257_v28 = vld [vmem:[#allocation5 + $0x640] ss:$16 sps:$4 sm:$0xff]   ;;  %v4265_v30 = vld [vmem:[#allocation5 + $0x624] ss:$16 sps:$4 sm:$0xff]  }
 0x104   :  { %v496_v38 = vmax.f32 %v368_v32, 0.0  ;;  %v498_v40 = vmax.f32 %v409_v36, 0.0  ;;  %v4810_v42 = vpack.c.bf16 %v497_v35, %v497_v35  ;;  %v4814_v46 = vpack.c.bf16 %v495_v34, %v495_v34  ;;  %v4260_v31 = vld [vmem:[#allocation5 + $0x420] ss:$16 sps:$4 sm:$0xff]   ;;  %v4268_v33 = vld [vmem:[#allocation5 + $0x404] ss:$16 sps:$4 sm:$0xff]  }
 0x105   :  { %v370_v41 = vpop.f32.mrf.mxu0  ;;  %v411_v44 = vpop.f32.mrf.mxu1  ;;  %v4263_v32 = vld [vmem:[#allocation5 + $0x620] ss:$16 sps:$4 sm:$0xff]   ;;  %v4271_v34 = vld [vmem:[#allocation5 + $0x604] ss:$16 sps:$4 sm:$0xff]  }
 0x106   :  { %v4812_v43 = vpack.c.bf16 %v496_v38, %v496_v38  ;;  %v4816_v47 = vpack.c.bf16 %v498_v40, %v498_v40  ;;  %v4266_v35 = vld [vmem:[#allocation5 + $0x400] ss:$16 sps:$4 sm:$0xff]   ;;  %v4274_v37 = vld [vmem:[#allocation5 + $0x5e4] ss:$16 sps:$4 sm:$0xff]  }
 0x107   :  { %v4269_v36 = vld [vmem:[#allocation5 + $0x600] ss:$16 sps:$4 sm:$0xff]   ;;  %v4277_v38 = vld [vmem:[#allocation5 + $0x7e4] ss:$16 sps:$4 sm:$0xff]  }
 0x108   :  { %2101 = vmatprep.mubr.bf16.mxu0 %v4812_v43  ;;  %2142 = vmatprep.mubr.bf16.mxu1 %v4816_v47  ;;  %v4272_v39 = vld [vmem:[#allocation5 + $0x5e0] ss:$16 sps:$4 sm:$0xff]   ;;  %v4280_v41 = vld [vmem:[#allocation5 + $0x5c4] ss:$16 sps:$4 sm:$0xff]  }
 0x109   :  { %2102 = vmatmul.mubr.bf16.vlgmr.msra.gmra.mxu0 %v4814_v46  ;;  %2143 = vmatmul.mubr.bf16.vlgmr.msra.gmra.mxu1 %v4810_v42  ;;  %v4275_v40 = vld [vmem:[#allocation5 + $0x7e0] ss:$16 sps:$4 sm:$0xff]   ;;  %v4283_v44 = vld [vmem:[#allocation5 + $0x7c4] ss:$16 sps:$4 sm:$0xff]  }
 0x10a   :  { %2152 = vmatpush1.bf16.msra.mxu0 %v4224_v45  ;;  %2193 = vmatpush1.bf16.msra.mxu1 %v4227_v48  ;;  %v4278_v45 = vld [vmem:[#allocation5 + $0x5c0] ss:$16 sps:$4 sm:$0xff]  }
 0x10b   :  { %2153 = vmatprep.subr.bf16.mxu0 %v4232_v49  ;;  %2194 = vmatprep.subr.bf16.mxu1 %v4235_v50  ;;  %v4281_v48 = vld [vmem:[#allocation5 + $0x7c0] ss:$16 sps:$4 sm:$0xff]   ;;  %v4286_v49 = vld [vmem:[#allocation5 + $0x5a4] ss:$16 sps:$4 sm:$0xff]  }
 0x10c   :  { %v4289_v50 = vld [vmem:[#allocation5 + $0x7a4] ss:$16 sps:$4 sm:$0xff]  }
 0x10e   :  { %2154 = vmatpush1.bf16.msra.mxu0 %v4230_v51  ;;  %2195 = vmatpush1.bf16.msra.mxu1 %v4233_v53  ;;  %v4284_v51 = vld [vmem:[#allocation5 + $0x5a0] ss:$16 sps:$4 sm:$0xff]   ;;  %v4292_v53 = vld [vmem:[#allocation5 + $0x584] ss:$16 sps:$4 sm:$0xff]  }
 0x10f   :  { %2155 = vmatprep.subr.bf16.mxu0 %v4238_v54  ;;  %v4825_v61 = vpop.f32.mrf.mxu0  ;;  %2196 = vmatprep.subr.bf16.mxu1 %v4241_v56  ;;  %v4828_v1 = vpop.f32.mrf.mxu1  ;;  %v4295_v54 = vld [vmem:[#allocation5 + $0x784] ss:$16 sps:$4 sm:$0xff]   ;;  %v4293_v56 = vld [vmem:[#allocation5 + $0x780] ss:$16 sps:$4 sm:$0xff]  }
 0x111   :  { %v449_v2 = vpop.f32.mrf.mxu0  ;;  %v490_v5 = vpop.f32.mrf.mxu1 }
 0x112   :  { %2156 = vmatpush1.bf16.msra.mxu0 %v4236_v57  ;;  %v450_v4 = vadd.f32 %v449_v2, %v130_v58  ;;  %2197 = vmatpush1.bf16.msra.mxu1 %v4239_v59  ;;  %v491_v9 = vadd.f32 %v490_v5, %v138_v62  ;;  %v4298_v57 = vld [vmem:[#allocation5 + $0x564] ss:$16 sps:$4 sm:$0xff]   ;;  %v4296_v59 = vld [vmem:[#allocation5 + $0x560] ss:$16 sps:$4 sm:$0xff]  }
 0x113   :  { %2157 = vmatprep.subr.bf16.mxu0 %v4244_v60  ;;  %v451_v8 = vpop.f32.mrf.mxu0  ;;  %2198 = vmatprep.subr.bf16.mxu1 %v4247_v63  ;;  %v492_v12 = vpop.f32.mrf.mxu1  ;;  %v4301_v58 = vld [vmem:[#allocation5 + $0x764] ss:$16 sps:$4 sm:$0xff]   ;;  %v133_v60 = vsub.s32 6, %v4785_v18  ;;  %v4299_v62 = vld [vmem:[#allocation5 + $0x760] ss:$16 sps:$4 sm:$0xff]   ;;  %v125_v63 = vsub.s32 4, %v4785_v18 }
 0x114   :  { %v500_v11 = vmax.f32 %v450_v4, 0.0  ;;  %v502_v13 = vmax.f32 %v491_v9, 0.0  ;;  %v4304_v2 = vld [vmem:[#allocation5 + $0x544] ss:$16 sps:$4 sm:$0xff]   ;;  %v4302_v5 = vld [vmem:[#allocation5 + $0x540] ss:$16 sps:$4 sm:$0xff]  }
 0x115   :  { %v452_v14 = vpop.f32.mrf.mxu0  ;;  %v493_v17 = vpop.f32.mrf.mxu1  ;;  %v134_v4 = vrot.slane %v4793_v19, %v133_v60  ;;  %v4310_v8 = vld [vmem:[#allocation5 + $0x524] ss:$16 sps:$4 sm:$0xff]   ;;  %v4370_v60 = vld [vmem:[#allocation5 + $0x1ec] ss:$16 sps:$4 sm:$0xff]  }
 0x116   :  { %2158 = vmatpush1.bf16.msra.mxu0 %v4242_v3  ;;  %v4830_v16 = vpack.c.bf16 %v500_v11, %v500_v11  ;;  %2199 = vmatpush1.bf16.msra.mxu1 %v4245_v6  ;;  %v4832_v25 = vpack.c.bf16 %v502_v13, %v502_v13  ;;  %v4307_v3 = vld [vmem:[#allocation5 + $0x744] ss:$16 sps:$4 sm:$0xff]   ;;  %v126_v6 = vrot.slane %v4793_v19, %v125_v63  ;;  %v4308_v11 = vld [vmem:[#allocation5 + $0x520] ss:$16 sps:$4 sm:$0xff]   ;;  %v4368_v63 = vld [vmem:[#allocation5 + $0x1e8] ss:$16 sps:$4 sm:$0xff]  }
 0x117   :  { %2159 = vmatprep.subr.bf16.mxu0 %v4250_v7  ;;  %2200 = vmatprep.subr.bf16.mxu1 %v4253_v10  ;;  %v4305_v7 = vld [vmem:[#allocation5 + $0x740] ss:$16 sps:$4 sm:$0xff]   ;;  %v4313_v9 = vld [vmem:[#allocation5 + $0x724] ss:$16 sps:$4 sm:$0xff]   ;;  %v489_v10 = vadd.f32 %v4828_v1, %v134_v4  ;;  %v4325_v1 = vld [vmem:[#allocation5 + $0x2ec] ss:$16 sps:$4 sm:$0xff]  }
 0x118   :  { %2183 = vmatprep.mubr.bf16.mxu0 %v4830_v16  ;;  %2224 = vmatprep.mubr.bf16.mxu1 %v4832_v25  ;;  %v448_v12 = vadd.f32 %v4825_v61, %v126_v6  ;;  %v4311_v13 = vld [vmem:[#allocation5 + $0x720] ss:$16 sps:$4 sm:$0xff]   ;;  %v4316_v14 = vld [vmem:[#allocation5 + $0x504] ss:$16 sps:$4 sm:$0xff]   ;;  %v4320_v61 = vld [vmem:[#allocation5 + $0xe8] ss:$16 sps:$4 sm:$0xff]  }
 0x119   :  { %v501_v17 = vmax.f32 %v489_v10, 0.0  ;;  %v4314_v19 = vld [vmem:[#allocation5 + $0x500] ss:$16 sps:$4 sm:$0xff]   ;;  %v4379_v4 = vld [vmem:[#allocation5 + $0x3cc] ss:$16 sps:$4 sm:$0xff]  }
 0x11a   :  { %2160 = vmatpush1.bf16.msra.mxu0 %v4248_v15  ;;  %2201 = vmatpush1.bf16.msra.mxu1 %v4251_v23  ;;  %v4319_v15 = vld [vmem:[#allocation5 + $0x704] ss:$16 sps:$4 sm:$0xff]   ;;  %v499_v23 = vmax.f32 %v448_v12, 0.0  ;;  %v4377_v6 = vld [vmem:[#allocation5 + $0x3c8] ss:$16 sps:$4 sm:$0xff]  }
 0x11b   :  { %2161 = vmatprep.subr.bf16.mxu0 %v4256_v24  ;;  %2202 = vmatprep.subr.bf16.mxu1 %v4259_v26  ;;  %v4317_v24 = vld [vmem:[#allocation5 + $0x700] ss:$16 sps:$4 sm:$0xff]   ;;  %v4322_v26 = vld [vmem:[#allocation5 + $0xec] ss:$16 sps:$4 sm:$0xff]   ;;  %v4383_v10 = vld [vmem:[#allocation5 + $0x3a8] ss:$16 sps:$4 sm:$0xff]  }
 0x11c   :  { %v4391_v12 = vld [vmem:[#allocation5 + $0x38c] ss:$16 sps:$4 sm:$0xff]  }
 0x11e   :  { %2162 = vmatpush1.bf16.msra.mxu0 %v4254_v27  ;;  %2203 = vmatpush1.bf16.msra.mxu1 %v4257_v28  ;;  %v4842_v27 = vpack.c.bf16 %v501_v17, %v501_v17  ;;  %v4844_v28 = vpack.c.bf16 %v499_v23, %v499_v23  ;;  %v4397_v17 = vld [vmem:[#allocation5 + $0x36c] ss:$16 sps:$4 sm:$0xff]   ;;  %v4395_v23 = vld [vmem:[#allocation5 + $0x368] ss:$16 sps:$4 sm:$0xff]  }
 0x11f   :  { %2163 = vmatprep.subr.bf16.mxu0 %v4262_v29  ;;  %2204 = vmatprep.subr.bf16.mxu1 %v4265_v30  ;;  %v4323_v29 = vld [vmem:[#allocation5 + $0x2e8] ss:$16 sps:$4 sm:$0xff]   ;;  %v4328_v30 = vld [vmem:[#allocation5 + $0xcc] ss:$16 sps:$4 sm:$0xff]  }
 0x122   :  { %2164 = vmatpush1.bf16.msra.mxu0 %v4260_v31  ;;  %2205 = vmatpush1.bf16.msra.mxu1 %v4263_v32  ;;  %v4331_v31 = vld [vmem:[#allocation5 + $0x2cc] ss:$16 sps:$4 sm:$0xff]   ;;  %v4326_v32 = vld [vmem:[#allocation5 + $0xc8] ss:$16 sps:$4 sm:$0xff]  }
 0x123   :  { %2165 = vmatprep.subr.bf16.mxu0 %v4268_v33  ;;  %2206 = vmatprep.subr.bf16.mxu1 %v4271_v34  ;;  %v4329_v33 = vld [vmem:[#allocation5 + $0x2c8] ss:$16 sps:$4 sm:$0xff]   ;;  %v4334_v34 = vld [vmem:[#allocation5 + $0xac] ss:$16 sps:$4 sm:$0xff]  }
 0x126   :  { %2166 = vmatpush1.bf16.msra.mxu0 %v4266_v35  ;;  %2207 = vmatpush1.bf16.msra.mxu1 %v4269_v36  ;;  %v4337_v35 = vld [vmem:[#allocation5 + $0x2ac] ss:$16 sps:$4 sm:$0xff]   ;;  %v4332_v36 = vld [vmem:[#allocation5 + $0xa8] ss:$16 sps:$4 sm:$0xff]  }
 0x127   :  { %2167 = vmatprep.subr.bf16.mxu0 %v4274_v37  ;;  %2208 = vmatprep.subr.bf16.mxu1 %v4277_v38  ;;  %v4335_v37 = vld [vmem:[#allocation5 + $0x2a8] ss:$16 sps:$4 sm:$0xff]   ;;  %v4340_v38 = vld [vmem:[#allocation5 + $0x8c] ss:$16 sps:$4 sm:$0xff]  }
 0x12a   :  { %2168 = vmatpush2.bf16.msra.mxu0 %v4272_v39  ;;  %2209 = vmatpush2.bf16.msra.mxu1 %v4275_v40  ;;  %v4343_v39 = vld [vmem:[#allocation5 + $0x28c] ss:$16 sps:$4 sm:$0xff]   ;;  %v4338_v40 = vld [vmem:[#allocation5 + $0x88] ss:$16 sps:$4 sm:$0xff]  }
 0x12b   :  { %2169 = vmatprep.subr.bf16.mxu0 %v4280_v41  ;;  %2210 = vmatprep.subr.bf16.mxu1 %v4283_v44  ;;  %v4346_v41 = vld [vmem:[#allocation5 + $0x6c] ss:$16 sps:$4 sm:$0xff]  }
 0x12c   :  { %v4349_v44 = vld [vmem:[#allocation5 + $0x26c] ss:$16 sps:$4 sm:$0xff]  }
 0x12e   :  { %2170 = vmatpush2.bf16.msra.mxu0 %v4278_v45  ;;  %2211 = vmatpush2.bf16.msra.mxu1 %v4281_v48  ;;  %v4347_v45 = vld [vmem:[#allocation5 + $0x268] ss:$16 sps:$4 sm:$0xff]   ;;  %v4352_v48 = vld [vmem:[#allocation5 + $0x4c] ss:$16 sps:$4 sm:$0xff]  }
 0x12f   :  { %2171 = vmatprep.subr.bf16.mxu0 %v4286_v49  ;;  %2212 = vmatprep.subr.bf16.mxu1 %v4289_v50  ;;  %v4355_v49 = vld [vmem:[#allocation5 + $0x24c] ss:$16 sps:$4 sm:$0xff]   ;;  %v4350_v50 = vld [vmem:[#allocation5 + $0x48] ss:$16 sps:$4 sm:$0xff]  }
 0x132   :  { %2172 = vmatpush2.bf16.msra.mxu0 %v4284_v51  ;;  %2213 = vmatpush2.bf16.msra.mxu1 %v4287_v52  ;;  %v4353_v51 = vld [vmem:[#allocation5 + $0x248] ss:$16 sps:$4 sm:$0xff]   ;;  %v4358_v52 = vld [vmem:[#allocation5 + $0x2c] ss:$16 sps:$4 sm:$0xff]  }
 0x133   :  { %2173 = vmatprep.subr.bf16.mxu0 %v4292_v53  ;;  %2214 = vmatprep.subr.bf16.mxu1 %v4295_v54  ;;  %v4361_v53 = vld [vmem:[#allocation5 + $0x22c] ss:$16 sps:$4 sm:$0xff]   ;;  %v4356_v54 = vld [vmem:[#allocation5 + $0x28] ss:$16 sps:$4 sm:$0xff]  }
 0x136   :  { %2174 = vmatpush2.bf16.msra.mxu0 %v4290_v55  ;;  %2215 = vmatpush2.bf16.msra.mxu1 %v4293_v56  ;;  %v4359_v55 = vld [vmem:[#allocation5 + $0x228] ss:$16 sps:$4 sm:$0xff]   ;;  %v4364_v56 = vld [vmem:[#allocation5 + $0xc] ss:$16 sps:$4 sm:$0xff]  }
 0x137   :  { %2175 = vmatprep.subr.bf16.mxu0 %v4298_v57  ;;  %2216 = vmatprep.subr.bf16.mxu1 %v4301_v58  ;;  %v4367_v57 = vld [vmem:[#allocation5 + $0x20c] ss:$16 sps:$4 sm:$0xff]   ;;  %v4362_v58 = vld [vmem:[#allocation5 + $0x8] ss:$16 sps:$4 sm:$0xff]  }
 0x13a   :  { %2176 = vmatpush2.bf16.msra.mxu0 %v4296_v59  ;;  %2217 = vmatpush2.bf16.msra.mxu1 %v4299_v62  ;;  %v4365_v59 = vld [vmem:[#allocation5 + $0x208] ss:$16 sps:$4 sm:$0xff]   ;;  %v4373_v62 = vld [vmem:[#allocation5 + $0x3ec] ss:$16 sps:$4 sm:$0xff]  }
 0x13b   :  { %2177 = vmatprep.subr.bf16.mxu0 %v4304_v2  ;;  %2218 = vmatprep.subr.bf16.mxu1 %v4307_v3  ;;  %v4371_v2 = vld [vmem:[#allocation5 + $0x3e8] ss:$16 sps:$4 sm:$0xff]   ;;  %v4376_v3 = vld [vmem:[#allocation5 + $0x1cc] ss:$16 sps:$4 sm:$0xff]  }
 0x13e   :  { %2178 = vmatpush2.bf16.msra.mxu0 %v4302_v5  ;;  %2219 = vmatpush2.bf16.msra.mxu1 %v4305_v7  ;;  %v4374_v5 = vld [vmem:[#allocation5 + $0x1c8] ss:$16 sps:$4 sm:$0xff]   ;;  %v4382_v7 = vld [vmem:[#allocation5 + $0x1ac] ss:$16 sps:$4 sm:$0xff]  }
 0x13f   :  { %2179 = vmatprep.subr.bf16.mxu0 %v4310_v8  ;;  %2220 = vmatprep.subr.bf16.mxu1 %v4313_v9  ;;  %v4385_v8 = vld [vmem:[#allocation5 + $0x3ac] ss:$16 sps:$4 sm:$0xff]   ;;  %v4380_v9 = vld [vmem:[#allocation5 + $0x1a8] ss:$16 sps:$4 sm:$0xff]  }
 0x142   :  { %2180 = vmatpush2.bf16.msra.mxu0 %v4308_v11  ;;  %2221 = vmatpush2.bf16.msra.mxu1 %v4311_v13  ;;  %v4388_v11 = vld [vmem:[#allocation5 + $0x18c] ss:$16 sps:$4 sm:$0xff]   ;;  %v4386_v13 = vld [vmem:[#allocation5 + $0x188] ss:$16 sps:$4 sm:$0xff]  }
 0x143   :  { %2181 = vmatprep.subr.bf16.mxu0 %v4316_v14  ;;  %2222 = vmatprep.subr.bf16.mxu1 %v4319_v15  ;;  %v4389_v14 = vld [vmem:[#allocation5 + $0x388] ss:$16 sps:$4 sm:$0xff]   ;;  %v4394_v15 = vld [vmem:[#allocation5 + $0x16c] ss:$16 sps:$4 sm:$0xff]  }
 0x146   :  { %2182 = vmatpush2.bf16.msra.mxu0 %v4314_v19  ;;  %2223 = vmatpush2.bf16.msra.mxu1 %v4317_v24  ;;  %v4392_v19 = vld [vmem:[#allocation5 + $0x168] ss:$16 sps:$4 sm:$0xff]   ;;  %v4400_v24 = vld [vmem:[#allocation5 + $0x14c] ss:$16 sps:$4 sm:$0xff]  }
 0x147   :  { %2233 = vmatprep.subr.bf16.mxu0 %v4322_v26  ;;  %2274 = vmatprep.subr.bf16.mxu1 %v4325_v1  ;;  %v4403_v26 = vld [vmem:[#allocation5 + $0x34c] ss:$16 sps:$4 sm:$0xff]   ;;  %v4398_v1 = vld [vmem:[#allocation5 + $0x148] ss:$16 sps:$4 sm:$0xff]  }
 0x149   :  { %2184 = vmatmul.mubr.bf16.vlgmr.msra.gmra.mxu0 %v4844_v28  ;;  %2225 = vmatmul.mubr.bf16.vlgmr.msra.gmra.mxu1 %v4842_v27 }
 0x14a   :  { %2234 = vmatpush1.bf16.msra.mxu0 %v4320_v61  ;;  %2265 = vmatprep.mubr.bf16.mxu0 %v4812_v43  ;;  %v4341_v43 = vld [vmem:[#allocation5 + $0x288] ss:$16 sps:$4 sm:$0xff]  }
 0x14b   :  { %2275 = vmatpush1.bf16.msra.mxu1 %v4323_v29  ;;  %2306 = vmatprep.mubr.bf16.mxu1 %v4816_v47  ;;  %v4344_v47 = vld [vmem:[#allocation5 + $0x68] ss:$16 sps:$4 sm:$0xff]   ;;  %v4406_v29 = vld [vmem:[#allocation5 + $0x12c] ss:$16 sps:$4 sm:$0xff]  }
 0x14c   :  { %2235 = vmatprep.subr.bf16.mxu0 %v4328_v30  ;;  %2276 = vmatprep.subr.bf16.mxu1 %v4331_v31  ;;  %v4401_v61 = vld [vmem:[#allocation5 + $0x348] ss:$16 sps:$4 sm:$0xff]   ;;  %v4409_v30 = vld [vmem:[#allocation5 + $0x32c] ss:$16 sps:$4 sm:$0xff]  }
 0x14d   :  { %v4404_v31 = vld [vmem:[#allocation5 + $0x128] ss:$16 sps:$4 sm:$0xff]  }
 0x14e   :  { %2236 = vmatpush1.bf16.msra.mxu0 %v4326_v32  ;;  %v4407_v32 = vld [vmem:[#allocation5 + $0x328] ss:$16 sps:$4 sm:$0xff]  }
 0x14f   :  { %2277 = vmatpush1.bf16.msra.mxu1 %v4329_v33  ;;  %2237 = vmatprep.subr.bf16.mxu0 %v4334_v34  ;;  %v4412_v33 = vld [vmem:[#allocation5 + $0x10c] ss:$16 sps:$4 sm:$0xff]  }
 0x150   :  { %2278 = vmatprep.subr.bf16.mxu1 %v4337_v35  ;;  %v4415_v34 = vld [vmem:[#allocation5 + $0x30c] ss:$16 sps:$4 sm:$0xff]   ;;  %v4410_v35 = vld [vmem:[#allocation5 + $0x108] ss:$16 sps:$4 sm:$0xff]  }
 0x152   :  { %2238 = vmatpush1.bf16.msra.mxu0 %v4332_v36  ;;  %v4413_v36 = vld [vmem:[#allocation5 + $0x308] ss:$16 sps:$4 sm:$0xff]  }
 0x153   :  { %2279 = vmatpush1.bf16.msra.mxu1 %v4335_v37  ;;  %2239 = vmatprep.subr.bf16.mxu0 %v4340_v38  ;;  %v4418_v37 = vld [vmem:[#allocation5 + $0x4ec] ss:$16 sps:$4 sm:$0xff]  }
 0x154   :  { %2280 = vmatprep.subr.bf16.mxu1 %v4343_v39  ;;  %v4421_v38 = vld [vmem:[#allocation5 + $0x6ec] ss:$16 sps:$4 sm:$0xff]   ;;  %v4416_v39 = vld [vmem:[#allocation5 + $0x4e8] ss:$16 sps:$4 sm:$0xff]  }
 0x156   :  { %2240 = vmatpush1.bf16.msra.mxu0 %v4338_v40  ;;  %v4419_v40 = vld [vmem:[#allocation5 + $0x6e8] ss:$16 sps:$4 sm:$0xff]  }
 0x157   :  { %2281 = vmatpush1.bf16.msra.mxu1 %v4341_v43  ;;  %2241 = vmatprep.subr.bf16.mxu0 %v4346_v41  ;;  %v4424_v43 = vld [vmem:[#allocation5 + $0x4cc] ss:$16 sps:$4 sm:$0xff]  }
 0x158   :  { %2282 = vmatprep.subr.bf16.mxu1 %v4349_v44  ;;  %v4427_v41 = vld [vmem:[#allocation5 + $0x6cc] ss:$16 sps:$4 sm:$0xff]   ;;  %v4422_v44 = vld [vmem:[#allocation5 + $0x4c8] ss:$16 sps:$4 sm:$0xff]  }
 0x15a   :  { %2242 = vmatpush1.bf16.msra.mxu0 %v4344_v47  ;;  %v4425_v47 = vld [vmem:[#allocation5 + $0x6c8] ss:$16 sps:$4 sm:$0xff]  }
 0x15b   :  { %2283 = vmatpush1.bf16.msra.mxu1 %v4347_v45  ;;  %2243 = vmatprep.subr.bf16.mxu0 %v4352_v48  ;;  %v4430_v45 = vld [vmem:[#allocation5 + $0x4ac] ss:$16 sps:$4 sm:$0xff]  }
 0x15c   :  { %2284 = vmatprep.subr.bf16.mxu1 %v4355_v49  ;;  %v4433_v48 = vld [vmem:[#allocation5 + $0x6ac] ss:$16 sps:$4 sm:$0xff]   ;;  %v4428_v49 = vld [vmem:[#allocation5 + $0x4a8] ss:$16 sps:$4 sm:$0xff]  }
 0x15e   :  { %2244 = vmatpush1.bf16.msra.mxu0 %v4350_v50  ;;  %v4436_v50 = vld [vmem:[#allocation5 + $0x48c] ss:$16 sps:$4 sm:$0xff]  }
 0x15f   :  { %2285 = vmatpush1.bf16.msra.mxu1 %v4353_v51  ;;  %2245 = vmatprep.subr.bf16.mxu0 %v4358_v52  ;;  %v4434_v51 = vld [vmem:[#allocation5 + $0x488] ss:$16 sps:$4 sm:$0xff]   ;;  %v4442_v52 = vld [vmem:[#allocation5 + $0x46c] ss:$16 sps:$4 sm:$0xff]  }
 0x160   :  { %2286 = vmatprep.subr.bf16.mxu1 %v4361_v53  ;;  %v4445_v53 = vld [vmem:[#allocation5 + $0x66c] ss:$16 sps:$4 sm:$0xff]  }
 0x162   :  { %2246 = vmatpush1.bf16.msra.mxu0 %v4356_v54  ;;  %v4443_v54 = vld [vmem:[#allocation5 + $0x668] ss:$16 sps:$4 sm:$0xff]  }
 0x163   :  { %2287 = vmatpush1.bf16.msra.mxu1 %v4359_v55  ;;  %2247 = vmatprep.subr.bf16.mxu0 %v4364_v56  ;;  %v4448_v55 = vld [vmem:[#allocation5 + $0x44c] ss:$16 sps:$4 sm:$0xff]  }
 0x164   :  { %2288 = vmatprep.subr.bf16.mxu1 %v4367_v57  ;;  %v4451_v56 = vld [vmem:[#allocation5 + $0x64c] ss:$16 sps:$4 sm:$0xff]   ;;  %v4446_v57 = vld [vmem:[#allocation5 + $0x448] ss:$16 sps:$4 sm:$0xff]  }
 0x166   :  { %2248 = vmatpush1.bf16.msra.mxu0 %v4362_v58  ;;  %v4449_v58 = vld [vmem:[#allocation5 + $0x648] ss:$16 sps:$4 sm:$0xff]  }
 0x167   :  { %2289 = vmatpush1.bf16.msra.mxu1 %v4365_v59  ;;  %2249 = vmatprep.subr.bf16.mxu0 %v4370_v60  ;;  %v4454_v59 = vld [vmem:[#allocation5 + $0x42c] ss:$16 sps:$4 sm:$0xff]  }
 0x168   :  { %2290 = vmatprep.subr.bf16.mxu1 %v4373_v62  ;;  %v4457_v60 = vld [vmem:[#allocation5 + $0x62c] ss:$16 sps:$4 sm:$0xff]   ;;  %v4452_v62 = vld [vmem:[#allocation5 + $0x428] ss:$16 sps:$4 sm:$0xff]  }
 0x16a   :  { %2250 = vmatpush2.bf16.msra.mxu0 %v4368_v63  ;;  %v4455_v63 = vld [vmem:[#allocation5 + $0x628] ss:$16 sps:$4 sm:$0xff]  }
 0x16b   :  { %2291 = vmatpush2.bf16.msra.mxu1 %v4371_v2  ;;  %2251 = vmatprep.subr.bf16.mxu0 %v4376_v3  ;;  %v4460_v2 = vld [vmem:[#allocation5 + $0x40c] ss:$16 sps:$4 sm:$0xff]  }
 0x16c   :  { %2292 = vmatprep.subr.bf16.mxu1 %v4379_v4  ;;  %v4463_v3 = vld [vmem:[#allocation5 + $0x60c] ss:$16 sps:$4 sm:$0xff]   ;;  %v4458_v4 = vld [vmem:[#allocation5 + $0x408] ss:$16 sps:$4 sm:$0xff]  }
 0x16e   :  { %2252 = vmatpush2.bf16.msra.mxu0 %v4374_v5  ;;  %v4461_v5 = vld [vmem:[#allocation5 + $0x608] ss:$16 sps:$4 sm:$0xff]  }
 0x16f   :  { %2293 = vmatpush2.bf16.msra.mxu1 %v4377_v6  ;;  %2253 = vmatprep.subr.bf16.mxu0 %v4382_v7  ;;  %v4466_v6 = vld [vmem:[#allocation5 + $0x5ec] ss:$16 sps:$4 sm:$0xff]  }
 0x170   :  { %2294 = vmatprep.subr.bf16.mxu1 %v4385_v8  ;;  %v4469_v7 = vld [vmem:[#allocation5 + $0x7ec] ss:$16 sps:$4 sm:$0xff]   ;;  %v4464_v8 = vld [vmem:[#allocation5 + $0x5e8] ss:$16 sps:$4 sm:$0xff]  }
 0x172   :  { %2254 = vmatpush2.bf16.msra.mxu0 %v4380_v9  ;;  %v4467_v9 = vld [vmem:[#allocation5 + $0x7e8] ss:$16 sps:$4 sm:$0xff]  }
 0x173   :  { %2295 = vmatpush2.bf16.msra.mxu1 %v4383_v10  ;;  %2255 = vmatprep.subr.bf16.mxu0 %v4388_v11  ;;  %v4472_v10 = vld [vmem:[#allocation5 + $0x5cc] ss:$16 sps:$4 sm:$0xff]  }
 0x174   :  { %2296 = vmatprep.subr.bf16.mxu1 %v4391_v12  ;;  %v4475_v11 = vld [vmem:[#allocation5 + $0x7cc] ss:$16 sps:$4 sm:$0xff]   ;;  %v4470_v12 = vld [vmem:[#allocation5 + $0x5c8] ss:$16 sps:$4 sm:$0xff]  }
 0x176   :  { %2256 = vmatpush2.bf16.msra.mxu0 %v4386_v13  ;;  %v4473_v13 = vld [vmem:[#allocation5 + $0x7c8] ss:$16 sps:$4 sm:$0xff]  }
 0x177   :  { %2297 = vmatpush2.bf16.msra.mxu1 %v4389_v14  ;;  %2257 = vmatprep.subr.bf16.mxu0 %v4394_v15  ;;  %v4478_v14 = vld [vmem:[#allocation5 + $0x5ac] ss:$16 sps:$4 sm:$0xff]  }
 0x178   :  { %2298 = vmatprep.subr.bf16.mxu1 %v4397_v17  ;;  %v4481_v15 = vld [vmem:[#allocation5 + $0x7ac] ss:$16 sps:$4 sm:$0xff]   ;;  %v4476_v17 = vld [vmem:[#allocation5 + $0x5a8] ss:$16 sps:$4 sm:$0xff]  }
 0x17a   :  { %2258 = vmatpush2.bf16.msra.mxu0 %v4392_v19  ;;  %v4479_v19 = vld [vmem:[#allocation5 + $0x7a8] ss:$16 sps:$4 sm:$0xff]  }
 0x17b   :  { %2299 = vmatpush2.bf16.msra.mxu1 %v4395_v23  ;;  %2259 = vmatprep.subr.bf16.mxu0 %v4400_v24  ;;  %v4484_v23 = vld [vmem:[#allocation5 + $0x58c] ss:$16 sps:$4 sm:$0xff]  }
 0x17c   :  { %2300 = vmatprep.subr.bf16.mxu1 %v4403_v26  ;;  %v4487_v24 = vld [vmem:[#allocation5 + $0x78c] ss:$16 sps:$4 sm:$0xff]   ;;  %v4482_v26 = vld [vmem:[#allocation5 + $0x588] ss:$16 sps:$4 sm:$0xff]  }
 0x17e   :  { %2260 = vmatpush2.bf16.msra.mxu0 %v4398_v1  ;;  %v4485_v1 = vld [vmem:[#allocation5 + $0x788] ss:$16 sps:$4 sm:$0xff]  }
 0x17f   :  { %2301 = vmatpush2.bf16.msra.mxu1 %v4401_v61  ;;  %2261 = vmatprep.subr.bf16.mxu0 %v4406_v29  ;;  %v4490_v61 = vld [vmem:[#allocation5 + $0x56c] ss:$16 sps:$4 sm:$0xff]  }
 0x180   :  { %2302 = vmatprep.subr.bf16.mxu1 %v4409_v30  ;;  %v4493_v29 = vld [vmem:[#allocation5 + $0x76c] ss:$16 sps:$4 sm:$0xff]   ;;  %v4488_v30 = vld [vmem:[#allocation5 + $0x568] ss:$16 sps:$4 sm:$0xff]  }
 0x182   :  { %2262 = vmatpush2.bf16.msra.mxu0 %v4404_v31  ;;  %v4491_v31 = vld [vmem:[#allocation5 + $0x768] ss:$16 sps:$4 sm:$0xff]  }
 0x183   :  { %2303 = vmatpush2.bf16.msra.mxu1 %v4407_v32  ;;  %2263 = vmatprep.subr.bf16.mxu0 %v4412_v33  ;;  %v4496_v32 = vld [vmem:[#allocation5 + $0x54c] ss:$16 sps:$4 sm:$0xff]  }
 0x184   :  { %2304 = vmatprep.subr.bf16.mxu1 %v4415_v34  ;;  %v4499_v33 = vld [vmem:[#allocation5 + $0x74c] ss:$16 sps:$4 sm:$0xff]   ;;  %v4494_v34 = vld [vmem:[#allocation5 + $0x548] ss:$16 sps:$4 sm:$0xff]  }
 0x186   :  { %2264 = vmatpush2.bf16.msra.mxu0 %v4410_v35  ;;  %v4497_v35 = vld [vmem:[#allocation5 + $0x748] ss:$16 sps:$4 sm:$0xff]  }
 0x187   :  { %2305 = vmatpush2.bf16.msra.mxu1 %v4413_v36  ;;  %2315 = vmatprep.subr.bf16.mxu0 %v4418_v37  ;;  %v4502_v36 = vld [vmem:[#allocation5 + $0x52c] ss:$16 sps:$4 sm:$0xff]  }
 0x188   :  { %2356 = vmatprep.subr.bf16.mxu1 %v4421_v38  ;;  %v4505_v37 = vld [vmem:[#allocation5 + $0x72c] ss:$16 sps:$4 sm:$0xff]   ;;  %v4500_v38 = vld [vmem:[#allocation5 + $0x528] ss:$16 sps:$4 sm:$0xff]  }
 0x189   :  { %2266 = vmatmul.mubr.bf16.vlgmr.msra.gmra.mxu0 %v4814_v46  ;;  %v4431_v46 = vld [vmem:[#allocation5 + $0x6a8] ss:$16 sps:$4 sm:$0xff]  }
 0x18a   :  { %2307 = vmatmul.mubr.bf16.vlgmr.msra.gmra.mxu1 %v4810_v42  ;;  %2316 = vmatpush1.bf16.msra.mxu0 %v4416_v39  ;;  %v4439_v42 = vld [vmem:[#allocation5 + $0x68c] ss:$16 sps:$4 sm:$0xff]   ;;  %v4503_v39 = vld [vmem:[#allocation5 + $0x728] ss:$16 sps:$4 sm:$0xff]  }
 0x18b   :  { %2347 = vmatprep.mubr.bf16.mxu0 %v4830_v16  ;;  %2357 = vmatpush1.bf16.msra.mxu1 %v4419_v40  ;;  %v4437_v16 = vld [vmem:[#allocation5 + $0x688] ss:$16 sps:$4 sm:$0xff]   ;;  %v4508_v40 = vld [vmem:[#allocation5 + $0x50c] ss:$16 sps:$4 sm:$0xff]  }
 0x18c   :  { %2388 = vmatprep.mubr.bf16.mxu1 %v4832_v25  ;;  %2317 = vmatprep.subr.bf16.mxu0 %v4424_v43  ;;  %v4440_v25 = vld [vmem:[#allocation5 + $0x468] ss:$16 sps:$4 sm:$0xff]   ;;  %v4511_v43 = vld [vmem:[#allocation5 + $0x70c] ss:$16 sps:$4 sm:$0xff]  }
 0x18d   :  { %2358 = vmatprep.subr.bf16.mxu1 %v4427_v41  ;;  %v4506_v41 = vld [vmem:[#allocation5 + $0x508] ss:$16 sps:$4 sm:$0xff]  }
 0x18e   :  { %2318 = vmatpush1.bf16.msra.mxu0 %v4422_v44  ;;  %v4509_v44 = vld [vmem:[#allocation5 + $0x708] ss:$16 sps:$4 sm:$0xff]  }
 0x18f   :  { %2359 = vmatpush1.bf16.msra.mxu1 %v4425_v47  ;;  %2319 = vmatprep.subr.bf16.mxu0 %v4430_v45  ;;  %v4514_v47 = vld [vmem:[#allocation7 + $0x74] ss:$8 sps:$4 sm:$0xff]   ;;  %v4512_v45 = vld [vmem:[#allocation7 + $0x70] ss:$8 sps:$4 sm:$0xff]  }
 0x190   :  { %2360 = vmatprep.subr.bf16.mxu1 %v4433_v48  ;;  %v4517_v48 = vld [vmem:[#allocation7 + $0x64] ss:$8 sps:$4 sm:$0xff]  }
 0x192   :  { %2320 = vmatpush1.bf16.msra.mxu0 %v4428_v49 }
 0x193   :  { %2361 = vmatpush1.bf16.msra.mxu1 %v4431_v46  ;;  %2321 = vmatprep.subr.bf16.mxu0 %v4436_v50  ;;  %v4515_v50 = vld [vmem:[#allocation7 + $0x60] ss:$8 sps:$4 sm:$0xff]  }
 0x194   :  { %2362 = vmatprep.subr.bf16.mxu1 %v4439_v42 }
 0x196   :  { %2322 = vmatpush1.bf16.msra.mxu0 %v4434_v51  ;;  %v4520_v51 = vld [vmem:[#allocation7 + $0x54] ss:$8 sps:$4 sm:$0xff]  }
 0x197   :  { %2363 = vmatpush1.bf16.msra.mxu1 %v4437_v16  ;;  %2323 = vmatprep.subr.bf16.mxu0 %v4442_v52 }
 0x198   :  { %2364 = vmatprep.subr.bf16.mxu1 %v4445_v53 }
 0x19a   :  { %2324 = vmatpush1.bf16.msra.mxu0 %v4440_v25  ;;  %v4518_v25 = vld [vmem:[#allocation7 + $0x50] ss:$8 sps:$4 sm:$0xff]  }
 0x19b   :  { %2365 = vmatpush1.bf16.msra.mxu1 %v4443_v54  ;;  %2325 = vmatprep.subr.bf16.mxu0 %v4448_v55 }
 0x19c   :  { %2366 = vmatprep.subr.bf16.mxu1 %v4451_v56  ;;  %v4560_v56 = vld [vmem:[#allocation7 + $0x170] ss:$8 sps:$4 sm:$0xff]  }
 0x19e   :  { %2326 = vmatpush1.bf16.msra.mxu0 %v4446_v57  ;;  %v4565_v57 = vld [vmem:[#allocation7 + $0x164] ss:$8 sps:$4 sm:$0xff]  }
 0x19f   :  { %2367 = vmatpush1.bf16.msra.mxu1 %v4449_v58  ;;  %2327 = vmatprep.subr.bf16.mxu0 %v4454_v59  ;;  %v4521_v58 = vld [vmem:[#allocation7 + $0x40] ss:$8 sps:$4 sm:$0xff]   ;;  %v4526_v59 = vld [vmem:[#allocation7 + $0x34] ss:$8 sps:$4 sm:$0xff]  }
 0x1a0   :  { %2368 = vmatprep.subr.bf16.mxu1 %v4457_v60  ;;  %v4563_v60 = vld [vmem:[#allocation7 + $0x160] ss:$8 sps:$4 sm:$0xff]  }
 0x1a2   :  { %2328 = vmatpush1.bf16.msra.mxu0 %v4452_v62  ;;  %v4568_v62 = vld [vmem:[#allocation7 + $0x154] ss:$8 sps:$4 sm:$0xff]  }
 0x1a3   :  { %2369 = vmatpush1.bf16.msra.mxu1 %v4455_v63  ;;  %2329 = vmatprep.subr.bf16.mxu0 %v4460_v2  ;;  %v4524_v63 = vld [vmem:[#allocation7 + $0x30] ss:$8 sps:$4 sm:$0xff]   ;;  %v4529_v2 = vld [vmem:[#allocation7 + $0x24] ss:$8 sps:$4 sm:$0xff]  }
 0x1a4   :  { %2370 = vmatprep.subr.bf16.mxu1 %v4463_v3  ;;  %v4566_v3 = vld [vmem:[#allocation7 + $0x150] ss:$8 sps:$4 sm:$0xff]  }
 0x1a6   :  { %2330 = vmatpush1.bf16.msra.mxu0 %v4458_v4  ;;  %v4571_v4 = vld [vmem:[#allocation7 + $0x144] ss:$8 sps:$4 sm:$0xff]  }
 0x1a7   :  { %2371 = vmatpush1.bf16.msra.mxu1 %v4461_v5  ;;  %2331 = vmatprep.subr.bf16.mxu0 %v4466_v6  ;;  %v4527_v5 = vld [vmem:[#allocation7 + $0x20] ss:$8 sps:$4 sm:$0xff]   ;;  %v4532_v6 = vld [vmem:[#allocation7 + $0x14] ss:$8 sps:$4 sm:$0xff]  }
 0x1a8   :  { %2372 = vmatprep.subr.bf16.mxu1 %v4469_v7  ;;  %v4569_v7 = vld [vmem:[#allocation7 + $0x140] ss:$8 sps:$4 sm:$0xff]  }
 0x1aa   :  { %2332 = vmatpush2.bf16.msra.mxu0 %v4464_v8  ;;  %v4574_v8 = vld [vmem:[#allocation7 + $0x134] ss:$8 sps:$4 sm:$0xff]  }
 0x1ab   :  { %2373 = vmatpush2.bf16.msra.mxu1 %v4467_v9  ;;  %2333 = vmatprep.subr.bf16.mxu0 %v4472_v10  ;;  %v4530_v9 = vld [vmem:[#allocation7 + $0x10] ss:$8 sps:$4 sm:$0xff]   ;;  %v4535_v10 = vld [vmem:[#allocation7 + $0x4] ss:$8 sps:$4 sm:$0xff]  }
 0x1ac   :  { %2374 = vmatprep.subr.bf16.mxu1 %v4475_v11  ;;  %v4572_v11 = vld [vmem:[#allocation7 + $0x130] ss:$8 sps:$4 sm:$0xff]  }
 0x1ae   :  { %2334 = vmatpush2.bf16.msra.mxu0 %v4470_v12  ;;  %v4577_v12 = vld [vmem:[#allocation7 + $0x124] ss:$8 sps:$4 sm:$0xff]  }
 0x1af   :  { %2375 = vmatpush2.bf16.msra.mxu1 %v4473_v13  ;;  %2335 = vmatprep.subr.bf16.mxu0 %v4478_v14  ;;  %v4533_v13 = vld [vmem:[#allocation7] ss:$8 sps:$4 sm:$0xff]   ;;  %v4538_v14 = vld [vmem:[#allocation7 + $0xf4] ss:$8 sps:$4 sm:$0xff]  }
 0x1b0   :  { %2376 = vmatprep.subr.bf16.mxu1 %v4481_v15  ;;  %v4575_v15 = vld [vmem:[#allocation7 + $0x120] ss:$8 sps:$4 sm:$0xff]  }
 0x1b2   :  { %2336 = vmatpush2.bf16.msra.mxu0 %v4476_v17  ;;  %v4580_v17 = vld [vmem:[#allocation7 + $0x114] ss:$8 sps:$4 sm:$0xff]  }
 0x1b3   :  { %2377 = vmatpush2.bf16.msra.mxu1 %v4479_v19  ;;  %2337 = vmatprep.subr.bf16.mxu0 %v4484_v23  ;;  %v4536_v19 = vld [vmem:[#allocation7 + $0xf0] ss:$8 sps:$4 sm:$0xff]   ;;  %v4541_v23 = vld [vmem:[#allocation7 + $0xe4] ss:$8 sps:$4 sm:$0xff]  }
 0x1b4   :  { %2378 = vmatprep.subr.bf16.mxu1 %v4487_v24  ;;  %v4578_v24 = vld [vmem:[#allocation7 + $0x110] ss:$8 sps:$4 sm:$0xff]  }
 0x1b6   :  { %2338 = vmatpush2.bf16.msra.mxu0 %v4482_v26  ;;  %v4583_v26 = vld [vmem:[#allocation7 + $0x104] ss:$8 sps:$4 sm:$0xff]  }
 0x1b7   :  { %2379 = vmatpush2.bf16.msra.mxu1 %v4485_v1  ;;  %2339 = vmatprep.subr.bf16.mxu0 %v4490_v61  ;;  %v4539_v1 = vld [vmem:[#allocation7 + $0xe0] ss:$8 sps:$4 sm:$0xff]   ;;  %v4544_v61 = vld [vmem:[#allocation7 + $0xd4] ss:$8 sps:$4 sm:$0xff]  }
 0x1b8   :  { %2380 = vmatprep.subr.bf16.mxu1 %v4493_v29  ;;  %v4581_v29 = vld [vmem:[#allocation7 + $0x100] ss:$8 sps:$4 sm:$0xff]  }
 0x1ba   :  { %2340 = vmatpush2.bf16.msra.mxu0 %v4488_v30  ;;  %v4586_v30 = vld [vmem:[#allocation7 + $0x1f4] ss:$8 sps:$4 sm:$0xff]  }
 0x1bb   :  { %2381 = vmatpush2.bf16.msra.mxu1 %v4491_v31  ;;  %2341 = vmatprep.subr.bf16.mxu0 %v4496_v32  ;;  %v4542_v31 = vld [vmem:[#allocation7 + $0xd0] ss:$8 sps:$4 sm:$0xff]   ;;  %v4547_v32 = vld [vmem:[#allocation7 + $0xc4] ss:$8 sps:$4 sm:$0xff]  }
 0x1bc   :  { %2382 = vmatprep.subr.bf16.mxu1 %v4499_v33  ;;  %v4584_v33 = vld [vmem:[#allocation7 + $0x1f0] ss:$8 sps:$4 sm:$0xff]  }
 0x1be   :  { %2342 = vmatpush2.bf16.msra.mxu0 %v4494_v34  ;;  %v4589_v34 = vld [vmem:[#allocation7 + $0x1e4] ss:$8 sps:$4 sm:$0xff]  }
 0x1bf   :  { %2383 = vmatpush2.bf16.msra.mxu1 %v4497_v35  ;;  %2343 = vmatprep.subr.bf16.mxu0 %v4502_v36  ;;  %v4545_v35 = vld [vmem:[#allocation7 + $0xc0] ss:$8 sps:$4 sm:$0xff]   ;;  %v4550_v36 = vld [vmem:[#allocation7 + $0xb4] ss:$8 sps:$4 sm:$0xff]  }
 0x1c0   :  { %2384 = vmatprep.subr.bf16.mxu1 %v4505_v37  ;;  %v4587_v37 = vld [vmem:[#allocation7 + $0x1e0] ss:$8 sps:$4 sm:$0xff]  }
 0x1c2   :  { %2344 = vmatpush2.bf16.msra.mxu0 %v4500_v38  ;;  %v4592_v38 = vld [vmem:[#allocation7 + $0x1d4] ss:$8 sps:$4 sm:$0xff]  }
 0x1c3   :  { %2385 = vmatpush2.bf16.msra.mxu1 %v4503_v39  ;;  %2345 = vmatprep.subr.bf16.mxu0 %v4508_v40  ;;  %v4548_v39 = vld [vmem:[#allocation7 + $0xb0] ss:$8 sps:$4 sm:$0xff]   ;;  %v4553_v40 = vld [vmem:[#allocation7 + $0xa4] ss:$8 sps:$4 sm:$0xff]  }
 0x1c4   :  { %2386 = vmatprep.subr.bf16.mxu1 %v4511_v43  ;;  %v4590_v43 = vld [vmem:[#allocation7 + $0x1d0] ss:$8 sps:$4 sm:$0xff]  }
 0x1c6   :  { %2346 = vmatpush2.bf16.msra.mxu0 %v4506_v41  ;;  %v4595_v41 = vld [vmem:[#allocation7 + $0x1c4] ss:$8 sps:$4 sm:$0xff]  }
 0x1c7   :  { %2387 = vmatpush2.bf16.msra.mxu1 %v4509_v44  ;;  %2801 = vmatprep.subr.bf16.mxu0 %v4514_v47  ;;  %v4551_v44 = vld [vmem:[#allocation7 + $0xa0] ss:$8 sps:$4 sm:$0xff]   ;;  %v4556_v47 = vld [vmem:[#allocation7 + $0x94] ss:$8 sps:$4 sm:$0xff]  }
 0x1c9   :  { %2348 = vmatmul.mubr.bf16.vlgmr.msra.gmra.mxu0 %v4844_v28  ;;  %v4855_v49 = vpop.f32.mrf.mxu0  ;;  %v4858_v46 = vpop.f32.mrf.mxu1  ;;  %v4523_v28 = vld [vmem:[#allocation7 + $0x44] ss:$8 sps:$4 sm:$0xff]  }
 0x1ca   :  { %2389 = vmatmul.mubr.bf16.vlgmr.msra.gmra.mxu1 %v4842_v27  ;;  %2802 = vmatpush1.bf16.msra.mxu0 %v4512_v45  ;;  %v4562_v27 = vld [vmem:[#allocation7 + $0x174] ss:$8 sps:$4 sm:$0xff]   ;;  %v4593_v45 = vld [vmem:[#allocation7 + $0x1c0] ss:$8 sps:$4 sm:$0xff]  }
 0x1cb   :  { %v4860_v42 = vpop.f32.mrf.mxu0  ;;  %2803 = vmatprep.subr.bf16.mxu0 %v4517_v48  ;;  %v4862_v16 = vpop.f32.mrf.mxu1  ;;  %2842 = vmatprep.subr.bf16.mxu1 %v4562_v27  ;;  %v4598_v48 = vld [vmem:[#allocation7 + $0x1b4] ss:$8 sps:$4 sm:$0xff]  }
 0x1cc   :  { %2843 = vmatpush1.bf16.msra.mxu1 %v4560_v56 }
 0x1cd   :  { %v2107_v52 = vpop.f32.mrf.mxu0  ;;  %v2148_v53 = vpop.f32.mrf.mxu1  ;;  %2844 = vmatprep.subr.bf16.mxu1 %v4565_v57 }
 0x1ce   :  { %2804 = vmatpush1.bf16.msra.mxu0 %v4515_v50  ;;  %v767_v50 = vld [vmem:[%s5119_s4] sm:$0xf]  ;;  %v4559_v52 = vld [vmem:[#allocation7 + $0x84] ss:$8 sps:$4 sm:$0xff]   ;;  %v4596_v53 = vld [vmem:[#allocation7 + $0x1b0] ss:$8 sps:$4 sm:$0xff]  }
 0x1cf   :  { %v2108_v54 = vpop.f32.mrf.mxu0  ;;  %2805 = vmatprep.subr.bf16.mxu0 %v4520_v51  ;;  %v2149_v55 = vpop.f32.mrf.mxu1  ;;  %v4554_v51 = vld [vmem:[#allocation7 + $0x90] ss:$8 sps:$4 sm:$0xff]  }
 0x1d0   :  { %2845 = vmatpush1.bf16.msra.mxu1 %v4563_v60  ;;  %v776_v54 = vrot.slane %v767_v50, %v4797_v21 }
 0x1d1   :  { %2846 = vmatprep.subr.bf16.mxu1 %v4568_v62 }
 0x1d2   :  { %2806 = vmatpush1.bf16.msra.mxu0 %v4518_v25  ;;  %v772_v25 = vrot.slane %v767_v50, %v4788_v0  ;;  %v2106_v56 = vadd.f32 %v4860_v42, %v776_v54 }
 0x1d3   :  { %2807 = vmatprep.subr.bf16.mxu0 %v4523_v28  ;;  %v4557_v28 = vld [vmem:[#allocation7 + $0x80] ss:$8 sps:$4 sm:$0xff]  }
 0x1d4   :  { %2847 = vmatpush1.bf16.msra.mxu1 %v4566_v3  ;;  %v2104_v55 = vadd.f32 %v4855_v49, %v772_v25  ;;  %v4604_v49 = vld [vmem:[#allocation7 + $0x194] ss:$8 sps:$4 sm:$0xff]  }
 0x1d5   :  { %2848 = vmatprep.subr.bf16.mxu1 %v4571_v4 }
 0x1d6   :  { %2808 = vmatpush1.bf16.msra.mxu0 %v4521_v58  ;;  %v2145_v27 = vadd.f32 %v4858_v46, %v2104_v55  ;;  %v4601_v58 = vld [vmem:[#allocation7 + $0x1a4] ss:$8 sps:$4 sm:$0xff]   ;;  %v4693_v55 = vmov 1983009808  }
 0x1d7   :  { %2809 = vmatprep.subr.bf16.mxu0 %v4526_v59  ;;  %v2147_v59 = vadd.f32 %v4862_v16, %v2106_v56  ;;  %v4607_v16 = vld [vmem:[#allocation7 + $0x184] ss:$8 sps:$4 sm:$0xff]   ;;  %v2887_v56 = vunpack.c.l.s4 %v4693_v55 }
 0x1d8   :  { %2849 = vmatpush1.bf16.msra.mxu1 %v4569_v7 }
 0x1d9   :  { %2850 = vmatprep.subr.bf16.mxu1 %v4574_v8  ;;  %v4602_v8 = vld [vmem:[#allocation7 + $0x190] ss:$8 sps:$4 sm:$0xff]  }
 0x1da   :  { %2810 = vmatpush1.bf16.msra.mxu0 %v4524_v63  ;;  %v4599_v63 = vld [vmem:[#allocation7 + $0x1a0] ss:$8 sps:$4 sm:$0xff]  }
 0x1db   :  { %2811 = vmatprep.subr.bf16.mxu0 %v4529_v2 }
 0x1dc   :  { %2851 = vmatpush1.bf16.msra.mxu1 %v4572_v11 }
 0x1dd   :  { %2852 = vmatprep.subr.bf16.mxu1 %v4577_v12 }
 0x1de   :  { %2812 = vmatpush1.bf16.msra.mxu0 %v4527_v5 }
 0x1df   :  { %2813 = vmatprep.subr.bf16.mxu0 %v4532_v6 }
 0x1e0   :  { %2853 = vmatpush1.bf16.msra.mxu1 %v4575_v15 }
 0x1e1   :  { %2854 = vmatprep.subr.bf16.mxu1 %v4580_v17 }
 0x1e2   :  { %2814 = vmatpush1.bf16.msra.mxu0 %v4530_v9 }
 0x1e3   :  { %2815 = vmatprep.subr.bf16.mxu0 %v4535_v10 }
 0x1e4   :  { %2855 = vmatpush1.bf16.msra.mxu1 %v4578_v24 }
 0x1e5   :  { %2856 = vmatprep.subr.bf16.mxu1 %v4583_v26 }
 0x1e6   :  { %2816 = vmatpush1.bf16.msra.mxu0 %v4533_v13  ;;  %v4605_v13 = vld [vmem:[#allocation7 + $0x180] ss:$8 sps:$4 sm:$0xff]  }
 0x1e7   :  { %2817 = vmatprep.subr.bf16.mxu0 %v4538_v14 }
 0x1e8   :  { %2857 = vmatpush1.bf16.msra.mxu1 %v4581_v29  ;;  %v780_v29 = vrot.slane %v767_v50, %v117_v20 }
 0x1e9   :  { %2858 = vmatprep.subr.bf16.mxu1 %v4586_v30  ;;  %v784_v30 = vrot.slane %v767_v50, %v121_v22 }
 0x1ea   :  { %2818 = vmatpush2.bf16.msra.mxu0 %v4536_v19 }
 0x1eb   :  { %2819 = vmatprep.subr.bf16.mxu0 %v4541_v23 }
 0x1ec   :  { %2859 = vmatpush2.bf16.msra.mxu1 %v4584_v33 }
 0x1ed   :  { %2860 = vmatprep.subr.bf16.mxu1 %v4589_v34 }
 0x1ee   :  { %2820 = vmatpush2.bf16.msra.mxu0 %v4539_v1 }
 0x1ef   :  { %2821 = vmatprep.subr.bf16.mxu0 %v4544_v61 }
 0x1f0   :  { %2861 = vmatpush2.bf16.msra.mxu1 %v4587_v37 }
 0x1f1   :  { %2862 = vmatprep.subr.bf16.mxu1 %v4592_v38 }
 0x1f2   :  { %2822 = vmatpush2.bf16.msra.mxu0 %v4542_v31 }
 0x1f3   :  { %2823 = vmatprep.subr.bf16.mxu0 %v4547_v32 }
 0x1f4   :  { %2863 = vmatpush2.bf16.msra.mxu1 %v4590_v43 }
 0x1f5   :  { %2864 = vmatprep.subr.bf16.mxu1 %v4595_v41 }
 0x1f6   :  { %2824 = vmatpush2.bf16.msra.mxu0 %v4545_v35 }
 0x1f7   :  { %2825 = vmatprep.subr.bf16.mxu0 %v4550_v36 }
 0x1f8   :  { %2865 = vmatpush2.bf16.msra.mxu1 %v4593_v45 }
 0x1f9   :  { %2866 = vmatprep.subr.bf16.mxu1 %v4598_v48 }
 0x1fa   :  { %2826 = vmatpush2.bf16.msra.mxu0 %v4548_v39 }
 0x1fb   :  { %2827 = vmatprep.subr.bf16.mxu0 %v4553_v40 }
 0x1fc   :  { %2867 = vmatpush2.bf16.msra.mxu1 %v4596_v53 }
 0x1fd   :  { %2868 = vmatprep.subr.bf16.mxu1 %v4601_v58  ;;  %v2888_v58 = vunpack.c.0.s8 %v2887_v56 }
 0x1fe   :  { %2828 = vmatpush2.bf16.msra.mxu0 %v4551_v44 }
 0x1ff   :  { %2829 = vmatprep.subr.bf16.mxu0 %v4556_v47 }
 0x200   :  { %2869 = vmatpush2.bf16.msra.mxu1 %v4599_v63 }
 0x201   :  { %2870 = vmatprep.subr.bf16.mxu1 %v4604_v49 }
 0x202   :  { %2830 = vmatpush2.bf16.msra.mxu0 %v4554_v51 }
 0x203   :  { %2831 = vmatprep.subr.bf16.mxu0 %v4559_v52 }
 0x204   :  { %2871 = vmatpush2.bf16.msra.mxu1 %v4602_v8 }
 0x205   :  { %2872 = vmatprep.subr.bf16.mxu1 %v4607_v16 }
 0x206   :  { %2832 = vmatpush2.bf16.msra.mxu0 %v4557_v28  ;;  %v2469_v28 = vld [vmem:[%s5121_s6] sm:$0x3]  ;;  %s4694_s6 = smov 80  }
 0x208   :  { %2873 = vmatpush2.bf16.msra.mxu1 %v4605_v13 }
 0x209   :  { %v2185_v57 = vpop.f32.mrf.mxu0  ;;  %v2226_v62 = vpop.f32.mrf.mxu1 }
 0x20a   :  { %v2186_v60 = vadd.f32 %v2185_v57, %v2145_v27  ;;  %v2474_v27 = vrot.slane %v2469_v28, %v4788_v0  ;;  %v2478_v57 = vrot.slane %v2469_v28, %v4797_v21 }
 0x20b   :  { %v2187_v2 = vpop.f32.mrf.mxu0  ;;  %v2228_v5 = vpop.f32.mrf.mxu1 }
 0x20c   :  { %v2227_v3 = vadd.f32 %v2226_v62, %v2186_v60  ;;  %v2188_v4 = vadd.f32 %v2187_v2, %v2147_v59  ;;  %v4883_v2 = vsub.s32 %v2888_v58, %v4785_v18 }
 0x20d   :  { %v2189_v6 = vpop.f32.mrf.mxu0  ;;  %v2230_v42 = vpop.f32.mrf.mxu1 }
 0x20e   :  { %v2229_v7 = vadd.f32 %v2228_v5, %v2188_v4  ;;  %v2397_v9 = vmax.f32 %v2227_v3, 0.0 }
 0x20f   :  { %v2190_v46 = vpop.f32.mrf.mxu0  ;;  %v2231_v11 = vpop.f32.mrf.mxu1 }
 0x210   :  { %v2398_v10 = vmax.f32 %v2229_v7, 0.0  ;;  %v2401_v14 = vpack.c.bf16 %v2397_v9, %v2397_v9 }
 0x212   :  { %v2402_v12 = vpack.c.bf16 %v2398_v10, %v2398_v10 }
 0x214   :  { %2833 = vmatprep.mubr.bf16.mxu0 %v2402_v12 }
 0x215   :  { %2834 = vmatmul.mubr.bf16.vlgmr.msra.gmra.mxu0 %v2401_v14 }
 0x249   :  { %v2267_v15 = vpop.f32.mrf.mxu0 }
 0x24a   :  { %v2308_v17 = vpop.f32.mrf.mxu1  ;;  %v2268_v31 = vadd.f32 %v2267_v15, %v780_v29 }
 0x24b   :  { %v2269_v19 = vpop.f32.mrf.mxu0 }
 0x24c   :  { %v2310_v23 = vpop.f32.mrf.mxu1  ;;  %v2270_v32 = vadd.f32 %v2269_v19, %v784_v30  ;;  %v2309_v33 = vadd.f32 %v2308_v17, %v2268_v31 }
 0x24d   :  { %v2271_v24 = vpop.f32.mrf.mxu0 }
 0x24e   :  { %v2312_v26 = vpop.f32.mrf.mxu1  ;;  %v2311_v35 = vadd.f32 %v2310_v23, %v2270_v32 }
 0x24f   :  { %v2272_v1 = vpop.f32.mrf.mxu0 }
 0x250   :  { %v2313_v61 = vpop.f32.mrf.mxu1 }
 0x289   :  { %v2349_v34 = vpop.f32.mrf.mxu0 }
 0x28a   :  { %v2350_v36 = vadd.f32 %v2349_v34, %v2309_v33  ;;  %v2390_v37 = vpop.f32.mrf.mxu1 }
 0x28b   :  { %v2351_v38 = vpop.f32.mrf.mxu0 }
 0x28c   :  { %v2391_v39 = vadd.f32 %v2390_v37, %v2350_v36  ;;  %v2352_v40 = vadd.f32 %v2351_v38, %v2311_v35  ;;  %v2392_v43 = vpop.f32.mrf.mxu1 }
 0x28d   :  { %v2353_v41 = vpop.f32.mrf.mxu0 }
 0x28e   :  { %v2393_v44 = vadd.f32 %v2392_v43, %v2352_v40  ;;  %v2394_v47 = vpop.f32.mrf.mxu1  ;;  %v2399_v45 = vmax.f32 %v2391_v39, 0.0 }
 0x28f   :  { %v2354_v48 = vpop.f32.mrf.mxu0 }
 0x290   :  { %v2400_v20 = vmax.f32 %v2393_v44, 0.0  ;;  %v2395_v51 = vpop.f32.mrf.mxu1  ;;  %v2403_v22 = vpack.c.bf16 %v2399_v45, %v2399_v45 }
 0x292   :  { %v2404_v52 = vpack.c.bf16 %v2400_v20, %v2400_v20 }
 0x294   :  { %2874 = vmatprep.mubr.bf16.mxu1 %v2404_v52 }
 0x295   :  { %2875 = vmatmul.mubr.bf16.vlgmr.msra.gmra.mxu1 %v2403_v22 }
 0x2d5   :  { %v2835_v50 = vpop.f32.mrf.mxu0 }
 0x2d6   :  { %v2836_v60 = vadd.f32 %v2835_v50, %v2474_v27 }
 0x2d7   :  { %v2837_v53 = vpop.f32.mrf.mxu0 }
 0x2d8   :  { %v2838_v62 = vadd.f32 %v2837_v53, %v2478_v57 }
 0x2d9   :  { %v2839_v25 = vpop.f32.mrf.mxu0 }
 0x2db   :  { %v2840_v54 = vpop.f32.mrf.mxu0 }
 0x355   :  { %v2876_v59 = vpop.f32.mrf.mxu1 }
 0x356   :  { %v2877_v3 = vadd.f32 %v2876_v59, %v2836_v60  ;;  %v4701_v59 = vmov 0.0  }
 0x357   :  { %v2878_v63 = vpop.f32.mrf.mxu1  ;;  %4067 = vmatprep.subr.mxu1 %v4701_v59  ;;  %4058 = vmatprep.subr.mxu0 %v4701_v59 }
 0x358   :  { %v2879_v4 = vadd.f32 %v2878_v63, %v2838_v62 }
 0x359   :  { %v2880_v5 = vpop.f32.mrf.mxu1 }
 0x35a   :  { %v2885_v6 = vcombine.low %v2877_v3, %v2879_v4 }
 0x35b   :  { %v2881_v49 = vpop.f32.mrf.mxu1 }
 0x35c   :  { %v2892_v0 = vrot.slane %v2885_v6, %v4883_v2 }
 0x35e   :  { %2897 = vst.msk [vmem:[#allocation2] sm:$0xf] %vm2896_vm5, %v2892_v0 }
 0x365   :  { %v4887_v21 = vld [vmem:[#allocation2] sm:$0xf] }
 0x366   :  { %v2899_v7 = vmul.f32 %v4887_v21, %v4887_v21 }
 0x368   :  { %2901 = vrot.lane.b32.xlu0 %v2899_v7, %s4694_s6 }
 0x36c   :  { %2905 = vrot.lane.b32.xlu0 %v2899_v7, %s4687_s16 }
 0x3da   :  { %v2902_v18 = vpop.permute.xlu0 %2901 }
 0x3db   :  { %v2904_v42 = vadd.f32 %v2902_v18, %v2899_v7 }
 0x3de   :  { %v2906_v8 = vpop.permute.xlu0 %2905 }
 0x3df   :  { %v2908_v9 = vadd.f32 %v2906_v8, %v2904_v42 }
 0x3e1   :  { %4608 = vrsqrt.f32 %v2908_v9 }
 0x3ee   :  { %v4609_v46 = vpop.eup %4608 }
 0x3ef   :  { %v2910_v10 = vmin.f32 %v4609_v46, 1e+12 }
 0x3f1   :  { %2917 = vrot.lane.b32.xlu0 %v2910_v10, %s4695_s28  ;;  %2913 = vrot.lane.b32.xlu1 %v2910_v10, %s4696_s29  ;;  %v4911_v24 = vmul.f32 %v2910_v10, %v4887_v21 }
 0x3f3   :  { %v3058_v18 = vadd.f32 1.0, %v4911_v24  ;;  %v3061_v42 = vsub.f32 1.0, %v4911_v24 }
 0x3f5   :  { %2922 = vrot.lane.b32.xlu1 %v4887_v21, %s4697_s30 }
 0x463   :  { %v2914_v11 = vpop.permute.xlu1 %2913  ;;  %v2918_v16 = vpop.permute.xlu0 %2917 }
 0x464   :  { %v4897_v12 = vmul.f32 %v2914_v11, %v4887_v21  ;;  %v4901_v17 = vmul.f32 %v2918_v16, %v4887_v21 }
 0x467   :  { %v2923_v13 = vpop.permute.xlu1 %2922 }
 0x468   :  { %v2932_v14 = vrot.slane %v2923_v13, 2  ;;  %v2926_v15 = vmul.f32 %v2923_v13, %v4897_v12  ;;  %v2925_v26 = vmul.f32 %v2923_v13, %v4911_v24 }
 0x46a   :  { %2928 = vrot.lane.b32.xlu1 %v2926_v15, %s4694_s6  ;;  %v2934_v19 = vsel %vm2933_vm6, %v2923_v13, %v2932_v14 }
 0x46b   :  { %v2936_v23 = vmul.f32 %v2934_v19, %v4901_v17 }
 0x46d   :  { %2938 = vrot.lane.b32.xlu0 %v2936_v23, %s4687_s16 }
 0x46e   :  { %2959 = vrot.lane.b32.xlu1 %v4901_v17, %s4687_s16 }
 0x471   :  { %2949 = vrot.lane.b32.xlu0 %v4897_v12, %s4694_s6 }
 0x4dc   :  { %v2929_v1 = vpop.permute.xlu1 %2928 }
 0x4dd   :  { %v2931_v61 = vadd.f32 %v2929_v1, %v2925_v26 }
 0x4df   :  { %v2939_v29 = vpop.permute.xlu0 %2938 }
 0x4e0   :  { %v2941_v30 = vadd.f32 %v2939_v29, %v2931_v61  ;;  %v2960_v31 = vpop.permute.xlu1 %2959 }
 0x4e2   :  { %v2962_v32 = vmul.f32 %v2960_v31, %v2941_v30  ;;  %v2942_v35 = vmul.f32 %v2941_v30, %v4911_v24 }
 0x4e3   :  { %v2950_v33 = vpop.permute.xlu0 %2949 }
 0x4e4   :  { %v2952_v34 = vmul.f32 %v2950_v33, %v2941_v30  ;;  %2964 = vrot.lane.b32.xlu1 %v2962_v32, %s4698_s9 }
 0x4e6   :  { %2954 = vrot.lane.b32.xlu0 %v2952_v34, %s4699_s10 }
 0x4e8   :  { %2944 = vrot.lane.b32.xlu1 %v2942_v35, %s4700_s11 }
 0x556   :  { %v2965_v36 = vpop.permute.xlu1 %2964 }
 0x557   :  { %v2966_v37 = vrot.slane %v2965_v36, 6 }
 0x558   :  { %v2955_v38 = vpop.permute.xlu0 %2954 }
 0x559   :  { %v2968_v39 = vsel %vm2967_vm7, %v2966_v37, %v2965_v36  ;;  %v2957_v40 = vsub.f32 %v4887_v21, %v2955_v38 }
 0x55a   :  { %v2970_v43 = vsub.f32 %v4887_v21, %v2968_v39  ;;  %v2945_v47 = vpop.permute.xlu1 %2944 }
 0x55b   :  { %v2972_v41 = vmul.f32 %v2957_v40, %v2957_v40  ;;  %v2947_v45 = vsub.f32 %v4887_v21, %v2945_v47 }
 0x55c   :  { %v2978_v44 = vmul.f32 %v2970_v43, %v2970_v43 }
 0x55d   :  { %2974 = vrot.lane.b32.xlu1 %v2972_v41, %s4694_s6  ;;  %v2971_v20 = vmul.f32 %v2947_v45, %v2947_v45 }
 0x55e   :  { %2980 = vrot.lane.b32.xlu0 %v2978_v44, %s4687_s16 }
 0x5cf   :  { %v2975_v48 = vpop.permute.xlu1 %2974 }
 0x5d0   :  { %v2981_v51 = vpop.permute.xlu0 %2980  ;;  %v2977_v22 = vadd.f32 %v2975_v48, %v2971_v20 }
 0x5d1   :  { %v2982_v52 = vrot.slane %v2981_v51, 2 }
 0x5d3   :  { %v2984_v50 = vsel %vm2983_vm8, %v2981_v51, %v2982_v52  ;;  %vm3072_vm8 = vcmask 195584  }
 0x5d4   :  { %v2986_v53 = vadd.f32 %v2984_v50, %v2977_v22 }
 0x5d6   :  { %4610 = vrsqrt.f32 %v2986_v53 }
 0x5e3   :  { %v4611_v25 = vpop.eup %4610 }
 0x5e4   :  { %v2988_v54 = vmin.f32 %v4611_v25, 1e+12 }
 0x5e6   :  { %2991 = vrot.lane.b32.xlu1 %v2988_v54, %s4696_s29  ;;  %2995 = vrot.lane.b32.xlu0 %v2988_v54, %s4695_s28  ;;  %v2989_v28 = vmul.f32 %v2988_v54, %v2947_v45 }
 0x5ea   :  { %3041 = vrot.lane.b32.xlu1 %v2989_v28, %s4700_s11 }
 0x5ee   :  { %3021 = vrot.lane.b32.xlu1 %v2989_v28, %s4699_s10 }
 0x658   :  { %v2996_v55 = vpop.permute.xlu0 %2995  ;;  %v2992_v27 = vpop.permute.xlu1 %2991 }
 0x659   :  { %v2997_v56 = vrot.slane %v2996_v55, 6  ;;  %v2994_v60 = vmul.f32 %v2992_v27, %v2957_v40 }
 0x65b   :  { %v2999_v57 = vsel %vm2998_vm9, %v2997_v56, %v2996_v55  ;;  %v3052_v3 = vsub.f32 0.0, %v2994_v60  ;;  %vm3006_vm9 = vcmask 457728  }
 0x65c   :  { %v4928_v58 = vmul.f32 %v2999_v57, %v2970_v43  ;;  %v4934_v62 = vpop.permute.xlu1 %3041 }
 0x65d   :  { %v3044_v63 = vmul.f32 %v4934_v62, %v4897_v12 }
 0x65e   :  { %3025 = vrot.lane.b32.xlu0 %v4928_v58, %s4690_s22 }
 0x660   :  { %v3022_v35 = vpop.permute.xlu1 %3021 }
 0x661   :  { %v3024_v36 = vmul.f32 %v3022_v35, %v4901_v17 }
 0x662   :  { %3037 = vrot.lane.b32.xlu0 %v2994_v60, %s4702_s12 }
 0x666   :  { %3046 = vrot.lane.b32.xlu0 %v3044_v63, %s4694_s6 }
 0x66a   :  { %3054 = vrot.lane.b32.xlu0 %v3052_v3, %s4702_s12 }
 0x66e   :  { %3011 = vrot.lane.b32.xlu0 %v2994_v60, %s4700_s11 }
 0x672   :  { %3003 = vrot.lane.b32.xlu0 %v4928_v58, %s4702_s12 }
 0x6d0   :  { %v3026_v4 = vpop.permute.xlu0 %3025 }
 0x6d1   :  { %v3027_v5 = vrot.slane %v3026_v4, 2 }
 0x6d3   :  { %v3029_v6 = vsel %vm3028_vm10, %v3026_v4, %v3027_v5 }
 0x6d4   :  { %v3031_v49 = vmul.f32 %v3029_v6, %v4911_v24  ;;  %v3038_v0 = vpop.permute.xlu0 %3037 }
 0x6d5   :  { %v3040_v7 = vmul.f32 %v3038_v0, %v4911_v24  ;;  %vm3051_vm11 = vcmp.gt.f32.partialorder %v4911_v24, %v3038_v0  ;;  %v3066_v46 = vadd.f32 %v3058_v18, %v3038_v0  ;;  %v3059_v10 = vsub.f32 %v3058_v18, %v3038_v0 }
 0x6d6   :  { %3033 = vrot.lane.b32.xlu1 %v3031_v49, %s4695_s28  ;;  %v3062_v11 = vadd.f32 %v3061_v42, %v3038_v0  ;;  %v3064_v16 = vsub.f32 %v3061_v42, %v3038_v0  ;;  %vm3087_vm14 = vmxor %vm3051_vm11, %vm4703_vm13 }
 0x6d8   :  { %v3047_v8 = vpop.permute.xlu0 %3046 }
 0x6d9   :  { %v3049_v9 = vsub.f32 %v3040_v7, %v3047_v8  ;;  %v3076_v8 = vadd.f32 %v4934_v62, %v4897_v12 }
 0x6db   :  { %vm3050_vm12 = vcmp.lt.f32.partialorder %v3049_v9, 1e-06  ;;  %v3067_v13 = vadd.f32 %v3066_v46, %v3049_v9  ;;  %v3060_v14 = vsub.f32 %v3059_v10, %v3049_v9  ;;  %v3063_v15 = vsub.f32 %v3062_v11, %v3049_v9 }
 0x6dc   :  { %vm3084_vm15 = vmand %vm3050_vm12, %vm3051_vm11  ;;  %v3055_v19 = vpop.permute.xlu0 %3054  ;;  %v3065_v23 = vadd.f32 %v3064_v16, %v3049_v9 }
 0x6dd   :  { %vm3088_vm0 = vmand %vm3050_vm12, %vm3087_vm14  ;;  %vm3057_vm1 = vcmp.lt.f32.partialorder %v4911_v24, %v3055_v19  ;;  %v4954_v26 = vsel %vm3084_vm15, 1.0, %v4701_v59 }
 0x6de   :  { %vm3091_vm2 = vmxor %vm3050_vm12, %vm4703_vm13  ;;  %v4035_v1 = vsel %vm3088_vm0, 1.0, %v4701_v59  ;;  %v4959_v61 = vmul.f32 %v4954_v26, %v3060_v14 }
 0x6df   :  { %vm3092_vm4 = vmand %vm3091_vm2, %vm3057_vm1  ;;  %v3100_v29 = vmul.f32 %v4035_v1, %v3063_v15  ;;  %v4123_v34 = vpack.i.bf16 %v4954_v26, %v4035_v1 }
 0x6e0   :  { %v4036_v30 = vsel %vm3092_vm4, 1.0, %v4701_v59  ;;  %vm3095_vm5 = vmxor %vm3057_vm1, %vm4703_vm13  ;;  %v3012_v40 = vpop.permute.xlu0 %3011  ;;  %vm3124_vm13 = vcmask 588800  }
 0x6e1   :  { %vm3096_vm6 = vmand %vm3091_vm2, %vm3095_vm5  ;;  %v3101_v31 = vadd.f32 %v3100_v29, %v4959_v61  ;;  %v3102_v24 = vmul.f32 %v4036_v30, %v3065_v23  ;;  %v4118_v39 = vpack.i.bf16 %v4035_v1, %v4036_v30  ;;  %v3014_v43 = vmul.f32 %v3012_v40, %v4901_v17 }
 0x6e2   :  { %v4037_v32 = vsel %vm3096_vm6, 1.0, %v4701_v59 }
 0x6e3   :  { %3167 = vrot.lane.b32.xlu0 %v4037_v32, %s4698_s9  ;;  %v3103_v33 = vadd.f32 %v3102_v24, %v3101_v31  ;;  %v4976_v41 = vmul.f32 %v4037_v32, %v3067_v13 }
 0x6e4   :  { %v3004_v47 = vpop.permute.xlu0 %3003 }
 0x6e5   :  { %v3105_v44 = vadd.f32 %v4976_v41, %v3103_v33  ;;  %v3005_v20 = vrot.slane %v3004_v47, 2 }
 0x6e7   :  { %4124 = vrot.lane.b32.xlu0 %v4123_v34, %s4696_s29  ;;  %4612 = vrsqrt.f32 %v3105_v44  ;;  %v3083_v34 = vsub.f32 %v4897_v12, %v4934_v62 }
 0x6f4   :  { %v4613_v6 = vpop.eup %4612 }
 0x6f5   :  { %v3107_v42 = vmul.f32 0.5, %v4613_v6 }
 0x748   :  { %v3034_v37 = vpop.permute.xlu1 %3033 }
 0x749   :  { %v3036_v38 = vsub.f32 %v3024_v36, %v3034_v37 }
 0x74b   :  { %3069 = vrot.lane.b32.xlu1 %v3036_v38, %s4700_s11 }
 0x74f   :  { %4119 = vrot.lane.b32.xlu1 %v4118_v39, %s4698_s9 }
 0x753   :  { %3016 = vrot.lane.b32.xlu1 %v3014_v43, %s4694_s6 }
 0x755   :  { %v3168_v55 = vpop.permute.xlu0 %3167 }
 0x756   :  { %v3169_v0 = vrot.slane %v3168_v55, 6 }
 0x757   :  { %3077 = vrot.lane.b32.xlu1 %v4901_v17, %s4694_s6  ;;  %v3007_v17 = vsel %vm3006_vm9, %v3004_v47, %v3005_v20 }
 0x758   :  { %v3009_v56 = vmul.f32 %v3007_v17, %v4897_v12  ;;  %v3170_v9 = vsel %vm2967_vm7, %v3169_v0, %v3168_v55 }
 0x759   :  { %v4125_v49 = vpop.permute.xlu0 %4124 }
 0x75a   :  { %v4126_v7 = vunpack.i.l.bf16 %v4125_v49  ;;  %v4127_v13 = vunpack.i.h.bf16 %v4125_v49 }
 0x75b   :  { %3129 = vrot.lane.b32.xlu1 %v4036_v30, %s4696_s29 }
 0x75c   :  { %v3154_v46 = vmul.f32 %v4126_v7, %v3076_v8  ;;  %v3184_v1 = vmul.f32 %v4127_v13, %v3076_v8 }
 0x7bd   :  { %v3070_v45 = vpop.permute.xlu1 %3069 }
 0x7be   :  { %v3071_v48 = vrot.slane %v3070_v45, 6 }
 0x7c0   :  { %v3073_v52 = vsel %vm3072_vm8, %v3071_v48, %v3070_v45 }
 0x7c1   :  { %v4120_v51 = vpop.permute.xlu1 %4119  ;;  %v3082_v54 = vadd.f32 %v3073_v52, %v4928_v58  ;;  %v4990_v18 = vsub.f32 %v4928_v58, %v3073_v52 }
 0x7c2   :  { %v4122_v22 = vunpack.i.h.bf16 %v4120_v51  ;;  %v4121_v50 = vunpack.i.l.bf16 %v4120_v51 }
 0x7c3   :  { %v3172_v10 = vmul.f32 %v3170_v9, %v4990_v18 }
 0x7c4   :  { %v3215_v53 = vrot.slane %v4122_v22, 6  ;;  %v3192_v25 = vrot.slane %v4121_v50, 6 }
 0x7c5   :  { %v3017_v28 = vpop.permute.xlu1 %3016 }
 0x7c6   :  { %v3216_v27 = vsel %vm2967_vm7, %v3215_v53, %v4122_v22  ;;  %v3193_v57 = vsel %vm2967_vm7, %v3192_v25, %v4121_v50  ;;  %v3019_v3 = vsub.f32 %v3009_v56, %v3017_v28 }
 0x7c7   :  { %v3218_v60 = vmul.f32 %v3216_v27, %v3082_v54  ;;  %v3195_v63 = vmul.f32 %v3193_v57, %v3082_v54 }
 0x7c9   :  { %v3078_v4 = vpop.permute.xlu1 %3077  ;;  %3220 = vrot.lane.b32.xlu0 %v3218_v60, %s4702_s12  ;;  %3197 = vrot.lane.b32.xlu1 %v3195_v63, %s4702_s12 }
 0x7ca   :  { %v3081_v5 = vsub.f32 %v3019_v3, %v3078_v4  ;;  %v3080_v16 = vadd.f32 %v3078_v4, %v3019_v3 }
 0x7cc   :  { %v3119_v12 = vmul.f32 %v4126_v7, %v3081_v5 }
 0x7cd   :  { %3186 = vrot.lane.b32.xlu0 %v3100_v29, %s4696_s29  ;;  %3203 = vrot.lane.b32.xlu1 %v4037_v32, %s4696_s29  ;;  %v3130_v11 = vpop.permute.xlu1 %3129 }
 0x7ce   :  { %v3160_v58 = vmul.f32 %v3130_v11, %v3080_v16  ;;  %v3132_v62 = vmul.f32 %v3130_v11, %v3083_v34 }
 0x7d1   :  { %3227 = vrot.lane.b32.xlu0 %v3102_v24, %s4696_s29  ;;  %3208 = vrot.lane.b32.xlu1 %v3107_v42, %s4696_s29  ;;  %v3212_v24 = vmul.f32 %v4127_v13, %v3080_v16 }
 0x7d5   :  { %3156 = vrot.lane.b32.xlu0 %v3154_v46, %s4694_s6  ;;  %3174 = vrot.lane.b32.xlu1 %v3172_v10, %s4690_s22 }
 0x7d9   :  { %3162 = vrot.lane.b32.xlu0 %v3160_v58, %s4694_s6 }
 0x83b   :  { %v3221_v14 = vpop.permute.xlu0 %3220  ;;  %v3198_v15 = vpop.permute.xlu1 %3197 }
 0x83c   :  { %v3222_v19 = vrot.slane %v3221_v14, 2  ;;  %v3199_v23 = vrot.slane %v3198_v15, 2 }
 0x83e   :  { %v3223_v29 = vsel %vm3006_vm9, %v3221_v14, %v3222_v19  ;;  %v3200_v33 = vsel %vm3006_vm9, %v3198_v15, %v3199_v23 }
 0x83f   :  { %v3187_v30 = vpop.permute.xlu0 %3186  ;;  %v3204_v31 = vpop.permute.xlu1 %3203  ;;  %v3225_v37 = vadd.f32 %v3223_v29, %v3212_v24 }
 0x840   :  { %v3189_v32 = vadd.f32 %v3187_v30, %v3184_v1  ;;  %v3206_v36 = vmul.f32 %v3204_v31, %v3081_v5  ;;  %v3231_v39 = vmul.f32 %v3204_v31, %v3083_v34  ;;  %v4704_v30 = vmov 1.0  }
 0x842   :  { %v3202_v35 = vadd.f32 %v3200_v33, %v3189_v32 }
 0x843   :  { %v3228_v38 = vpop.permute.xlu0 %3227  ;;  %v3209_v44 = vpop.permute.xlu1 %3208 }
 0x844   :  { %v3230_v40 = vadd.f32 %v3228_v38, %v3225_v37  ;;  %v3207_v43 = vadd.f32 %v3206_v36, %v3202_v35 }
 0x846   :  { %v3232_v47 = vadd.f32 %v3231_v39, %v3230_v40  ;;  %v5005_v45 = vmul.f32 %v3209_v44, %v3207_v43 }
 0x847   :  { %v3157_v52 = vpop.permute.xlu0 %3156  ;;  %v3175_v22 = vpop.permute.xlu1 %3174 }
 0x848   :  { %v5007_v48 = vmul.f32 %v3232_v47, %v3209_v44  ;;  %v3235_v20 = vmul.f32 %v5005_v45, %v5005_v45  ;;  %v3159_v17 = vadd.f32 %v3157_v52, %v4959_v61  ;;  %v3176_v53 = vrot.slane %v3175_v22, 2 }
 0x84a   :  { %v3241_v51 = vmul.f32 %v5007_v48, %v5007_v48  ;;  %3237 = vrot.lane.b32.xlu1 %v3235_v20, %s4694_s6  ;;  %v3177_v54 = vsel %vm3028_vm10, %v3175_v22, %v3176_v53 }
 0x84b   :  { %v3163_v50 = vpop.permute.xlu0 %3162 }
 0x84c   :  { %3243 = vrot.lane.b32.xlu0 %v3241_v51, %s4694_s6  ;;  %v3165_v25 = vadd.f32 %v3163_v50, %v3159_v17 }
 0x84e   :  { %3109 = vrot.lane.b32.xlu1 %v4954_v26, %s4698_s9  ;;  %v3179_v26 = vadd.f32 %v3177_v54, %v3165_v25 }
 0x850   :  { %3121 = vrot.lane.b32.xlu0 %v3119_v12, %s4699_s10  ;;  %v5024_v28 = vmul.f32 %v3179_v26, %v3107_v42 }
 0x852   :  { %3134 = vrot.lane.b32.xlu1 %v3132_v62, %s4699_s10  ;;  %v3234_v55 = vmul.f32 %v5024_v28, %v5024_v28 }
 0x854   :  { %3141 = vrot.lane.b32.xlu0 %v4976_v41, %s4698_s9 }
 0x856   :  { %3148 = vrot.lane.b32.xlu1 %v3107_v42, %s4698_s9 }
 0x8bc   :  { %v3238_v56 = vpop.permute.xlu1 %3237 }
 0x8bd   :  { %v3240_v27 = vadd.f32 %v3238_v56, %v3234_v55 }
 0x8be   :  { %v3244_v41 = vpop.permute.xlu0 %3243 }
 0x8bf   :  { %v5028_v57 = vadd.f32 %v3244_v41, %v3240_v27 }
 0x8c0   :  { %v3110_v5 = vpop.permute.xlu1 %3109 }
 0x8c1   :  { %4614 = vrsqrt.f32 %v5028_v57  ;;  %vm3249_vm11 = vcmp.eq.f32.partialorder %v5028_v57, inf  ;;  %v3252_v63 = vand.u32 2147483648, %v5028_v57  ;;  %vm3251_vm12 = vcmp.eq.f32.partialorder %v5028_v57, 0.0 }
 0x8c2   :  { %v3111_v6 = vrot.slane %v3110_v5, 6  ;;  %v3122_v49 = vpop.permute.xlu0 %3121 }
 0x8c3   :  { %v3123_v7 = vrot.slane %v3122_v49, 6 }
 0x8c4   :  { %v3112_v0 = vsel %vm2967_vm7, %v3111_v6, %v3110_v5  ;;  %v3135_v42 = vpop.permute.xlu1 %3134  ;;  %v3337_v5 = vld [vmem:[%s5122_s7 + $0x10] sm:$0xff]  ;;  %v3336_v6 = vld [vmem:[%s5122_s7 + $0x8] sm:$0xff] }
 0x8c5   :  { %v3114_v8 = vmul.f32 %v3112_v0, %v4990_v18  ;;  %v3125_v9 = vsel %vm3124_vm13, %v3123_v7, %v3122_v49  ;;  %v3136_v46 = vrot.slane %v3135_v42, 6  ;;  %v4705_v7 = vmov 0.7853982   ;;  %4068 = vmatpush3.msra.mxu1 %v3337_v5 }
 0x8c6   :  { %v3142_v10 = vpop.permute.xlu0 %3141  ;;  %4069 = vmatprep.subr.mxu1 %v4701_v59 }
 0x8c7   :  { %v3127_v11 = vadd.f32 %v3125_v9, %v3114_v8  ;;  %v3137_v16 = vsel %vm3124_vm13, %v3136_v46, %v3135_v42  ;;  %v3143_v58 = vrot.slane %v3142_v10, 6  ;;  %v3335_v9 = vld [vmem:[%s5122_s7] sm:$0xff]  ;;  %4070 = vmatpush3.msra.mxu1 %v3336_v6  ;;  %vm4706_vm13 = vmmov 0  }
 0x8c8   :  { %v3149_v13 = vpop.permute.xlu1 %3148  ;;  %4073 = vmatprep.mubr.msk.f32.mxu1 %vm4706_vm13, %v4701_v59  ;;  %4071 = vmatprep.subr.mxu1 %v4701_v59 }
 0x8c9   :  { %v3139_v14 = vadd.f32 %v3137_v16, %v3127_v11  ;;  %v3144_v15 = vsel %vm2967_vm7, %v3143_v58, %v3142_v10  ;;  %v3150_v19 = vrot.slane %v3149_v13, 6  ;;  %4064 = vmatprep.mubr.msk.f32.mxu0 %vm4706_vm13, %v4701_v59  ;;  %4072 = vmatpush3.msra.mxu1 %v3335_v9 }
 0x8ca   :  { %4085 = vmatprep.subr.mxu1 %v4701_v59 }
 0x8cb   :  { %v3146_v23 = vadd.f32 %v3144_v15, %v3139_v14  ;;  %v3151_v1 = vsel %vm2967_vm7, %v3150_v19, %v3149_v13 }
 0x8cd   :  { %v3153_v29 = vmul.f32 %v3151_v1, %v3146_v23 }
 0x8ce   :  { %v4615_v60 = vpop.eup %4614 }
 0x8cf   :  { %3315 = vrot.lane.b32.xlu1 %v4615_v60, %s4698_s9  ;;  %v3248_v61 = vmul.f32 %v4615_v60, %v5028_v57  ;;  %vm3254_vm14 = vcmp.lt.f32.partialorder %v3153_v29, 0.0 }
 0x8d0   :  { %v3255_v31 = vsel %vm3254_vm14, -1.0, %v4704_v30  ;;  %vm3312_vm14 = vcmp.gt.f32.partialorder %v5028_v57, 0.0  ;;  %v3340_v30 = vld [vmem:[%s5122_s7 + $0x28] sm:$0xff] }
 0x8d1   :  { %v3250_v3 = vsel %vm3249_vm11, %v5028_v57, %v3248_v61  ;;  %v3263_v32 = vmul.f32 %v3255_v31, %v3153_v29  ;;  %4059 = vmatpush3.msra.mxu0 %v3340_v30  ;;  %v3583_v57 = vld [vmem:[%s5122_s7 + $0x50] sm:$0x3] }
 0x8d2   :  { %v3253_v4 = vsel %vm3251_vm12, %v3252_v63, %v3250_v3  ;;  %4060 = vmatprep.subr.mxu0 %v4701_v59 }
 0x8d3   :  { %3257 = vrot.lane.b32.xlu0 %v3253_v4, %s4698_s9  ;;  %v3264_v35 = vand.u32 2147483647, %v3263_v32  ;;  %vm3294_vm0 = vcmp.lt.s32.totalorder %v3263_v32, 0  ;;  %vm3291_vm2 = vcmp.lt.f32.partialorder %v3263_v32, 0.0  ;;  %vm3298_vm6 = vcmp.ne.f32.partialorder %v3263_v32, %v3263_v32 }
 0x8d4   :  { %v3295_v3 = vsel %vm3294_vm0, 3.1415927, %v4701_v59  ;;  %v3303_v42 = vsel %vm3291_vm2, 2.3561945, %v4705_v7 }
 0x8d5   :  { %vm3304_vm11 = vcmp.eq.s32.totalorder %v3264_v35, inf }
 0x941   :  { %v3316_v49 = vpop.permute.xlu1 %3315 }
 0x942   :  { %v3317_v11 = vrot.slane %v3316_v49, 6 }
 0x944   :  { %v3318_v13 = vsel %vm2967_vm7, %v3317_v11, %v3316_v49 }
 0x945   :  { %v3258_v24 = vpop.permute.xlu0 %3257 }
 0x946   :  { %v3259_v18 = vrot.slane %v3258_v24, 6 }
 0x948   :  { %v3260_v33 = vsel %vm2967_vm7, %v3259_v18, %v3258_v24  ;;  %v3582_v24 = vld [vmem:[%s5122_s7 + $0x48] sm:$0xff] }
 0x949   :  { %v3262_v34 = vmul.f32 %v3260_v33, %v3255_v31  ;;  %v3339_v31 = vld [vmem:[%s5122_s7 + $0x20] sm:$0xff] }
 0x94a   :  { %4061 = vmatpush3.msra.mxu0 %v3339_v31 }
 0x94b   :  { %v3265_v36 = vand.u32 2147483647, %v3262_v34  ;;  %vm3299_vm1 = vcmp.ne.f32.partialorder %v3262_v34, %v3262_v34  ;;  %vm3296_vm5 = vcmp.eq.f32.partialorder %v3262_v34, 0.0  ;;  %v3309_v10 = vand.u32 2147483648, %v3262_v34  ;;  %4062 = vmatprep.subr.mxu0 %v4701_v59 }
 0x94c   :  { %vm3300_vm9 = vmor %vm3298_vm6, %vm3299_vm1 }
 0x94d   :  { %v3267_v37 = vmax.f32 %v3264_v35, %v3265_v36  ;;  %v3266_v38 = vmin.f32 %v3264_v35, %v3265_v36  ;;  %vm3288_vm15 = vcmp.gt.f32.partialorder %v3265_v36, %v3264_v35  ;;  %vm3305_vm4 = vcmp.eq.s32.totalorder %v3265_v36, inf }
 0x94e   :  { %vm3306_vm12 = vmand %vm3304_vm11, %vm3305_vm4  ;;  %v3590_v36 = vrot.slane %v4887_v21, %v4883_v2  ;;  %v3496_v21 = vld [vmem:[%s5122_s7 + $0x30] sm:$0xff] }
 0x94f   :  { %4616 = vrcp.f32 %v3267_v37 }
 0x950   :  { %v3591_v37 = vcombine.high %v3590_v36, %v3590_v36 }
 0x95c   :  { %v4617_v39 = vpop.eup %4616 }
 0x95d   :  { %v3269_v40 = vmul.f32 %v4617_v39, %v3266_v38 }
 0x95f   :  { %v3270_v43 = vmul.f32 %v3269_v40, %v3269_v40 }
 0x961   :  { %v3271_v44 = vmul.f32 0.002785687, %v3270_v43 }
 0x963   :  { %v3272_v47 = vadd.f32 -0.015866, %v3271_v44 }
 0x965   :  { %v3273_v20 = vmul.f32 %v3272_v47, %v3270_v43 }
 0x967   :  { %v3274_v51 = vadd.f32 0.04247222, %v3273_v20 }
 0x969   :  { %v3275_v12 = vmul.f32 %v3274_v51, %v3270_v43 }
 0x96b   :  { %v3276_v62 = vadd.f32 -0.074975304, %v3275_v12 }
 0x96d   :  { %v3277_v52 = vmul.f32 %v3276_v62, %v3270_v43 }
 0x96f   :  { %v3278_v22 = vadd.f32 0.1064488, %v3277_v52 }
 0x971   :  { %v3279_v50 = vmul.f32 %v3278_v22, %v3270_v43 }
 0x973   :  { %v3280_v17 = vadd.f32 -0.14207031, %v3279_v50 }
 0x975   :  { %v3281_v53 = vmul.f32 %v3280_v17, %v3270_v43 }
 0x977   :  { %v3282_v25 = vadd.f32 0.19993454, %v3281_v53 }
 0x979   :  { %v3283_v54 = vmul.f32 %v3282_v25, %v3270_v43 }
 0x97b   :  { %v3284_v26 = vadd.f32 -0.33333147, %v3283_v54 }
 0x97d   :  { %v3285_v55 = vmul.f32 %v3284_v26, %v3270_v43 }
 0x97f   :  { %v3286_v56 = vmul.f32 %v3285_v55, %v3269_v40 }
 0x981   :  { %v3287_v27 = vadd.f32 %v3286_v56, %v3269_v40 }
 0x983   :  { %v3289_v41 = vsub.f32 1.5707964, %v3287_v27 }
 0x985   :  { %v3290_v60 = vsel %vm3288_vm15, %v3289_v41, %v3287_v27 }
 0x986   :  { %v3292_v61 = vsub.f32 3.1415927, %v3290_v60 }
 0x988   :  { %v3293_v63 = vsel %vm3291_vm2, %v3292_v61, %v3290_v60 }
 0x989   :  { %v3297_v4 = vsel %vm3296_vm5, %v3295_v3, %v3293_v63 }
 0x98a   :  { %v3301_v0 = vsel %vm3300_vm9, nan, %v3297_v4 }
 0x98b   :  { %v3307_v8 = vsel %vm3306_vm12, %v3303_v42, %v3301_v0 }
 0x98c   :  { %v3308_v46 = vand.u32 2147483647, %v3307_v8 }
 0x98e   :  { %v3310_v16 = vor.u32 %v3309_v10, %v3308_v46 }
 0x990   :  { %v3311_v58 = vmul.f32 2.0, %v3310_v16 }
 0x992   :  { %v3320_v14 = vmul.f32 %v3318_v13, %v3311_v58 }
 0x994   :  { %3322 = vrot.lane.b32.xlu0 %v3320_v14, %s4690_s22 }
 0xa06   :  { %v3323_v15 = vpop.permute.xlu0 %3322 }
 0xa07   :  { %v3324_v19 = vrot.slane %v3323_v15, 2 }
 0xa09   :  { %v3325_v23 = vsel %vm3028_vm10, %v3323_v15, %v3324_v19 }
 0xa0a   :  { %v3327_v1 = vsel %vm3312_vm14, %v3325_v23, 2.0 }
 0xa0b   :  { %3330 = vrot.lane.b32.xlu1 %v3327_v1, %s4696_s29  ;;  %v3328_v29 = vmul.f32 %v3327_v1, %v5024_v28  ;;  %v3338_v28 = vld [vmem:[%s5122_s7 + $0x18] sm:$0xff] }
 0xa0c   :  { %4063 = vmatpush3.msra.mxu0 %v3338_v28 }
 0xa0d   :  { %4074 = vmatmul.mubr.msk.f32.vlgmr.msra.gmra.mxu1 %vm3072_vm8, %v3328_v29  ;;  %4076 = vmatprep.subr.mxu0 %v4701_v59 }
 0xa0e   :  { %4089 = vmatprep.mubr.msk.f32.mxu1 %vm4706_vm13, %v4701_v59  ;;  %4086 = vmatpush3.msk.msra.mxu1 %vm2894_vm3, %v3583_v57  ;;  %vm3594_vm3 = vcmask 80896  }
 0xa0f   :  { %4087 = vmatprep.subr.mxu1 %v4701_v59 }
 0xa10   :  { %4088 = vmatpush3.msra.mxu1 %v3582_v24 }
 0xa7d   :  { %v3331_v18 = vpop.permute.xlu1 %3330 }
 0xa7e   :  { %v3333_v32 = vmul.f32 %v3331_v18, %v5005_v45  ;;  %v3334_v33 = vmul.f32 %v3331_v18, %v5007_v48  ;;  %v3498_v45 = vld [vmem:[%s5122_s7 + $0x40] sm:$0xff] }
 0xa80   :  { %v3348_v34 = vrot.slane %v3333_v32, %v4883_v2  ;;  %v3506_v35 = vrot.slane %v3334_v33, %v4883_v2  ;;  %v3497_v2 = vld [vmem:[%s5122_s7 + $0x38] sm:$0xff] }
 0xa82   :  { %3507 = vrot.lane.b32.xlu1 %v3506_v35, %s4694_s6  ;;  %3349 = vrot.lane.b32.xlu0 %v3348_v34, %s4694_s6 }
 0xa86   :  { %3592 = vrot.lane.b32.xlu0 %v3591_v37, %s4707_s25 }
 0xacd   :  { %v3492_v38 = vpop.f32.mrf.mxu1 }
 0xacf   :  { %v4075_v39 = vpop.f32.mrf.mxu1 }
 0xaf4   :  { %v3350_v48 = vpop.permute.xlu0 %3349  ;;  %v3508_v43 = vpop.permute.xlu1 %3507 }
 0xaf5   :  { %4065 = vmatmul.mubr.msk.f32.vlgmr.msra.gmra.mxu0 %vm3072_vm8, %v3350_v48 }
 0xaf6   :  { %4077 = vmatpush3.msra.mxu0 %v3498_v45  ;;  %4082 = vmatprep.mubr.msk.f32.mxu0 %vm4706_vm13, %v4701_v59 }
 0xaf7   :  { %4078 = vmatprep.subr.mxu0 %v4701_v59 }
 0xaf8   :  { %4079 = vmatpush3.msra.mxu0 %v3497_v2  ;;  %v3593_v40 = vpop.permute.xlu0 %3592 }
 0xaf9   :  { %4080 = vmatprep.subr.mxu0 %v4701_v59  ;;  %4090 = vmatmul.mubr.msk.f32.vlgmr.msra.gmra.mxu1 %vm3594_vm3, %v3593_v40 }
 0xafa   :  { %4081 = vmatpush3.msra.mxu0 %v3496_v21 }
 0xafb   :  { %4083 = vmatmul.mubr.msk.f32.vlgmr.msra.gmra.mxu0 %vm3072_vm8, %v3508_v43 }
 0xbb5   :  { %v3419_v44 = vpop.f32.mrf.mxu0 }
 0xbb6   :  { %v3493_v51 = vadd.f32 %v3492_v38, %v3419_v44 }
 0xbb7   :  { %v4066_v47 = vpop.f32.mrf.mxu0 }
 0xbb9   :  { %v3666_v20 = vpop.f32.mrf.mxu1 }
 0xbbb   :  { %v3577_v12 = vpop.f32.mrf.mxu0  ;;  %v4091_v62 = vpop.f32.mrf.mxu1 }
 0xbbc   :  { %v3581_v52 = vadd.f32 %v3577_v12, %v3493_v51 }
 0xbbd   :  { %v4084_v22 = vpop.f32.mrf.mxu0 }
 0xbbe   :  { %v3670_v50 = vadd.f32 %v3666_v20, %v3581_v52 }
 0xbc0   :  { %3671 = vst [vmem:[%s5123_s8] sm:$0x3] %v3670_v50 }
 0xbc1   :  { %3676 = vsyncpa [#allocation4], 1 }
 0xbc2   :  { %3677 = vsyncpa [#allocation6], 1 }

</bundles_post_ra>
